<compile_context>
chip_gen: v7x
topology: tpu7x:2x2x1
jax: 0.10.0
libtpu: 0.0.40
codegen_flags: <defaults>
</compile_context>

<pallas_src>
import math

import jax
import jax.numpy as jnp
from jax.experimental import pallas as pl
from jax.experimental.pallas import tpu as pltpu


# ----------------------------------------------------------------------------
# Pallas kernel 1: valid Conv1d (pre-padded input) + per-channel affine
# (folded conv-bias + eval BatchNorm) + PReLU, all fused; K taps unrolled.
# ----------------------------------------------------------------------------
def conv_affine_prelu(xpad, wk, aff, *, dilation=1):
    """y = PReLU( scale * conv1d_valid(xpad, w) + shift ).

    xpad: (B, Cin, Tpad)   already carries any 'same' halo
    wk:   (K, Cout, Cin)   tap-major weights
    aff:  (3, Cout, 1)     [scale; shift; prelu_alpha]
    """
    B, Cin, Tpad = xpad.shape
    K, Cout, _ = wk.shape
    T = Tpad - dilation * (K - 1)

    def kernel(w_ref, aff_ref, x_ref, y_ref):
        acc = jnp.zeros((Cout, T), jnp.float32)
        for k in range(K):                                   # static unroll
            acc = acc + jnp.dot(w_ref[k],
                                x_ref[0, :, k * dilation:k * dilation + T],
                                preferred_element_type=jnp.float32)
        h = acc * aff_ref[0] + aff_ref[1]
        y_ref[0] = jnp.where(h > 0.0, h, aff_ref[2] * h)

    return pl.pallas_call(
        kernel,
        out_shape=jax.ShapeDtypeStruct((B, Cout, T), jnp.float32),
        grid_spec=pltpu.PrefetchScalarGridSpec(
            num_scalar_prefetch=0,
            grid=(B,),
            in_specs=[
                pl.BlockSpec((K, Cout, Cin), lambda b: (0, 0, 0)),
                pl.BlockSpec((3, Cout, 1), lambda b: (0, 0, 0)),
                pl.BlockSpec((1, Cin, Tpad), lambda b: (b, 0, 0)),
            ],
            out_specs=pl.BlockSpec((1, Cout, T), lambda b: (b, 0, 0)),
        ),
        compiler_params=pltpu.CompilerParams(
            dimension_semantics=("parallel",)),
    )(wk, aff, xpad)


# ----------------------------------------------------------------------------
# Pallas kernel 2: one fully fused WaveNet layer.
#   z_pre = BN(dilated_conv(h)) [+ cond]
#   z     = tanh(z_pre[:G]) * sigmoid(z_pre[G:])
#   h'    = h + res_w @ z + res_b
#   skip' = skip + skip_w @ z + skip_b
# ----------------------------------------------------------------------------
def wavenet_layer(hpad, skip, dw, daff, rwb, swb, *, dilation=1, cond_pre=None):
    """hpad: (B, rd, Tpad)  residual input, padded with the layer's halo
    skip:   (B, sd, T)      running skip accumulator
    dw:     (K, 2G, rd)     dilated-conv weights, tap-major
    daff:   (2, 2G, 1)      [bn_scale; bn_shift] for the dilated conv
    rwb:    (rd, G+1)       1x1 residual weights with bias in last column
    swb:    (sd, G+1)       1x1 skip weights with bias in last column
    cond_pre: optional (B, 2G, T) conditioning pre-activation to add.
    """
    B, rd, Tpad = hpad.shape
    K, C2, _ = dw.shape
    G = C2 // 2
    span = dilation * (K - 1)
    T = Tpad - span
    left = span // 2
    sd = swb.shape[0]
    has_cond = cond_pre is not None

    def kernel(*refs):
        if has_cond:
            (dw_ref, daff_ref, rwb_ref, swb_ref, hpad_ref, skip_ref, cond_ref,
             hout_ref, sout_ref) = refs
        else:
            (dw_ref, daff_ref, rwb_ref, swb_ref, hpad_ref, skip_ref,
             hout_ref, sout_ref) = refs

        # dilated conv: K tap-matmuls accumulated in vregs (no scratch).
        acc = jnp.zeros((C2, T), jnp.float32)
        for k in range(K):
            acc = acc + jnp.dot(dw_ref[k],
                                hpad_ref[0, :, k * dilation:k * dilation + T],
                                preferred_element_type=jnp.float32)
        z_pre = acc * daff_ref[0] + daff_ref[1]
        if has_cond:
            z_pre = z_pre + cond_ref[0]

        # gated activation fused into the epilogue (EUP slot).
        z = jnp.tanh(z_pre[:G, :]) * jax.nn.sigmoid(z_pre[G:, :])

        # 1x1 residual / skip projections + adds, still in the same kernel.
        res = jnp.dot(rwb_ref[:, :G], z,
                      preferred_element_type=jnp.float32) + rwb_ref[:, G:G + 1]
        sk = jnp.dot(swb_ref[:, :G], z,
                     preferred_element_type=jnp.float32) + swb_ref[:, G:G + 1]

        hout_ref[0] = hpad_ref[0, :, left:left + T] + res
        sout_ref[0] = skip_ref[0] + sk

    in_specs = [
        pl.BlockSpec((K, C2, rd), lambda b: (0, 0, 0)),
        pl.BlockSpec((2, C2, 1), lambda b: (0, 0, 0)),
        pl.BlockSpec((rd, G + 1), lambda b: (0, 0)),
        pl.BlockSpec((sd, G + 1), lambda b: (0, 0)),
        pl.BlockSpec((1, rd, Tpad), lambda b: (b, 0, 0)),
        pl.BlockSpec((1, sd, T), lambda b: (b, 0, 0)),
    ]
    args = [dw, daff, rwb, swb, hpad, skip]
    if has_cond:
        in_specs.append(pl.BlockSpec((1, C2, T), lambda b: (b, 0, 0)))
        args.append(cond_pre)

    return pl.pallas_call(
        kernel,
        out_shape=(jax.ShapeDtypeStruct((B, rd, T), jnp.float32),
                   jax.ShapeDtypeStruct((B, sd, T), jnp.float32)),
        grid_spec=pltpu.PrefetchScalarGridSpec(
            num_scalar_prefetch=0,
            grid=(B,),
            in_specs=in_specs,
            out_specs=(pl.BlockSpec((1, rd, T), lambda b: (b, 0, 0)),
                       pl.BlockSpec((1, sd, T), lambda b: (b, 0, 0))),
        ),
        compiler_params=pltpu.CompilerParams(
            dimension_semantics=("parallel",)),
    )(*args)


# ----------------------------------------------------------------------------
# Pallas kernel 3: fused out_layer = Conv1d(k) + BN + PReLU + Conv1d(1).
# ----------------------------------------------------------------------------
def out_layer_fused(xpad, w1, aff1, w2b, *, dilation=1):
    """xpad: (B, sd, Tpad); w1: (K, od, sd); aff1: (3, od, 1); w2b: (od2, od+1)."""
    B, sd, Tpad = xpad.shape
    K, od, _ = w1.shape
    T = Tpad - dilation * (K - 1)
    od2 = w2b.shape[0]

    def kernel(w1_ref, aff_ref, w2b_ref, x_ref, y_ref):
        acc = jnp.zeros((od, T), jnp.float32)
        for k in range(K):
            acc = acc + jnp.dot(w1_ref[k],
                                x_ref[0, :, k * dilation:k * dilation + T],
                                preferred_element_type=jnp.float32)
        h = acc * aff_ref[0] + aff_ref[1]
        h = jnp.where(h > 0.0, h, aff_ref[2] * h)
        y_ref[0] = jnp.dot(w2b_ref[:, :od], h,
                           preferred_element_type=jnp.float32) + w2b_ref[:, od:od + 1]

    return pl.pallas_call(
        kernel,
        out_shape=jax.ShapeDtypeStruct((B, od2, T), jnp.float32),
        grid_spec=pltpu.PrefetchScalarGridSpec(
            num_scalar_prefetch=0,
            grid=(B,),
            in_specs=[
                pl.BlockSpec((K, od, sd), lambda b: (0, 0, 0)),
                pl.BlockSpec((3, od, 1), lambda b: (0, 0, 0)),
                pl.BlockSpec((od2, od + 1), lambda b: (0, 0)),
                pl.BlockSpec((1, sd, Tpad), lambda b: (b, 0, 0)),
            ],
            out_specs=pl.BlockSpec((1, od2, T), lambda b: (b, 0, 0)),
        ),
        compiler_params=pltpu.CompilerParams(
            dimension_semantics=("parallel",)),
    )(w1, aff1, w2b, xpad)


# ----------------------------------------------------------------------------
# Deterministic parameter construction (synthetic; mirrors __init__ shapes).
# All weights are stored in kernel-ready layouts (hoisted out of the hot path).
# ----------------------------------------------------------------------------
class KeyGen:
    def __init__(self, seed):
        self.key = jax.random.PRNGKey(seed)
        self.i = 0

    def __call__(self):
        self.i += 1
        return jax.random.fold_in(self.key, self.i)


def _nrm(key, shape, scale):
    return scale * jax.random.normal(key, shape, dtype=jnp.float32)


def conv_params(kg, cin, cout, k):
    w = _nrm(kg(), (cout, cin, k), 1.0 / math.sqrt(cin * k))
    b = _nrm(kg(), (cout,), 0.05)
    return w, b


def bn_fold(kg, c, bias, eps=1e-5):
    """Fold conv bias + eval-mode BatchNorm1d into (scale, shift)."""
    gamma = 1.0 + _nrm(kg(), (c,), 0.05)
    beta = _nrm(kg(), (c,), 0.05)
    mean = _nrm(kg(), (c,), 0.05)
    var = 1.0 + 0.05 * jax.random.uniform(kg(), (c,), dtype=jnp.float32)
    scale = gamma / jnp.sqrt(var + eps)
    shift = (bias - mean) * scale + beta
    return scale, shift


def _pack_aff(scale, shift, alpha):
    c = scale.shape[0]
    return jnp.stack([scale, shift, alpha]).reshape(3, c, 1)


def _pack_wb(w1x1, b):
    # (Cout, Cin, 1), (Cout,) -> (Cout, Cin+1) with the bias in the last column
    return jnp.concatenate([w1x1[:, :, 0], b[:, None]], axis=1)


def make_encoder_params(kg, cfg):
    rd, gd, sd, od = (cfg["residual_dim"], cfg["gate_dim"],
                      cfg["skip_dim"], cfg["output_dim"])
    prelu = lambda c: jnp.full((c,), 0.25, jnp.float32)
    ones = lambda c: jnp.ones((c,), jnp.float32)
    arrays = {}
    meta = {}

    # in_layer: Conv1d(k=5) + BN + PReLU
    w, b = conv_params(kg, cfg["input_dim"], rd, 5)
    sc, sh = bn_fold(kg, rd, b)
    arrays["in_w"] = jnp.transpose(w, (2, 0, 1))                 # (K, rd, cin)
    arrays["in_aff"] = _pack_aff(sc, sh, prelu(rd))

    # re_sampler: Conv1d(k=receptive_width, stride=dsf) + BN + PReLU,
    # pre-lowered to polyphase weights so the kernel is a plain valid conv.
    dsf = cfg["down_sample_factor"]
    meta["stride"] = dsf
    if dsf > 1:
        rw = (4 + dsf % 2) * dsf
        w, b = conv_params(kg, rd, rd, rw)
        sc, sh = bn_fold(kg, rd, b)
        kq = rw // dsf
        wp = w.reshape(rd, rd, kq, dsf)           # [o, i, q, r] = w[o, i, q*s+r]
        wp = jnp.transpose(wp, (2, 0, 3, 1))      # (Kq, o, r, i)
        wp = wp.reshape(kq, rd, dsf * rd)         # phase-major input channels
        arrays["rs_w"] = wp
        arrays["rs_aff"] = _pack_aff(sc, sh, prelu(rd))

    # WaveNet layers
    layers = []
    for _ in range(cfg["n_stages"]):
        for _d in cfg["dilation_list"]:
            dw, db = conv_params(kg, rd, 2 * gd, cfg["kernel_size"])
            dsc, dsh = bn_fold(kg, 2 * gd, db)
            rw_, rb_ = conv_params(kg, gd, rd, 1)
            sw_, sb_ = conv_params(kg, gd, sd, 1)
            layer = dict(
                dw=jnp.transpose(dw, (2, 0, 1)),                 # (K, 2G, rd)
                daff=jnp.stack([dsc, dsh]).reshape(2, 2 * gd, 1),
                rwb=_pack_wb(rw_, rb_),                          # (rd, G+1)
                swb=_pack_wb(sw_, sb_),                          # (sd, G+1)
            )
            if cfg.get("cond_dim"):
                cw_, cb_ = conv_params(kg, cfg["cond_dim"], 2 * gd, 1)
                layer["cond_w"] = jnp.transpose(cw_, (2, 0, 1))  # (1, 2G, cond)
                layer["cond_aff"] = _pack_aff(ones(2 * gd), cb_, ones(2 * gd))
            layers.append(layer)
    arrays["wn"] = layers
    meta["dilations"] = list(cfg["dilation_list"]) * cfg["n_stages"]

    # out_layer: Conv1d(k) + BN + PReLU + Conv1d(1), fused in one kernel.
    w1, b1 = conv_params(kg, sd, od, cfg["kernel_size"])
    sc, sh = bn_fold(kg, od, b1)
    arrays["out_w1"] = jnp.transpose(w1, (2, 0, 1))
    arrays["out_aff"] = _pack_aff(sc, sh, prelu(od))
    w2, b2 = conv_params(kg, od, od, 1)
    arrays["out_w2b"] = _pack_wb(w2, b2)
    return arrays, meta


# ----------------------------------------------------------------------------
# Forward passes (thin glue around the fused Pallas kernels; runs under jit).
# ----------------------------------------------------------------------------
def _same_pad(x, span):
    left = span // 2
    return jnp.pad(x, ((0, 0), (0, 0), (left, span - left)))


def encoder_forward(meta, p, x, c=None):
    # in_layer
    k_in = p["in_w"].shape[0]
    h = conv_affine_prelu(_same_pad(x, k_in - 1), p["in_w"], p["in_aff"])

    # re_sampler via polyphase: pad for the strided 'same' conv, interleave
    # the `stride` phases into channels, then a plain valid conv emits the
    # downsampled output directly (no full-rate output, no XLA stride-slice).
    if meta["stride"] > 1:
        s = meta["stride"]
        kq = p["rs_w"].shape[0]
        krw = kq * s
        B, rd, T = h.shape
        t_out = -(-T // s)                       # ceil(T / s)
        t_pad = (t_out - 1) * s + krw            # multiple of s (krw is)
        total_pad = t_pad - T
        left = total_pad // 2
        hp = jnp.pad(h, ((0, 0), (0, 0), (left, total_pad - left)))
        P = t_pad // s
        hp = hp.reshape(B, rd, P, s).transpose(0, 3, 1, 2).reshape(B, s * rd, P)
        h = conv_affine_prelu(hp, p["rs_w"], p["rs_aff"])

    # WaveNet: one fused pallas_call per layer.
    B, rd, T = h.shape
    sd = p["wn"][0]["swb"].shape[0]
    skip = jnp.zeros((B, sd, T), jnp.float32)
    for layer, d in zip(p["wn"], meta["dilations"]):
        K = layer["dw"].shape[0]
        hpad = _same_pad(h, d * (K - 1))
        cond_pre = None
        if c is not None and "cond_w" in layer:
            # TODO(synk): conditioning is assumed already time-aligned with h.
            cond_pre = conv_affine_prelu(c, layer["cond_w"], layer["cond_aff"])
        h, skip = wavenet_layer(hpad, skip, layer["dw"], layer["daff"],
                                layer["rwb"], layer["swb"],
                                dilation=d, cond_pre=cond_pre)

    # out_layer (conv-k + BN + PReLU + conv-1x1) fused.
    ko = p["out_w1"].shape[0]
    return out_layer_fused(_same_pad(skip, ko - 1), p["out_w1"],
                           p["out_aff"], p["out_w2b"])


def unet_encoder_forward(metas, embedding_dims, params, x, list_c=None):
    if list_c is None:
        list_c = [None] * len(params)
    outs = []
    h = x
    for meta, p, dim, c in zip(metas, params, embedding_dims, list_c):
        h = encoder_forward(meta, p, h, c)
        outs.append(h[:, :dim, :])     # torch.split along channels
        h = h[:, dim:, :]              # use_batchnorm=False -> nn.Identity
    return outs


# ----------------------------------------------------------------------------
if __name__ == "__main__":
    B, Cin, T = 2, 4, 32
    x = jax.random.normal(jax.random.PRNGKey(0), (B, Cin, T), dtype=jnp.float32)

    cfg1 = dict(input_dim=4, output_dim=24, residual_dim=16, gate_dim=16,
                skip_dim=16, kernel_size=3, dilation_list=[1, 2], n_stages=1,
                down_sample_factor=2, cond_dim=None)
    cfg2 = dict(input_dim=16, output_dim=16, residual_dim=16, gate_dim=16,
                skip_dim=16, kernel_size=3, dilation_list=[1, 2], n_stages=1,
                down_sample_factor=2, cond_dim=None)

    kg = KeyGen(0)
    arrays1, meta1 = make_encoder_params(kg, cfg1)
    arrays2, meta2 = make_encoder_params(kg, cfg2)
    params = [arrays1, arrays2]
    metas = [meta1, meta2]
    embedding_dims = [8, 8]

    # Static config (dilations, strides, split dims) is closed over; only
    # arrays are traced, so the whole forward compiles to one XLA program.
    fwd = jax.jit(lambda prm, inp: unet_encoder_forward(metas, embedding_dims,
                                                        prm, inp))
    outs = fwd(params, x)
    outs = jax.block_until_ready(outs)

    assert outs[0].shape == (2, 8, 16), outs[0].shape   # stride 2
    assert outs[1].shape == (2, 8, 8), outs[1].shape    # total stride 4
    assert all(bool(jnp.isfinite(o).all()) for o in outs)
    print("KERNEL_OK")
</pallas_src>

<mosaic_0001>
module attributes {stable_mosaic.version = 11 : i64} {
  func.func @kernel(%arg0: i32, %arg1: memref<5x16x4xf32, #tpu.memory_space<vmem>>, %arg2: memref<3x16x1xf32, #tpu.memory_space<vmem>>, %arg3: memref<1x4x36xf32, #tpu.memory_space<vmem>>, %arg4: memref<1x16x32xf32, #tpu.memory_space<vmem>>) attributes {dimension_semantics = [#tpu.dimension_semantics<parallel>], iteration_bounds = array<i64: 2>, scalar_prefetch = 0 : i64, scratch_operands = 0 : i64, tpu.core_type = #tpu.core_type<tc>, window_params = [{pipeline_mode = #tpu.pipeline_mode<synchronous>, transform_indices = @transform_0, window_bounds = array<i64: 5, 16, 4>}, {pipeline_mode = #tpu.pipeline_mode<synchronous>, transform_indices = @transform_1, window_bounds = array<i64: 3, 16, 1>}, {transform_indices = @transform_2, window_bounds = array<i64: 1, 4, 36>}, {transform_indices = @transform_3, window_bounds = array<i64: 1, 16, 32>}]} {
    %cst = arith.constant 0.000000e+00 : f32
    %0 = vector.broadcast %cst : f32 to vector<16x32xf32>
    %c0 = arith.constant 0 : index
    %c0_0 = arith.constant 0 : index
    %c0_1 = arith.constant 0 : index
    %1 = vector.load %arg1[%c0, %c0_0, %c0_1] : memref<5x16x4xf32, #tpu.memory_space<vmem>>, vector<1x16x4xf32>
    %2 = vector.shape_cast %1 : vector<1x16x4xf32> to vector<16x4xf32>
    %c0_2 = arith.constant 0 : index
    %c0_3 = arith.constant 0 : index
    %c0_4 = arith.constant 0 : index
    %3 = vector.load %arg3[%c0_2, %c0_3, %c0_4] : memref<1x4x36xf32, #tpu.memory_space<vmem>>, vector<1x4x32xf32>
    %4 = vector.shape_cast %3 : vector<1x4x32xf32> to vector<4x32xf32>
    %cst_5 = arith.constant dense<0.000000e+00> : vector<16x32xf32>
    %5 = tpu.matmul %2, %4, %cst_5 {dimension_numbers = #tpu.dot_dimension_numbers<[1], [0], [0], [1], [0, 0, 1, 1], [], []>} : vector<16x4xf32>, vector<4x32xf32>, vector<16x32xf32> -> vector<16x32xf32>
    %6 = arith.addf %0, %5 : vector<16x32xf32>
    %c1 = arith.constant 1 : index
    %c0_6 = arith.constant 0 : index
    %c0_7 = arith.constant 0 : index
    %7 = vector.load %arg1[%c1, %c0_6, %c0_7] : memref<5x16x4xf32, #tpu.memory_space<vmem>>, vector<1x16x4xf32>
    %8 = vector.shape_cast %7 : vector<1x16x4xf32> to vector<16x4xf32>
    %c0_8 = arith.constant 0 : index
    %c0_9 = arith.constant 0 : index
    %c1_10 = arith.constant 1 : index
    %9 = vector.load %arg3[%c0_8, %c0_9, %c1_10] : memref<1x4x36xf32, #tpu.memory_space<vmem>>, vector<1x4x32xf32>
    %10 = vector.shape_cast %9 : vector<1x4x32xf32> to vector<4x32xf32>
    %cst_11 = arith.constant dense<0.000000e+00> : vector<16x32xf32>
    %11 = tpu.matmul %8, %10, %cst_11 {dimension_numbers = #tpu.dot_dimension_numbers<[1], [0], [0], [1], [0, 0, 1, 1], [], []>} : vector<16x4xf32>, vector<4x32xf32>, vector<16x32xf32> -> vector<16x32xf32>
    %12 = arith.addf %6, %11 : vector<16x32xf32>
    %c2 = arith.constant 2 : index
    %c0_12 = arith.constant 0 : index
    %c0_13 = arith.constant 0 : index
    %13 = vector.load %arg1[%c2, %c0_12, %c0_13] : memref<5x16x4xf32, #tpu.memory_space<vmem>>, vector<1x16x4xf32>
    %14 = vector.shape_cast %13 : vector<1x16x4xf32> to vector<16x4xf32>
    %c0_14 = arith.constant 0 : index
    %c0_15 = arith.constant 0 : index
    %c2_16 = arith.constant 2 : index
    %15 = vector.load %arg3[%c0_14, %c0_15, %c2_16] : memref<1x4x36xf32, #tpu.memory_space<vmem>>, vector<1x4x32xf32>
    %16 = vector.shape_cast %15 : vector<1x4x32xf32> to vector<4x32xf32>
    %cst_17 = arith.constant dense<0.000000e+00> : vector<16x32xf32>
    %17 = tpu.matmul %14, %16, %cst_17 {dimension_numbers = #tpu.dot_dimension_numbers<[1], [0], [0], [1], [0, 0, 1, 1], [], []>} : vector<16x4xf32>, vector<4x32xf32>, vector<16x32xf32> -> vector<16x32xf32>
    %18 = arith.addf %12, %17 : vector<16x32xf32>
    %c3 = arith.constant 3 : index
    %c0_18 = arith.constant 0 : index
    %c0_19 = arith.constant 0 : index
    %19 = vector.load %arg1[%c3, %c0_18, %c0_19] : memref<5x16x4xf32, #tpu.memory_space<vmem>>, vector<1x16x4xf32>
    %20 = vector.shape_cast %19 : vector<1x16x4xf32> to vector<16x4xf32>
    %c0_20 = arith.constant 0 : index
    %c0_21 = arith.constant 0 : index
    %c3_22 = arith.constant 3 : index
    %21 = vector.load %arg3[%c0_20, %c0_21, %c3_22] : memref<1x4x36xf32, #tpu.memory_space<vmem>>, vector<1x4x32xf32>
    %22 = vector.shape_cast %21 : vector<1x4x32xf32> to vector<4x32xf32>
    %cst_23 = arith.constant dense<0.000000e+00> : vector<16x32xf32>
    %23 = tpu.matmul %20, %22, %cst_23 {dimension_numbers = #tpu.dot_dimension_numbers<[1], [0], [0], [1], [0, 0, 1, 1], [], []>} : vector<16x4xf32>, vector<4x32xf32>, vector<16x32xf32> -> vector<16x32xf32>
    %24 = arith.addf %18, %23 : vector<16x32xf32>
    %c4 = arith.constant 4 : index
    %c0_24 = arith.constant 0 : index
    %c0_25 = arith.constant 0 : index
    %25 = vector.load %arg1[%c4, %c0_24, %c0_25] : memref<5x16x4xf32, #tpu.memory_space<vmem>>, vector<1x16x4xf32>
    %26 = vector.shape_cast %25 : vector<1x16x4xf32> to vector<16x4xf32>
    %c0_26 = arith.constant 0 : index
    %c0_27 = arith.constant 0 : index
    %c4_28 = arith.constant 4 : index
    %27 = vector.load %arg3[%c0_26, %c0_27, %c4_28] : memref<1x4x36xf32, #tpu.memory_space<vmem>>, vector<1x4x32xf32>
    %28 = vector.shape_cast %27 : vector<1x4x32xf32> to vector<4x32xf32>
    %cst_29 = arith.constant dense<0.000000e+00> : vector<16x32xf32>
    %29 = tpu.matmul %26, %28, %cst_29 {dimension_numbers = #tpu.dot_dimension_numbers<[1], [0], [0], [1], [0, 0, 1, 1], [], []>} : vector<16x4xf32>, vector<4x32xf32>, vector<16x32xf32> -> vector<16x32xf32>
    %30 = arith.addf %24, %29 : vector<16x32xf32>
    %c0_30 = arith.constant 0 : index
    %c0_31 = arith.constant 0 : index
    %c0_32 = arith.constant 0 : index
    %31 = vector.load %arg2[%c0_30, %c0_31, %c0_32] : memref<3x16x1xf32, #tpu.memory_space<vmem>>, vector<1x16x1xf32>
    %32 = vector.shape_cast %31 : vector<1x16x1xf32> to vector<16x1xf32>
    %33 = vector.broadcast %32 : vector<16x1xf32> to vector<16x32xf32>
    %34 = arith.mulf %30, %33 : vector<16x32xf32>
    %c1_33 = arith.constant 1 : index
    %c0_34 = arith.constant 0 : index
    %c0_35 = arith.constant 0 : index
    %35 = vector.load %arg2[%c1_33, %c0_34, %c0_35] : memref<3x16x1xf32, #tpu.memory_space<vmem>>, vector<1x16x1xf32>
    %36 = vector.shape_cast %35 : vector<1x16x1xf32> to vector<16x1xf32>
    %37 = vector.broadcast %36 : vector<16x1xf32> to vector<16x32xf32>
    %38 = arith.addf %34, %37 : vector<16x32xf32>
    %cst_36 = arith.constant 0.000000e+00 : f32
    %39 = vector.broadcast %cst_36 : f32 to vector<16x32xf32>
    %40 = arith.cmpf ogt, %38, %39 : vector<16x32xf32>
    %c2_37 = arith.constant 2 : index
    %c0_38 = arith.constant 0 : index
    %c0_39 = arith.constant 0 : index
    %41 = vector.load %arg2[%c2_37, %c0_38, %c0_39] : memref<3x16x1xf32, #tpu.memory_space<vmem>>, vector<1x16x1xf32>
    %42 = vector.shape_cast %41 : vector<1x16x1xf32> to vector<16x1xf32>
    %43 = vector.broadcast %42 : vector<16x1xf32> to vector<16x32xf32>
    %44 = arith.mulf %43, %38 : vector<16x32xf32>
    %45 = arith.select %40, %38, %44 : vector<16x32xi1>, vector<16x32xf32>
    %c0_40 = arith.constant 0 : index
    %c0_41 = arith.constant 0 : index
    %c0_42 = arith.constant 0 : index
    %46 = vector.load %arg4[%c0_40, %c0_41, %c0_42] : memref<1x16x32xf32, #tpu.memory_space<vmem>>, vector<1x16x32xf32>
    %47 = vector.shape_cast %46 : vector<1x16x32xf32> to vector<16x32xf32>
    %48 = vector.shape_cast %45 : vector<16x32xf32> to vector<1x16x32xf32>
    tpu.vector_store %arg4[%c0_40, %c0_41, %c0_42], %48 {strides = array<i32>} : memref<1x16x32xf32, #tpu.memory_space<vmem>>, vector<1x16x32xf32>,
    return
  }
  func.func @transform_0(%arg0: i32) -> (i32, i32, i32) {
    %c0_i32 = arith.constant 0 : i32
    %c0_i32_0 = arith.constant 0 : i32
    %c0_i32_1 = arith.constant 0 : i32
    %c0_i32_2 = arith.constant 0 : i32
    return %c0_i32, %c0_i32_0, %c0_i32_1 : i32, i32, i32
  }
  func.func @transform_1(%arg0: i32) -> (i32, i32, i32) {
    %c0_i32 = arith.constant 0 : i32
    %c0_i32_0 = arith.constant 0 : i32
    %c0_i32_1 = arith.constant 0 : i32
    %c0_i32_2 = arith.constant 0 : i32
    return %c0_i32, %c0_i32_0, %c0_i32_1 : i32, i32, i32
  }
  func.func @transform_2(%arg0: i32) -> (i32, i32, i32) {
    %c0_i32 = arith.constant 0 : i32
    %c0_i32_0 = arith.constant 0 : i32
    %c0_i32_1 = arith.constant 0 : i32
    return %arg0, %c0_i32, %c0_i32_0 : i32, i32, i32
  }
  func.func @transform_3(%arg0: i32) -> (i32, i32, i32) {
    %c0_i32 = arith.constant 0 : i32
    %c0_i32_0 = arith.constant 0 : i32
    %c0_i32_1 = arith.constant 0 : i32
    return %arg0, %c0_i32, %c0_i32_0 : i32, i32, i32
  }
}

module attributes {stable_mosaic.version = 11 : i64} {
  func.func @kernel(%arg0: i32, %arg1: memref<4x16x32xf32, #tpu.memory_space<vmem>>, %arg2: memref<3x16x1xf32, #tpu.memory_space<vmem>>, %arg3: memref<1x32x19xf32, #tpu.memory_space<vmem>>, %arg4: memref<1x16x16xf32, #tpu.memory_space<vmem>>) attributes {dimension_semantics = [#tpu.dimension_semantics<parallel>], iteration_bounds = array<i64: 2>, scalar_prefetch = 0 : i64, scratch_operands = 0 : i64, tpu.core_type = #tpu.core_type<tc>, window_params = [{pipeline_mode = #tpu.pipeline_mode<synchronous>, transform_indices = @transform_0, window_bounds = array<i64: 4, 16, 32>}, {pipeline_mode = #tpu.pipeline_mode<synchronous>, transform_indices = @transform_1, window_bounds = array<i64: 3, 16, 1>}, {transform_indices = @transform_2, window_bounds = array<i64: 1, 32, 19>}, {transform_indices = @transform_3, window_bounds = array<i64: 1, 16, 16>}]} {
    %cst = arith.constant 0.000000e+00 : f32
    %0 = vector.broadcast %cst : f32 to vector<16x16xf32>
    %c0 = arith.constant 0 : index
    %c0_0 = arith.constant 0 : index
    %c0_1 = arith.constant 0 : index
    %1 = vector.load %arg1[%c0, %c0_0, %c0_1] : memref<4x16x32xf32, #tpu.memory_space<vmem>>, vector<1x16x32xf32>
    %2 = vector.shape_cast %1 : vector<1x16x32xf32> to vector<16x32xf32>
    %c0_2 = arith.constant 0 : index
    %c0_3 = arith.constant 0 : index
    %c0_4 = arith.constant 0 : index
    %3 = vector.load %arg3[%c0_2, %c0_3, %c0_4] : memref<1x32x19xf32, #tpu.memory_space<vmem>>, vector<1x32x16xf32>
    %4 = vector.shape_cast %3 : vector<1x32x16xf32> to vector<32x16xf32>
    %cst_5 = arith.constant dense<0.000000e+00> : vector<16x16xf32>
    %5 = tpu.matmul %2, %4, %cst_5 {dimension_numbers = #tpu.dot_dimension_numbers<[1], [0], [0], [1], [0, 0, 1, 1], [], []>} : vector<16x32xf32>, vector<32x16xf32>, vector<16x16xf32> -> vector<16x16xf32>
    %6 = arith.addf %0, %5 : vector<16x16xf32>
    %c1 = arith.constant 1 : index
    %c0_6 = arith.constant 0 : index
    %c0_7 = arith.constant 0 : index
    %7 = vector.load %arg1[%c1, %c0_6, %c0_7] : memref<4x16x32xf32, #tpu.memory_space<vmem>>, vector<1x16x32xf32>
    %8 = vector.shape_cast %7 : vector<1x16x32xf32> to vector<16x32xf32>
    %c0_8 = arith.constant 0 : index
    %c0_9 = arith.constant 0 : index
    %c1_10 = arith.constant 1 : index
    %9 = vector.load %arg3[%c0_8, %c0_9, %c1_10] : memref<1x32x19xf32, #tpu.memory_space<vmem>>, vector<1x32x16xf32>
    %10 = vector.shape_cast %9 : vector<1x32x16xf32> to vector<32x16xf32>
    %cst_11 = arith.constant dense<0.000000e+00> : vector<16x16xf32>
    %11 = tpu.matmul %8, %10, %cst_11 {dimension_numbers = #tpu.dot_dimension_numbers<[1], [0], [0], [1], [0, 0, 1, 1], [], []>} : vector<16x32xf32>, vector<32x16xf32>, vector<16x16xf32> -> vector<16x16xf32>
    %12 = arith.addf %6, %11 : vector<16x16xf32>
    %c2 = arith.constant 2 : index
    %c0_12 = arith.constant 0 : index
    %c0_13 = arith.constant 0 : index
    %13 = vector.load %arg1[%c2, %c0_12, %c0_13] : memref<4x16x32xf32, #tpu.memory_space<vmem>>, vector<1x16x32xf32>
    %14 = vector.shape_cast %13 : vector<1x16x32xf32> to vector<16x32xf32>
    %c0_14 = arith.constant 0 : index
    %c0_15 = arith.constant 0 : index
    %c2_16 = arith.constant 2 : index
    %15 = vector.load %arg3[%c0_14, %c0_15, %c2_16] : memref<1x32x19xf32, #tpu.memory_space<vmem>>, vector<1x32x16xf32>
    %16 = vector.shape_cast %15 : vector<1x32x16xf32> to vector<32x16xf32>
    %cst_17 = arith.constant dense<0.000000e+00> : vector<16x16xf32>
    %17 = tpu.matmul %14, %16, %cst_17 {dimension_numbers = #tpu.dot_dimension_numbers<[1], [0], [0], [1], [0, 0, 1, 1], [], []>} : vector<16x32xf32>, vector<32x16xf32>, vector<16x16xf32> -> vector<16x16xf32>
    %18 = arith.addf %12, %17 : vector<16x16xf32>
    %c3 = arith.constant 3 : index
    %c0_18 = arith.constant 0 : index
    %c0_19 = arith.constant 0 : index
    %19 = vector.load %arg1[%c3, %c0_18, %c0_19] : memref<4x16x32xf32, #tpu.memory_space<vmem>>, vector<1x16x32xf32>
    %20 = vector.shape_cast %19 : vector<1x16x32xf32> to vector<16x32xf32>
    %c0_20 = arith.constant 0 : index
    %c0_21 = arith.constant 0 : index
    %c3_22 = arith.constant 3 : index
    %21 = vector.load %arg3[%c0_20, %c0_21, %c3_22] : memref<1x32x19xf32, #tpu.memory_space<vmem>>, vector<1x32x16xf32>
    %22 = vector.shape_cast %21 : vector<1x32x16xf32> to vector<32x16xf32>
    %cst_23 = arith.constant dense<0.000000e+00> : vector<16x16xf32>
    %23 = tpu.matmul %20, %22, %cst_23 {dimension_numbers = #tpu.dot_dimension_numbers<[1], [0], [0], [1], [0, 0, 1, 1], [], []>} : vector<16x32xf32>, vector<32x16xf32>, vector<16x16xf32> -> vector<16x16xf32>
    %24 = arith.addf %18, %23 : vector<16x16xf32>
    %c0_24 = arith.constant 0 : index
    %c0_25 = arith.constant 0 : index
    %c0_26 = arith.constant 0 : index
    %25 = vector.load %arg2[%c0_24, %c0_25, %c0_26] : memref<3x16x1xf32, #tpu.memory_space<vmem>>, vector<1x16x1xf32>
    %26 = vector.shape_cast %25 : vector<1x16x1xf32> to vector<16x1xf32>
    %27 = vector.broadcast %26 : vector<16x1xf32> to vector<16x16xf32>
    %28 = arith.mulf %24, %27 : vector<16x16xf32>
    %c1_27 = arith.constant 1 : index
    %c0_28 = arith.constant 0 : index
    %c0_29 = arith.constant 0 : index
    %29 = vector.load %arg2[%c1_27, %c0_28, %c0_29] : memref<3x16x1xf32, #tpu.memory_space<vmem>>, vector<1x16x1xf32>
    %30 = vector.shape_cast %29 : vector<1x16x1xf32> to vector<16x1xf32>
    %31 = vector.broadcast %30 : vector<16x1xf32> to vector<16x16xf32>
    %32 = arith.addf %28, %31 : vector<16x16xf32>
    %cst_30 = arith.constant 0.000000e+00 : f32
    %33 = vector.broadcast %cst_30 : f32 to vector<16x16xf32>
    %34 = arith.cmpf ogt, %32, %33 : vector<16x16xf32>
    %c2_31 = arith.constant 2 : index
    %c0_32 = arith.constant 0 : index
    %c0_33 = arith.constant 0 : index
    %35 = vector.load %arg2[%c2_31, %c0_32, %c0_33] : memref<3x16x1xf32, #tpu.memory_space<vmem>>, vector<1x16x1xf32>
    %36 = vector.shape_cast %35 : vector<1x16x1xf32> to vector<16x1xf32>
    %37 = vector.broadcast %36 : vector<16x1xf32> to vector<16x16xf32>
    %38 = arith.mulf %37, %32 : vector<16x16xf32>
    %39 = arith.select %34, %32, %38 : vector<16x16xi1>, vector<16x16xf32>
    %c0_34 = arith.constant 0 : index
    %c0_35 = arith.constant 0 : index
    %c0_36 = arith.constant 0 : index
    %40 = vector.load %arg4[%c0_34, %c0_35, %c0_36] : memref<1x16x16xf32, #tpu.memory_space<vmem>>, vector<1x16x16xf32>
    %41 = vector.shape_cast %40 : vector<1x16x16xf32> to vector<16x16xf32>
    %42 = vector.shape_cast %39 : vector<16x16xf32> to vector<1x16x16xf32>
    tpu.vector_store %arg4[%c0_34, %c0_35, %c0_36], %42 {strides = array<i32>} : memref<1x16x16xf32, #tpu.memory_space<vmem>>, vector<1x16x16xf32>,
    return
  }
  func.func @transform_0(%arg0: i32) -> (i32, i32, i32) {
    %c0_i32 = arith.constant 0 : i32
    %c0_i32_0 = arith.constant 0 : i32
    %c0_i32_1 = arith.constant 0 : i32
    %c0_i32_2 = arith.constant 0 : i32
    return %c0_i32, %c0_i32_0, %c0_i32_1 : i32, i32, i32
  }
  func.func @transform_1(%arg0: i32) -> (i32, i32, i32) {
    %c0_i32 = arith.constant 0 : i32
    %c0_i32_0 = arith.constant 0 : i32
    %c0_i32_1 = arith.constant 0 : i32
    %c0_i32_2 = arith.constant 0 : i32
    return %c0_i32, %c0_i32_0, %c0_i32_1 : i32, i32, i32
  }
  func.func @transform_2(%arg0: i32) -> (i32, i32, i32) {
    %c0_i32 = arith.constant 0 : i32
    %c0_i32_0 = arith.constant 0 : i32
    %c0_i32_1 = arith.constant 0 : i32
    return %arg0, %c0_i32, %c0_i32_0 : i32, i32, i32
  }
  func.func @transform_3(%arg0: i32) -> (i32, i32, i32) {
    %c0_i32 = arith.constant 0 : i32
    %c0_i32_0 = arith.constant 0 : i32
    %c0_i32_1 = arith.constant 0 : i32
    return %arg0, %c0_i32, %c0_i32_0 : i32, i32, i32
  }
}

module attributes {stable_mosaic.version = 11 : i64} {
  func.func @kernel(%arg0: i32, %arg1: memref<3x32x16xf32, #tpu.memory_space<vmem>>, %arg2: memref<2x32x1xf32, #tpu.memory_space<vmem>>, %arg3: memref<16x17xf32, #tpu.memory_space<vmem>>, %arg4: memref<16x17xf32, #tpu.memory_space<vmem>>, %arg5: memref<1x16x18xf32, #tpu.memory_space<vmem>>, %arg6: memref<1x16x16xf32, #tpu.memory_space<vmem>>, %arg7: memref<1x16x16xf32, #tpu.memory_space<vmem>>, %arg8: memref<1x16x16xf32, #tpu.memory_space<vmem>>) attributes {dimension_semantics = [#tpu.dimension_semantics<parallel>], iteration_bounds = array<i64: 2>, scalar_prefetch = 0 : i64, scratch_operands = 0 : i64, tpu.core_type = #tpu.core_type<tc>, window_params = [{pipeline_mode = #tpu.pipeline_mode<synchronous>, transform_indices = @transform_0, window_bounds = array<i64: 3, 32, 16>}, {pipeline_mode = #tpu.pipeline_mode<synchronous>, transform_indices = @transform_1, window_bounds = array<i64: 2, 32, 1>}, {pipeline_mode = #tpu.pipeline_mode<synchronous>, transform_indices = @transform_2, window_bounds = array<i64: 16, 17>}, {pipeline_mode = #tpu.pipeline_mode<synchronous>, transform_indices = @transform_3, window_bounds = array<i64: 16, 17>}, {transform_indices = @transform_4, window_bounds = array<i64: 1, 16, 18>}, {transform_indices = @transform_5, window_bounds = array<i64: 1, 16, 16>}, {transform_indices = @transform_6, window_bounds = array<i64: 1, 16, 16>}, {transform_indices = @transform_7, window_bounds = array<i64: 1, 16, 16>}]} {
    %cst = arith.constant 0.000000e+00 : f32
    %0 = vector.broadcast %cst : f32 to vector<32x16xf32>
    %c0 = arith.constant 0 : index
    %c0_0 = arith.constant 0 : index
    %c0_1 = arith.constant 0 : index
    %1 = vector.load %arg1[%c0, %c0_0, %c0_1] : memref<3x32x16xf32, #tpu.memory_space<vmem>>, vector<1x32x16xf32>
    %2 = vector.shape_cast %1 : vector<1x32x16xf32> to vector<32x16xf32>
    %c0_2 = arith.constant 0 : index
    %c0_3 = arith.constant 0 : index
    %c0_4 = arith.constant 0 : index
    %3 = vector.load %arg5[%c0_2, %c0_3, %c0_4] : memref<1x16x18xf32, #tpu.memory_space<vmem>>, vector<1x16x16xf32>
    %4 = vector.shape_cast %3 : vector<1x16x16xf32> to vector<16x16xf32>
    %cst_5 = arith.constant dense<0.000000e+00> : vector<32x16xf32>
    %5 = tpu.matmul %2, %4, %cst_5 {dimension_numbers = #tpu.dot_dimension_numbers<[1], [0], [0], [1], [0, 0, 1, 1], [], []>} : vector<32x16xf32>, vector<16x16xf32>, vector<32x16xf32> -> vector<32x16xf32>
    %6 = arith.addf %0, %5 : vector<32x16xf32>
    %c1 = arith.constant 1 : index
    %c0_6 = arith.constant 0 : index
    %c0_7 = arith.constant 0 : index
    %7 = vector.load %arg1[%c1, %c0_6, %c0_7] : memref<3x32x16xf32, #tpu.memory_space<vmem>>, vector<1x32x16xf32>
    %8 = vector.shape_cast %7 : vector<1x32x16xf32> to vector<32x16xf32>
    %c0_8 = arith.constant 0 : index
    %c0_9 = arith.constant 0 : index
    %c1_10 = arith.constant 1 : index
    %9 = vector.load %arg5[%c0_8, %c0_9, %c1_10] : memref<1x16x18xf32, #tpu.memory_space<vmem>>, vector<1x16x16xf32>
    %10 = vector.shape_cast %9 : vector<1x16x16xf32> to vector<16x16xf32>
    %cst_11 = arith.constant dense<0.000000e+00> : vector<32x16xf32>
    %11 = tpu.matmul %8, %10, %cst_11 {dimension_numbers = #tpu.dot_dimension_numbers<[1], [0], [0], [1], [0, 0, 1, 1], [], []>} : vector<32x16xf32>, vector<16x16xf32>, vector<32x16xf32> -> vector<32x16xf32>
    %12 = arith.addf %6, %11 : vector<32x16xf32>
    %c2 = arith.constant 2 : index
    %c0_12 = arith.constant 0 : index
    %c0_13 = arith.constant 0 : index
    %13 = vector.load %arg1[%c2, %c0_12, %c0_13] : memref<3x32x16xf32, #tpu.memory_space<vmem>>, vector<1x32x16xf32>
    %14 = vector.shape_cast %13 : vector<1x32x16xf32> to vector<32x16xf32>
    %c0_14 = arith.constant 0 : index
    %c0_15 = arith.constant 0 : index
    %c2_16 = arith.constant 2 : index
    %15 = vector.load %arg5[%c0_14, %c0_15, %c2_16] : memref<1x16x18xf32, #tpu.memory_space<vmem>>, vector<1x16x16xf32>
    %16 = vector.shape_cast %15 : vector<1x16x16xf32> to vector<16x16xf32>
    %cst_17 = arith.constant dense<0.000000e+00> : vector<32x16xf32>
    %17 = tpu.matmul %14, %16, %cst_17 {dimension_numbers = #tpu.dot_dimension_numbers<[1], [0], [0], [1], [0, 0, 1, 1], [], []>} : vector<32x16xf32>, vector<16x16xf32>, vector<32x16xf32> -> vector<32x16xf32>
    %18 = arith.addf %12, %17 : vector<32x16xf32>
    %c0_18 = arith.constant 0 : index
    %c0_19 = arith.constant 0 : index
    %c0_20 = arith.constant 0 : index
    %19 = vector.load %arg2[%c0_18, %c0_19, %c0_20] : memref<2x32x1xf32, #tpu.memory_space<vmem>>, vector<1x32x1xf32>
    %20 = vector.shape_cast %19 : vector<1x32x1xf32> to vector<32x1xf32>
    %21 = vector.broadcast %20 : vector<32x1xf32> to vector<32x16xf32>
    %22 = arith.mulf %18, %21 : vector<32x16xf32>
    %c1_21 = arith.constant 1 : index
    %c0_22 = arith.constant 0 : index
    %c0_23 = arith.constant 0 : index
    %23 = vector.load %arg2[%c1_21, %c0_22, %c0_23] : memref<2x32x1xf32, #tpu.memory_space<vmem>>, vector<1x32x1xf32>
    %24 = vector.shape_cast %23 : vector<1x32x1xf32> to vector<32x1xf32>
    %25 = vector.broadcast %24 : vector<32x1xf32> to vector<32x16xf32>
    %26 = arith.addf %22, %25 : vector<32x16xf32>
    %27 = vector.extract_strided_slice %26 {offsets = [0, 0], sizes = [16, 16], strides = [1, 1]} : vector<32x16xf32> to vector<16x16xf32>
    %28 = math.tanh %27 : vector<16x16xf32>
    %29 = vector.extract_strided_slice %26 {offsets = [16, 0], sizes = [16, 16], strides = [1, 1]} : vector<32x16xf32> to vector<16x16xf32>
    %30 = arith.negf %29 : vector<16x16xf32>
    %31 = math.exp %30 : vector<16x16xf32>
    %cst_24 = arith.constant 1.000000e+00 : f32
    %32 = vector.broadcast %cst_24 : f32 to vector<16x16xf32>
    %33 = arith.addf %32, %31 : vector<16x16xf32>
    %34 = arith.divf %32, %33 : vector<16x16xf32>
    %35 = arith.mulf %28, %34 : vector<16x16xf32>
    %c0_25 = arith.constant 0 : index
    %c0_26 = arith.constant 0 : index
    %36 = vector.load %arg3[%c0_25, %c0_26] : memref<16x17xf32, #tpu.memory_space<vmem>>, vector<16x16xf32>
    %cst_27 = arith.constant dense<0.000000e+00> : vector<16x16xf32>
    %37 = tpu.matmul %36, %35, %cst_27 {dimension_numbers = #tpu.dot_dimension_numbers<[1], [0], [0], [1], [0, 0, 1, 1], [], []>} : vector<16x16xf32>, vector<16x16xf32>, vector<16x16xf32> -> vector<16x16xf32>
    %c0_28 = arith.constant 0 : index
    %c16 = arith.constant 16 : index
    %38 = vector.load %arg3[%c0_28, %c16] : memref<16x17xf32, #tpu.memory_space<vmem>>, vector<16x1xf32>
    %39 = vector.broadcast %38 : vector<16x1xf32> to vector<16x16xf32>
    %40 = arith.addf %37, %39 : vector<16x16xf32>
    %c0_29 = arith.constant 0 : index
    %c0_30 = arith.constant 0 : index
    %41 = vector.load %arg4[%c0_29, %c0_30] : memref<16x17xf32, #tpu.memory_space<vmem>>, vector<16x16xf32>
    %cst_31 = arith.constant dense<0.000000e+00> : vector<16x16xf32>
    %42 = tpu.matmul %41, %35, %cst_31 {dimension_numbers = #tpu.dot_dimension_numbers<[1], [0], [0], [1], [0, 0, 1, 1], [], []>} : vector<16x16xf32>, vector<16x16xf32>, vector<16x16xf32> -> vector<16x16xf32>
    %c0_32 = arith.constant 0 : index
    %c16_33 = arith.constant 16 : index
    %43 = vector.load %arg4[%c0_32, %c16_33] : memref<16x17xf32, #tpu.memory_space<vmem>>, vector<16x1xf32>
    %44 = vector.broadcast %43 : vector<16x1xf32> to vector<16x16xf32>
    %45 = arith.addf %42, %44 : vector<16x16xf32>
    %c0_34 = arith.constant 0 : index
    %c0_35 = arith.constant 0 : index
    %c1_36 = arith.constant 1 : index
    %46 = vector.load %arg5[%c0_34, %c0_35, %c1_36] : memref<1x16x18xf32, #tpu.memory_space<vmem>>, vector<1x16x16xf32>
    %47 = vector.shape_cast %46 : vector<1x16x16xf32> to vector<16x16xf32>
    %48 = arith.addf %47, %40 : vector<16x16xf32>
    %c0_37 = arith.constant 0 : index
    %c0_38 = arith.constant 0 : index
    %c0_39 = arith.constant 0 : index
    %49 = vector.load %arg7[%c0_37, %c0_38, %c0_39] : memref<1x16x16xf32, #tpu.memory_space<vmem>>, vector<1x16x16xf32>
    %50 = vector.shape_cast %49 : vector<1x16x16xf32> to vector<16x16xf32>
    %51 = vector.shape_cast %48 : vector<16x16xf32> to vector<1x16x16xf32>
    tpu.vector_store %arg7[%c0_37, %c0_38, %c0_39], %51 {strides = array<i32>} : memref<1x16x16xf32, #tpu.memory_space<vmem>>, vector<1x16x16xf32>,
    %c0_40 = arith.constant 0 : index
    %c0_41 = arith.constant 0 : index
    %c0_42 = arith.constant 0 : index
    %52 = vector.load %arg6[%c0_40, %c0_41, %c0_42] : memref<1x16x16xf32, #tpu.memory_space<vmem>>, vector<1x16x16xf32>
    %53 = vector.shape_cast %52 : vector<1x16x16xf32> to vector<16x16xf32>
    %54 = arith.addf %53, %45 : vector<16x16xf32>
    %c0_43 = arith.constant 0 : index
    %c0_44 = arith.constant 0 : index
    %c0_45 = arith.constant 0 : index
    %55 = vector.load %arg8[%c0_43, %c0_44, %c0_45] : memref<1x16x16xf32, #tpu.memory_space<vmem>>, vector<1x16x16xf32>
    %56 = vector.shape_cast %55 : vector<1x16x16xf32> to vector<16x16xf32>
    %57 = vector.shape_cast %54 : vector<16x16xf32> to vector<1x16x16xf32>
    tpu.vector_store %arg8[%c0_43, %c0_44, %c0_45], %57 {strides = array<i32>} : memref<1x16x16xf32, #tpu.memory_space<vmem>>, vector<1x16x16xf32>,
    return
  }
  func.func @transform_0(%arg0: i32) -> (i32, i32, i32) {
    %c0_i32 = arith.constant 0 : i32
    %c0_i32_0 = arith.constant 0 : i32
    %c0_i32_1 = arith.constant 0 : i32
    %c0_i32_2 = arith.constant 0 : i32
    return %c0_i32, %c0_i32_0, %c0_i32_1 : i32, i32, i32
  }
  func.func @transform_1(%arg0: i32) -> (i32, i32, i32) {
    %c0_i32 = arith.constant 0 : i32
    %c0_i32_0 = arith.constant 0 : i32
    %c0_i32_1 = arith.constant 0 : i32
    %c0_i32_2 = arith.constant 0 : i32
    return %c0_i32, %c0_i32_0, %c0_i32_1 : i32, i32, i32
  }
  func.func @transform_2(%arg0: i32) -> (i32, i32) {
    %c0_i32 = arith.constant 0 : i32
    %c0_i32_0 = arith.constant 0 : i32
    %c0_i32_1 = arith.constant 0 : i32
    return %c0_i32, %c0_i32_0 : i32, i32
  }
  func.func @transform_3(%arg0: i32) -> (i32, i32) {
    %c0_i32 = arith.constant 0 : i32
    %c0_i32_0 = arith.constant 0 : i32
    %c0_i32_1 = arith.constant 0 : i32
    return %c0_i32, %c0_i32_0 : i32, i32
  }
  func.func @transform_4(%arg0: i32) -> (i32, i32, i32) {
    %c0_i32 = arith.constant 0 : i32
    %c0_i32_0 = arith.constant 0 : i32
    %c0_i32_1 = arith.constant 0 : i32
    return %arg0, %c0_i32, %c0_i32_0 : i32, i32, i32
  }
  func.func @transform_5(%arg0: i32) -> (i32, i32, i32) {
    %c0_i32 = arith.constant 0 : i32
    %c0_i32_0 = arith.constant 0 : i32
    %c0_i32_1 = arith.constant 0 : i32
    return %arg0, %c0_i32, %c0_i32_0 : i32, i32, i32
  }
  func.func @transform_6(%arg0: i32) -> (i32, i32, i32) {
    %c0_i32 = arith.constant 0 : i32
    %c0_i32_0 = arith.constant 0 : i32
    %c0_i32_1 = arith.constant 0 : i32
    return %arg0, %c0_i32, %c0_i32_0 : i32, i32, i32
  }
  func.func @transform_7(%arg0: i32) -> (i32, i32, i32) {
    %c0_i32 = arith.constant 0 : i32
    %c0_i32_0 = arith.constant 0 : i32
    %c0_i32_1 = arith.constant 0 : i32
    return %arg0, %c0_i32, %c0_i32_0 : i32, i32, i32
  }
}

module attributes {stable_mosaic.version = 11 : i64} {
  func.func @kernel(%arg0: i32, %arg1: memref<3x32x16xf32, #tpu.memory_space<vmem>>, %arg2: memref<2x32x1xf32, #tpu.memory_space<vmem>>, %arg3: memref<16x17xf32, #tpu.memory_space<vmem>>, %arg4: memref<16x17xf32, #tpu.memory_space<vmem>>, %arg5: memref<1x16x20xf32, #tpu.memory_space<vmem>>, %arg6: memref<1x16x16xf32, #tpu.memory_space<vmem>>, %arg7: memref<1x16x16xf32, #tpu.memory_space<vmem>>, %arg8: memref<1x16x16xf32, #tpu.memory_space<vmem>>) attributes {dimension_semantics = [#tpu.dimension_semantics<parallel>], iteration_bounds = array<i64: 2>, scalar_prefetch = 0 : i64, scratch_operands = 0 : i64, tpu.core_type = #tpu.core_type<tc>, window_params = [{pipeline_mode = #tpu.pipeline_mode<synchronous>, transform_indices = @transform_0, window_bounds = array<i64: 3, 32, 16>}, {pipeline_mode = #tpu.pipeline_mode<synchronous>, transform_indices = @transform_1, window_bounds = array<i64: 2, 32, 1>}, {pipeline_mode = #tpu.pipeline_mode<synchronous>, transform_indices = @transform_2, window_bounds = array<i64: 16, 17>}, {pipeline_mode = #tpu.pipeline_mode<synchronous>, transform_indices = @transform_3, window_bounds = array<i64: 16, 17>}, {transform_indices = @transform_4, window_bounds = array<i64: 1, 16, 20>}, {transform_indices = @transform_5, window_bounds = array<i64: 1, 16, 16>}, {transform_indices = @transform_6, window_bounds = array<i64: 1, 16, 16>}, {transform_indices = @transform_7, window_bounds = array<i64: 1, 16, 16>}]} {
    %cst = arith.constant 0.000000e+00 : f32
    %0 = vector.broadcast %cst : f32 to vector<32x16xf32>
    %c0 = arith.constant 0 : index
    %c0_0 = arith.constant 0 : index
    %c0_1 = arith.constant 0 : index
    %1 = vector.load %arg1[%c0, %c0_0, %c0_1] : memref<3x32x16xf32, #tpu.memory_space<vmem>>, vector<1x32x16xf32>
    %2 = vector.shape_cast %1 : vector<1x32x16xf32> to vector<32x16xf32>
    %c0_2 = arith.constant 0 : index
    %c0_3 = arith.constant 0 : index
    %c0_4 = arith.constant 0 : index
    %3 = vector.load %arg5[%c0_2, %c0_3, %c0_4] : memref<1x16x20xf32, #tpu.memory_space<vmem>>, vector<1x16x16xf32>
    %4 = vector.shape_cast %3 : vector<1x16x16xf32> to vector<16x16xf32>
    %cst_5 = arith.constant dense<0.000000e+00> : vector<32x16xf32>
    %5 = tpu.matmul %2, %4, %cst_5 {dimension_numbers = #tpu.dot_dimension_numbers<[1], [0], [0], [1], [0, 0, 1, 1], [], []>} : vector<32x16xf32>, vector<16x16xf32>, vector<32x16xf32> -> vector<32x16xf32>
    %6 = arith.addf %0, %5 : vector<32x16xf32>
    %c1 = arith.constant 1 : index
    %c0_6 = arith.constant 0 : index
    %c0_7 = arith.constant 0 : index
    %7 = vector.load %arg1[%c1, %c0_6, %c0_7] : memref<3x32x16xf32, #tpu.memory_space<vmem>>, vector<1x32x16xf32>
    %8 = vector.shape_cast %7 : vector<1x32x16xf32> to vector<32x16xf32>
    %c0_8 = arith.constant 0 : index
    %c0_9 = arith.constant 0 : index
    %c2 = arith.constant 2 : index
    %9 = vector.load %arg5[%c0_8, %c0_9, %c2] : memref<1x16x20xf32, #tpu.memory_space<vmem>>, vector<1x16x16xf32>
    %10 = vector.shape_cast %9 : vector<1x16x16xf32> to vector<16x16xf32>
    %cst_10 = arith.constant dense<0.000000e+00> : vector<32x16xf32>
    %11 = tpu.matmul %8, %10, %cst_10 {dimension_numbers = #tpu.dot_dimension_numbers<[1], [0], [0], [1], [0, 0, 1, 1], [], []>} : vector<32x16xf32>, vector<16x16xf32>, vector<32x16xf32> -> vector<32x16xf32>
    %12 = arith.addf %6, %11 : vector<32x16xf32>
    %c2_11 = arith.constant 2 : index
    %c0_12 = arith.constant 0 : index
    %c0_13 = arith.constant 0 : index
    %13 = vector.load %arg1[%c2_11, %c0_12, %c0_13] : memref<3x32x16xf32, #tpu.memory_space<vmem>>, vector<1x32x16xf32>
    %14 = vector.shape_cast %13 : vector<1x32x16xf32> to vector<32x16xf32>
    %c0_14 = arith.constant 0 : index
    %c0_15 = arith.constant 0 : index
    %c4 = arith.constant 4 : index
    %15 = vector.load %arg5[%c0_14, %c0_15, %c4] : memref<1x16x20xf32, #tpu.memory_space<vmem>>, vector<1x16x16xf32>
    %16 = vector.shape_cast %15 : vector<1x16x16xf32> to vector<16x16xf32>
    %cst_16 = arith.constant dense<0.000000e+00> : vector<32x16xf32>
    %17 = tpu.matmul %14, %16, %cst_16 {dimension_numbers = #tpu.dot_dimension_numbers<[1], [0], [0], [1], [0, 0, 1, 1], [], []>} : vector<32x16xf32>, vector<16x16xf32>, vector<32x16xf32> -> vector<32x16xf32>
    %18 = arith.addf %12, %17 : vector<32x16xf32>
    %c0_17 = arith.constant 0 : index
    %c0_18 = arith.constant 0 : index
    %c0_19 = arith.constant 0 : index
    %19 = vector.load %arg2[%c0_17, %c0_18, %c0_19] : memref<2x32x1xf32, #tpu.memory_space<vmem>>, vector<1x32x1xf32>
    %20 = vector.shape_cast %19 : vector<1x32x1xf32> to vector<32x1xf32>
    %21 = vector.broadcast %20 : vector<32x1xf32> to vector<32x16xf32>
    %22 = arith.mulf %18, %21 : vector<32x16xf32>
    %c1_20 = arith.constant 1 : index
    %c0_21 = arith.constant 0 : index
    %c0_22 = arith.constant 0 : index
    %23 = vector.load %arg2[%c1_20, %c0_21, %c0_22] : memref<2x32x1xf32, #tpu.memory_space<vmem>>, vector<1x32x1xf32>
    %24 = vector.shape_cast %23 : vector<1x32x1xf32> to vector<32x1xf32>
    %25 = vector.broadcast %24 : vector<32x1xf32> to vector<32x16xf32>
    %26 = arith.addf %22, %25 : vector<32x16xf32>
    %27 = vector.extract_strided_slice %26 {offsets = [0, 0], sizes = [16, 16], strides = [1, 1]} : vector<32x16xf32> to vector<16x16xf32>
    %28 = math.tanh %27 : vector<16x16xf32>
    %29 = vector.extract_strided_slice %26 {offsets = [16, 0], sizes = [16, 16], strides = [1, 1]} : vector<32x16xf32> to vector<16x16xf32>
    %30 = arith.negf %29 : vector<16x16xf32>
    %31 = math.exp %30 : vector<16x16xf32>
    %cst_23 = arith.constant 1.000000e+00 : f32
    %32 = vector.broadcast %cst_23 : f32 to vector<16x16xf32>
    %33 = arith.addf %32, %31 : vector<16x16xf32>
    %34 = arith.divf %32, %33 : vector<16x16xf32>
    %35 = arith.mulf %28, %34 : vector<16x16xf32>
    %c0_24 = arith.constant 0 : index
    %c0_25 = arith.constant 0 : index
    %36 = vector.load %arg3[%c0_24, %c0_25] : memref<16x17xf32, #tpu.memory_space<vmem>>, vector<16x16xf32>
    %cst_26 = arith.constant dense<0.000000e+00> : vector<16x16xf32>
    %37 = tpu.matmul %36, %35, %cst_26 {dimension_numbers = #tpu.dot_dimension_numbers<[1], [0], [0], [1], [0, 0, 1, 1], [], []>} : vector<16x16xf32>, vector<16x16xf32>, vector<16x16xf32> -> vector<16x16xf32>
    %c0_27 = arith.constant 0 : index
    %c16 = arith.constant 16 : index
    %38 = vector.load %arg3[%c0_27, %c16] : memref<16x17xf32, #tpu.memory_space<vmem>>, vector<16x1xf32>
    %39 = vector.broadcast %38 : vector<16x1xf32> to vector<16x16xf32>
    %40 = arith.addf %37, %39 : vector<16x16xf32>
    %c0_28 = arith.constant 0 : index
    %c0_29 = arith.constant 0 : index
    %41 = vector.load %arg4[%c0_28, %c0_29] : memref<16x17xf32, #tpu.memory_space<vmem>>, vector<16x16xf32>
    %cst_30 = arith.constant dense<0.000000e+00> : vector<16x16xf32>
    %42 = tpu.matmul %41, %35, %cst_30 {dimension_numbers = #tpu.dot_dimension_numbers<[1], [0], [0], [1], [0, 0, 1, 1], [], []>} : vector<16x16xf32>, vector<16x16xf32>, vector<16x16xf32> -> vector<16x16xf32>
    %c0_31 = arith.constant 0 : index
    %c16_32 = arith.constant 16 : index
    %43 = vector.load %arg4[%c0_31, %c16_32] : memref<16x17xf32, #tpu.memory_space<vmem>>, vector<16x1xf32>
    %44 = vector.broadcast %43 : vector<16x1xf32> to vector<16x16xf32>
    %45 = arith.addf %42, %44 : vector<16x16xf32>
    %c0_33 = arith.constant 0 : index
    %c0_34 = arith.constant 0 : index
    %c2_35 = arith.constant 2 : index
    %46 = vector.load %arg5[%c0_33, %c0_34, %c2_35] : memref<1x16x20xf32, #tpu.memory_space<vmem>>, vector<1x16x16xf32>
    %47 = vector.shape_cast %46 : vector<1x16x16xf32> to vector<16x16xf32>
    %48 = arith.addf %47, %40 : vector<16x16xf32>
    %c0_36 = arith.constant 0 : index
    %c0_37 = arith.constant 0 : index
    %c0_38 = arith.constant 0 : index
    %49 = vector.load %arg7[%c0_36, %c0_37, %c0_38] : memref<1x16x16xf32, #tpu.memory_space<vmem>>, vector<1x16x16xf32>
    %50 = vector.shape_cast %49 : vector<1x16x16xf32> to vector<16x16xf32>
    %51 = vector.shape_cast %48 : vector<16x16xf32> to vector<1x16x16xf32>
    tpu.vector_store %arg7[%c0_36, %c0_37, %c0_38], %51 {strides = array<i32>} : memref<1x16x16xf32, #tpu.memory_space<vmem>>, vector<1x16x16xf32>,
    %c0_39 = arith.constant 0 : index
    %c0_40 = arith.constant 0 : index
    %c0_41 = arith.constant 0 : index
    %52 = vector.load %arg6[%c0_39, %c0_40, %c0_41] : memref<1x16x16xf32, #tpu.memory_space<vmem>>, vector<1x16x16xf32>
    %53 = vector.shape_cast %52 : vector<1x16x16xf32> to vector<16x16xf32>
    %54 = arith.addf %53, %45 : vector<16x16xf32>
    %c0_42 = arith.constant 0 : index
    %c0_43 = arith.constant 0 : index
    %c0_44 = arith.constant 0 : index
    %55 = vector.load %arg8[%c0_42, %c0_43, %c0_44] : memref<1x16x16xf32, #tpu.memory_space<vmem>>, vector<1x16x16xf32>
    %56 = vector.shape_cast %55 : vector<1x16x16xf32> to vector<16x16xf32>
    %57 = vector.shape_cast %54 : vector<16x16xf32> to vector<1x16x16xf32>
    tpu.vector_store %arg8[%c0_42, %c0_43, %c0_44], %57 {strides = array<i32>} : memref<1x16x16xf32, #tpu.memory_space<vmem>>, vector<1x16x16xf32>,
    return
  }
  func.func @transform_0(%arg0: i32) -> (i32, i32, i32) {
    %c0_i32 = arith.constant 0 : i32
    %c0_i32_0 = arith.constant 0 : i32
    %c0_i32_1 = arith.constant 0 : i32
    %c0_i32_2 = arith.constant 0 : i32
    return %c0_i32, %c0_i32_0, %c0_i32_1 : i32, i32, i32
  }
  func.func @transform_1(%arg0: i32) -> (i32, i32, i32) {
    %c0_i32 = arith.constant 0 : i32
    %c0_i32_0 = arith.constant 0 : i32
    %c0_i32_1 = arith.constant 0 : i32
    %c0_i32_2 = arith.constant 0 : i32
    return %c0_i32, %c0_i32_0, %c0_i32_1 : i32, i32, i32
  }
  func.func @transform_2(%arg0: i32) -> (i32, i32) {
    %c0_i32 = arith.constant 0 : i32
    %c0_i32_0 = arith.constant 0 : i32
    %c0_i32_1 = arith.constant 0 : i32
    return %c0_i32, %c0_i32_0 : i32, i32
  }
  func.func @transform_3(%arg0: i32) -> (i32, i32) {
    %c0_i32 = arith.constant 0 : i32
    %c0_i32_0 = arith.constant 0 : i32
    %c0_i32_1 = arith.constant 0 : i32
    return %c0_i32, %c0_i32_0 : i32, i32
  }
  func.func @transform_4(%arg0: i32) -> (i32, i32, i32) {
    %c0_i32 = arith.constant 0 : i32
    %c0_i32_0 = arith.constant 0 : i32
    %c0_i32_1 = arith.constant 0 : i32
    return %arg0, %c0_i32, %c0_i32_0 : i32, i32, i32
  }
  func.func @transform_5(%arg0: i32) -> (i32, i32, i32) {
    %c0_i32 = arith.constant 0 : i32
    %c0_i32_0 = arith.constant 0 : i32
    %c0_i32_1 = arith.constant 0 : i32
    return %arg0, %c0_i32, %c0_i32_0 : i32, i32, i32
  }
  func.func @transform_6(%arg0: i32) -> (i32, i32, i32) {
    %c0_i32 = arith.constant 0 : i32
    %c0_i32_0 = arith.constant 0 : i32
    %c0_i32_1 = arith.constant 0 : i32
    return %arg0, %c0_i32, %c0_i32_0 : i32, i32, i32
  }
  func.func @transform_7(%arg0: i32) -> (i32, i32, i32) {
    %c0_i32 = arith.constant 0 : i32
    %c0_i32_0 = arith.constant 0 : i32
    %c0_i32_1 = arith.constant 0 : i32
    return %arg0, %c0_i32, %c0_i32_0 : i32, i32, i32
  }
}

module attributes {stable_mosaic.version = 11 : i64} {
  func.func @kernel(%arg0: i32, %arg1: memref<3x24x16xf32, #tpu.memory_space<vmem>>, %arg2: memref<3x24x1xf32, #tpu.memory_space<vmem>>, %arg3: memref<24x25xf32, #tpu.memory_space<vmem>>, %arg4: memref<1x16x18xf32, #tpu.memory_space<vmem>>, %arg5: memref<1x24x16xf32, #tpu.memory_space<vmem>>) attributes {dimension_semantics = [#tpu.dimension_semantics<parallel>], iteration_bounds = array<i64: 2>, scalar_prefetch = 0 : i64, scratch_operands = 0 : i64, tpu.core_type = #tpu.core_type<tc>, window_params = [{pipeline_mode = #tpu.pipeline_mode<synchronous>, transform_indices = @transform_0, window_bounds = array<i64: 3, 24, 16>}, {pipeline_mode = #tpu.pipeline_mode<synchronous>, transform_indices = @transform_1, window_bounds = array<i64: 3, 24, 1>}, {pipeline_mode = #tpu.pipeline_mode<synchronous>, transform_indices = @transform_2, window_bounds = array<i64: 24, 25>}, {transform_indices = @transform_3, window_bounds = array<i64: 1, 16, 18>}, {transform_indices = @transform_4, window_bounds = array<i64: 1, 24, 16>}]} {
    %cst = arith.constant 0.000000e+00 : f32
    %0 = vector.broadcast %cst : f32 to vector<24x16xf32>
    %c0 = arith.constant 0 : index
    %c0_0 = arith.constant 0 : index
    %c0_1 = arith.constant 0 : index
    %1 = vector.load %arg1[%c0, %c0_0, %c0_1] : memref<3x24x16xf32, #tpu.memory_space<vmem>>, vector<1x24x16xf32>
    %2 = vector.shape_cast %1 : vector<1x24x16xf32> to vector<24x16xf32>
    %c0_2 = arith.constant 0 : index
    %c0_3 = arith.constant 0 : index
    %c0_4 = arith.constant 0 : index
    %3 = vector.load %arg4[%c0_2, %c0_3, %c0_4] : memref<1x16x18xf32, #tpu.memory_space<vmem>>, vector<1x16x16xf32>
    %4 = vector.shape_cast %3 : vector<1x16x16xf32> to vector<16x16xf32>
    %cst_5 = arith.constant dense<0.000000e+00> : vector<24x16xf32>
    %5 = tpu.matmul %2, %4, %cst_5 {dimension_numbers = #tpu.dot_dimension_numbers<[1], [0], [0], [1], [0, 0, 1, 1], [], []>} : vector<24x16xf32>, vector<16x16xf32>, vector<24x16xf32> -> vector<24x16xf32>
    %6 = arith.addf %0, %5 : vector<24x16xf32>
    %c1 = arith.constant 1 : index
    %c0_6 = arith.constant 0 : index
    %c0_7 = arith.constant 0 : index
    %7 = vector.load %arg1[%c1, %c0_6, %c0_7] : memref<3x24x16xf32, #tpu.memory_space<vmem>>, vector<1x24x16xf32>
    %8 = vector.shape_cast %7 : vector<1x24x16xf32> to vector<24x16xf32>
    %c0_8 = arith.constant 0 : index
    %c0_9 = arith.constant 0 : index
    %c1_10 = arith.constant 1 : index
    %9 = vector.load %arg4[%c0_8, %c0_9, %c1_10] : memref<1x16x18xf32, #tpu.memory_space<vmem>>, vector<1x16x16xf32>
    %10 = vector.shape_cast %9 : vector<1x16x16xf32> to vector<16x16xf32>
    %cst_11 = arith.constant dense<0.000000e+00> : vector<24x16xf32>
    %11 = tpu.matmul %8, %10, %cst_11 {dimension_numbers = #tpu.dot_dimension_numbers<[1], [0], [0], [1], [0, 0, 1, 1], [], []>} : vector<24x16xf32>, vector<16x16xf32>, vector<24x16xf32> -> vector<24x16xf32>
    %12 = arith.addf %6, %11 : vector<24x16xf32>
    %c2 = arith.constant 2 : index
    %c0_12 = arith.constant 0 : index
    %c0_13 = arith.constant 0 : index
    %13 = vector.load %arg1[%c2, %c0_12, %c0_13] : memref<3x24x16xf32, #tpu.memory_space<vmem>>, vector<1x24x16xf32>
    %14 = vector.shape_cast %13 : vector<1x24x16xf32> to vector<24x16xf32>
    %c0_14 = arith.constant 0 : index
    %c0_15 = arith.constant 0 : index
    %c2_16 = arith.constant 2 : index
    %15 = vector.load %arg4[%c0_14, %c0_15, %c2_16] : memref<1x16x18xf32, #tpu.memory_space<vmem>>, vector<1x16x16xf32>
    %16 = vector.shape_cast %15 : vector<1x16x16xf32> to vector<16x16xf32>
    %cst_17 = arith.constant dense<0.000000e+00> : vector<24x16xf32>
    %17 = tpu.matmul %14, %16, %cst_17 {dimension_numbers = #tpu.dot_dimension_numbers<[1], [0], [0], [1], [0, 0, 1, 1], [], []>} : vector<24x16xf32>, vector<16x16xf32>, vector<24x16xf32> -> vector<24x16xf32>
    %18 = arith.addf %12, %17 : vector<24x16xf32>
    %c0_18 = arith.constant 0 : index
    %c0_19 = arith.constant 0 : index
    %c0_20 = arith.constant 0 : index
    %19 = vector.load %arg2[%c0_18, %c0_19, %c0_20] : memref<3x24x1xf32, #tpu.memory_space<vmem>>, vector<1x24x1xf32>
    %20 = vector.shape_cast %19 : vector<1x24x1xf32> to vector<24x1xf32>
    %21 = vector.broadcast %20 : vector<24x1xf32> to vector<24x16xf32>
    %22 = arith.mulf %18, %21 : vector<24x16xf32>
    %c1_21 = arith.constant 1 : index
    %c0_22 = arith.constant 0 : index
    %c0_23 = arith.constant 0 : index
    %23 = vector.load %arg2[%c1_21, %c0_22, %c0_23] : memref<3x24x1xf32, #tpu.memory_space<vmem>>, vector<1x24x1xf32>
    %24 = vector.shape_cast %23 : vector<1x24x1xf32> to vector<24x1xf32>
    %25 = vector.broadcast %24 : vector<24x1xf32> to vector<24x16xf32>
    %26 = arith.addf %22, %25 : vector<24x16xf32>
    %cst_24 = arith.constant 0.000000e+00 : f32
    %27 = vector.broadcast %cst_24 : f32 to vector<24x16xf32>
    %28 = arith.cmpf ogt, %26, %27 : vector<24x16xf32>
    %c2_25 = arith.constant 2 : index
    %c0_26 = arith.constant 0 : index
    %c0_27 = arith.constant 0 : index
    %29 = vector.load %arg2[%c2_25, %c0_26, %c0_27] : memref<3x24x1xf32, #tpu.memory_space<vmem>>, vector<1x24x1xf32>
    %30 = vector.shape_cast %29 : vector<1x24x1xf32> to vector<24x1xf32>
    %31 = vector.broadcast %30 : vector<24x1xf32> to vector<24x16xf32>
    %32 = arith.mulf %31, %26 : vector<24x16xf32>
    %33 = arith.select %28, %26, %32 : vector<24x16xi1>, vector<24x16xf32>
    %c0_28 = arith.constant 0 : index
    %c0_29 = arith.constant 0 : index
    %34 = vector.load %arg3[%c0_28, %c0_29] : memref<24x25xf32, #tpu.memory_space<vmem>>, vector<24x24xf32>
    %cst_30 = arith.constant dense<0.000000e+00> : vector<24x16xf32>
    %35 = tpu.matmul %34, %33, %cst_30 {dimension_numbers = #tpu.dot_dimension_numbers<[1], [0], [0], [1], [0, 0, 1, 1], [], []>} : vector<24x24xf32>, vector<24x16xf32>, vector<24x16xf32> -> vector<24x16xf32>
    %c0_31 = arith.constant 0 : index
    %c24 = arith.constant 24 : index
    %36 = vector.load %arg3[%c0_31, %c24] : memref<24x25xf32, #tpu.memory_space<vmem>>, vector<24x1xf32>
    %37 = vector.broadcast %36 : vector<24x1xf32> to vector<24x16xf32>
    %38 = arith.addf %35, %37 : vector<24x16xf32>
    %c0_32 = arith.constant 0 : index
    %c0_33 = arith.constant 0 : index
    %c0_34 = arith.constant 0 : index
    %39 = vector.load %arg5[%c0_32, %c0_33, %c0_34] : memref<1x24x16xf32, #tpu.memory_space<vmem>>, vector<1x24x16xf32>
    %40 = vector.shape_cast %39 : vector<1x24x16xf32> to vector<24x16xf32>
    %41 = vector.shape_cast %38 : vector<24x16xf32> to vector<1x24x16xf32>
    tpu.vector_store %arg5[%c0_32, %c0_33, %c0_34], %41 {strides = array<i32>} : memref<1x24x16xf32, #tpu.memory_space<vmem>>, vector<1x24x16xf32>,
    return
  }
  func.func @transform_0(%arg0: i32) -> (i32, i32, i32) {
    %c0_i32 = arith.constant 0 : i32
    %c0_i32_0 = arith.constant 0 : i32
    %c0_i32_1 = arith.constant 0 : i32
    %c0_i32_2 = arith.constant 0 : i32
    return %c0_i32, %c0_i32_0, %c0_i32_1 : i32, i32, i32
  }
  func.func @transform_1(%arg0: i32) -> (i32, i32, i32) {
    %c0_i32 = arith.constant 0 : i32
    %c0_i32_0 = arith.constant 0 : i32
    %c0_i32_1 = arith.constant 0 : i32
    %c0_i32_2 = arith.constant 0 : i32
    return %c0_i32, %c0_i32_0, %c0_i32_1 : i32, i32, i32
  }
  func.func @transform_2(%arg0: i32) -> (i32, i32) {
    %c0_i32 = arith.constant 0 : i32
    %c0_i32_0 = arith.constant 0 : i32
    %c0_i32_1 = arith.constant 0 : i32
    return %c0_i32, %c0_i32_0 : i32, i32
  }
  func.func @transform_3(%arg0: i32) -> (i32, i32, i32) {
    %c0_i32 = arith.constant 0 : i32
    %c0_i32_0 = arith.constant 0 : i32
    %c0_i32_1 = arith.constant 0 : i32
    return %arg0, %c0_i32, %c0_i32_0 : i32, i32, i32
  }
  func.func @transform_4(%arg0: i32) -> (i32, i32, i32) {
    %c0_i32 = arith.constant 0 : i32
    %c0_i32_0 = arith.constant 0 : i32
    %c0_i32_1 = arith.constant 0 : i32
    return %arg0, %c0_i32, %c0_i32_0 : i32, i32, i32
  }
}

module attributes {stable_mosaic.version = 11 : i64} {
  func.func @kernel(%arg0: i32, %arg1: memref<5x16x16xf32, #tpu.memory_space<vmem>>, %arg2: memref<3x16x1xf32, #tpu.memory_space<vmem>>, %arg3: memref<1x16x20xf32, #tpu.memory_space<vmem>>, %arg4: memref<1x16x16xf32, #tpu.memory_space<vmem>>) attributes {dimension_semantics = [#tpu.dimension_semantics<parallel>], iteration_bounds = array<i64: 2>, scalar_prefetch = 0 : i64, scratch_operands = 0 : i64, tpu.core_type = #tpu.core_type<tc>, window_params = [{pipeline_mode = #tpu.pipeline_mode<synchronous>, transform_indices = @transform_0, window_bounds = array<i64: 5, 16, 16>}, {pipeline_mode = #tpu.pipeline_mode<synchronous>, transform_indices = @transform_1, window_bounds = array<i64: 3, 16, 1>}, {transform_indices = @transform_2, window_bounds = array<i64: 1, 16, 20>}, {transform_indices = @transform_3, window_bounds = array<i64: 1, 16, 16>}]} {
    %cst = arith.constant 0.000000e+00 : f32
    %0 = vector.broadcast %cst : f32 to vector<16x16xf32>
    %c0 = arith.constant 0 : index
    %c0_0 = arith.constant 0 : index
    %c0_1 = arith.constant 0 : index
    %1 = vector.load %arg1[%c0, %c0_0, %c0_1] : memref<5x16x16xf32, #tpu.memory_space<vmem>>, vector<1x16x16xf32>
    %2 = vector.shape_cast %1 : vector<1x16x16xf32> to vector<16x16xf32>
    %c0_2 = arith.constant 0 : index
    %c0_3 = arith.constant 0 : index
    %c0_4 = arith.constant 0 : index
    %3 = vector.load %arg3[%c0_2, %c0_3, %c0_4] : memref<1x16x20xf32, #tpu.memory_space<vmem>>, vector<1x16x16xf32>
    %4 = vector.shape_cast %3 : vector<1x16x16xf32> to vector<16x16xf32>
    %cst_5 = arith.constant dense<0.000000e+00> : vector<16x16xf32>
    %5 = tpu.matmul %2, %4, %cst_5 {dimension_numbers = #tpu.dot_dimension_numbers<[1], [0], [0], [1], [0, 0, 1, 1], [], []>} : vector<16x16xf32>, vector<16x16xf32>, vector<16x16xf32> -> vector<16x16xf32>
    %6 = arith.addf %0, %5 : vector<16x16xf32>
    %c1 = arith.constant 1 : index
    %c0_6 = arith.constant 0 : index
    %c0_7 = arith.constant 0 : index
    %7 = vector.load %arg1[%c1, %c0_6, %c0_7] : memref<5x16x16xf32, #tpu.memory_space<vmem>>, vector<1x16x16xf32>
    %8 = vector.shape_cast %7 : vector<1x16x16xf32> to vector<16x16xf32>
    %c0_8 = arith.constant 0 : index
    %c0_9 = arith.constant 0 : index
    %c1_10 = arith.constant 1 : index
    %9 = vector.load %arg3[%c0_8, %c0_9, %c1_10] : memref<1x16x20xf32, #tpu.memory_space<vmem>>, vector<1x16x16xf32>
    %10 = vector.shape_cast %9 : vector<1x16x16xf32> to vector<16x16xf32>
    %cst_11 = arith.constant dense<0.000000e+00> : vector<16x16xf32>
    %11 = tpu.matmul %8, %10, %cst_11 {dimension_numbers = #tpu.dot_dimension_numbers<[1], [0], [0], [1], [0, 0, 1, 1], [], []>} : vector<16x16xf32>, vector<16x16xf32>, vector<16x16xf32> -> vector<16x16xf32>
    %12 = arith.addf %6, %11 : vector<16x16xf32>
    %c2 = arith.constant 2 : index
    %c0_12 = arith.constant 0 : index
    %c0_13 = arith.constant 0 : index
    %13 = vector.load %arg1[%c2, %c0_12, %c0_13] : memref<5x16x16xf32, #tpu.memory_space<vmem>>, vector<1x16x16xf32>
    %14 = vector.shape_cast %13 : vector<1x16x16xf32> to vector<16x16xf32>
    %c0_14 = arith.constant 0 : index
    %c0_15 = arith.constant 0 : index
    %c2_16 = arith.constant 2 : index
    %15 = vector.load %arg3[%c0_14, %c0_15, %c2_16] : memref<1x16x20xf32, #tpu.memory_space<vmem>>, vector<1x16x16xf32>
    %16 = vector.shape_cast %15 : vector<1x16x16xf32> to vector<16x16xf32>
    %cst_17 = arith.constant dense<0.000000e+00> : vector<16x16xf32>
    %17 = tpu.matmul %14, %16, %cst_17 {dimension_numbers = #tpu.dot_dimension_numbers<[1], [0], [0], [1], [0, 0, 1, 1], [], []>} : vector<16x16xf32>, vector<16x16xf32>, vector<16x16xf32> -> vector<16x16xf32>
    %18 = arith.addf %12, %17 : vector<16x16xf32>
    %c3 = arith.constant 3 : index
    %c0_18 = arith.constant 0 : index
    %c0_19 = arith.constant 0 : index
    %19 = vector.load %arg1[%c3, %c0_18, %c0_19] : memref<5x16x16xf32, #tpu.memory_space<vmem>>, vector<1x16x16xf32>
    %20 = vector.shape_cast %19 : vector<1x16x16xf32> to vector<16x16xf32>
    %c0_20 = arith.constant 0 : index
    %c0_21 = arith.constant 0 : index
    %c3_22 = arith.constant 3 : index
    %21 = vector.load %arg3[%c0_20, %c0_21, %c3_22] : memref<1x16x20xf32, #tpu.memory_space<vmem>>, vector<1x16x16xf32>
    %22 = vector.shape_cast %21 : vector<1x16x16xf32> to vector<16x16xf32>
    %cst_23 = arith.constant dense<0.000000e+00> : vector<16x16xf32>
    %23 = tpu.matmul %20, %22, %cst_23 {dimension_numbers = #tpu.dot_dimension_numbers<[1], [0], [0], [1], [0, 0, 1, 1], [], []>} : vector<16x16xf32>, vector<16x16xf32>, vector<16x16xf32> -> vector<16x16xf32>
    %24 = arith.addf %18, %23 : vector<16x16xf32>
    %c4 = arith.constant 4 : index
    %c0_24 = arith.constant 0 : index
    %c0_25 = arith.constant 0 : index
    %25 = vector.load %arg1[%c4, %c0_24, %c0_25] : memref<5x16x16xf32, #tpu.memory_space<vmem>>, vector<1x16x16xf32>
    %26 = vector.shape_cast %25 : vector<1x16x16xf32> to vector<16x16xf32>
    %c0_26 = arith.constant 0 : index
    %c0_27 = arith.constant 0 : index
    %c4_28 = arith.constant 4 : index
    %27 = vector.load %arg3[%c0_26, %c0_27, %c4_28] : memref<1x16x20xf32, #tpu.memory_space<vmem>>, vector<1x16x16xf32>
    %28 = vector.shape_cast %27 : vector<1x16x16xf32> to vector<16x16xf32>
    %cst_29 = arith.constant dense<0.000000e+00> : vector<16x16xf32>
    %29 = tpu.matmul %26, %28, %cst_29 {dimension_numbers = #tpu.dot_dimension_numbers<[1], [0], [0], [1], [0, 0, 1, 1], [], []>} : vector<16x16xf32>, vector<16x16xf32>, vector<16x16xf32> -> vector<16x16xf32>
    %30 = arith.addf %24, %29 : vector<16x16xf32>
    %c0_30 = arith.constant 0 : index
    %c0_31 = arith.constant 0 : index
    %c0_32 = arith.constant 0 : index
    %31 = vector.load %arg2[%c0_30, %c0_31, %c0_32] : memref<3x16x1xf32, #tpu.memory_space<vmem>>, vector<1x16x1xf32>
    %32 = vector.shape_cast %31 : vector<1x16x1xf32> to vector<16x1xf32>
    %33 = vector.broadcast %32 : vector<16x1xf32> to vector<16x16xf32>
    %34 = arith.mulf %30, %33 : vector<16x16xf32>
    %c1_33 = arith.constant 1 : index
    %c0_34 = arith.constant 0 : index
    %c0_35 = arith.constant 0 : index
    %35 = vector.load %arg2[%c1_33, %c0_34, %c0_35] : memref<3x16x1xf32, #tpu.memory_space<vmem>>, vector<1x16x1xf32>
    %36 = vector.shape_cast %35 : vector<1x16x1xf32> to vector<16x1xf32>
    %37 = vector.broadcast %36 : vector<16x1xf32> to vector<16x16xf32>
    %38 = arith.addf %34, %37 : vector<16x16xf32>
    %cst_36 = arith.constant 0.000000e+00 : f32
    %39 = vector.broadcast %cst_36 : f32 to vector<16x16xf32>
    %40 = arith.cmpf ogt, %38, %39 : vector<16x16xf32>
    %c2_37 = arith.constant 2 : index
    %c0_38 = arith.constant 0 : index
    %c0_39 = arith.constant 0 : index
    %41 = vector.load %arg2[%c2_37, %c0_38, %c0_39] : memref<3x16x1xf32, #tpu.memory_space<vmem>>, vector<1x16x1xf32>
    %42 = vector.shape_cast %41 : vector<1x16x1xf32> to vector<16x1xf32>
    %43 = vector.broadcast %42 : vector<16x1xf32> to vector<16x16xf32>
    %44 = arith.mulf %43, %38 : vector<16x16xf32>
    %45 = arith.select %40, %38, %44 : vector<16x16xi1>, vector<16x16xf32>
    %c0_40 = arith.constant 0 : index
    %c0_41 = arith.constant 0 : index
    %c0_42 = arith.constant 0 : index
    %46 = vector.load %arg4[%c0_40, %c0_41, %c0_42] : memref<1x16x16xf32, #tpu.memory_space<vmem>>, vector<1x16x16xf32>
    %47 = vector.shape_cast %46 : vector<1x16x16xf32> to vector<16x16xf32>
    %48 = vector.shape_cast %45 : vector<16x16xf32> to vector<1x16x16xf32>
    tpu.vector_store %arg4[%c0_40, %c0_41, %c0_42], %48 {strides = array<i32>} : memref<1x16x16xf32, #tpu.memory_space<vmem>>, vector<1x16x16xf32>,
    return
  }
  func.func @transform_0(%arg0: i32) -> (i32, i32, i32) {
    %c0_i32 = arith.constant 0 : i32
    %c0_i32_0 = arith.constant 0 : i32
    %c0_i32_1 = arith.constant 0 : i32
    %c0_i32_2 = arith.constant 0 : i32
    return %c0_i32, %c0_i32_0, %c0_i32_1 : i32, i32, i32
  }
  func.func @transform_1(%arg0: i32) -> (i32, i32, i32) {
    %c0_i32 = arith.constant 0 : i32
    %c0_i32_0 = arith.constant 0 : i32
    %c0_i32_1 = arith.constant 0 : i32
    %c0_i32_2 = arith.constant 0 : i32
    return %c0_i32, %c0_i32_0, %c0_i32_1 : i32, i32, i32
  }
  func.func @transform_2(%arg0: i32) -> (i32, i32, i32) {
    %c0_i32 = arith.constant 0 : i32
    %c0_i32_0 = arith.constant 0 : i32
    %c0_i32_1 = arith.constant 0 : i32
    return %arg0, %c0_i32, %c0_i32_0 : i32, i32, i32
  }
  func.func @transform_3(%arg0: i32) -> (i32, i32, i32) {
    %c0_i32 = arith.constant 0 : i32
    %c0_i32_0 = arith.constant 0 : i32
    %c0_i32_1 = arith.constant 0 : i32
    return %arg0, %c0_i32, %c0_i32_0 : i32, i32, i32
  }
}

module attributes {stable_mosaic.version = 11 : i64} {
  func.func @kernel(%arg0: i32, %arg1: memref<4x16x32xf32, #tpu.memory_space<vmem>>, %arg2: memref<3x16x1xf32, #tpu.memory_space<vmem>>, %arg3: memref<1x32x11xf32, #tpu.memory_space<vmem>>, %arg4: memref<1x16x8xf32, #tpu.memory_space<vmem>>) attributes {dimension_semantics = [#tpu.dimension_semantics<parallel>], iteration_bounds = array<i64: 2>, scalar_prefetch = 0 : i64, scratch_operands = 0 : i64, tpu.core_type = #tpu.core_type<tc>, window_params = [{pipeline_mode = #tpu.pipeline_mode<synchronous>, transform_indices = @transform_0, window_bounds = array<i64: 4, 16, 32>}, {pipeline_mode = #tpu.pipeline_mode<synchronous>, transform_indices = @transform_1, window_bounds = array<i64: 3, 16, 1>}, {transform_indices = @transform_2, window_bounds = array<i64: 1, 32, 11>}, {transform_indices = @transform_3, window_bounds = array<i64: 1, 16, 8>}]} {
    %cst = arith.constant 0.000000e+00 : f32
    %0 = vector.broadcast %cst : f32 to vector<16x8xf32>
    %c0 = arith.constant 0 : index
    %c0_0 = arith.constant 0 : index
    %c0_1 = arith.constant 0 : index
    %1 = vector.load %arg1[%c0, %c0_0, %c0_1] : memref<4x16x32xf32, #tpu.memory_space<vmem>>, vector<1x16x32xf32>
    %2 = vector.shape_cast %1 : vector<1x16x32xf32> to vector<16x32xf32>
    %c0_2 = arith.constant 0 : index
    %c0_3 = arith.constant 0 : index
    %c0_4 = arith.constant 0 : index
    %3 = vector.load %arg3[%c0_2, %c0_3, %c0_4] : memref<1x32x11xf32, #tpu.memory_space<vmem>>, vector<1x32x8xf32>
    %4 = vector.shape_cast %3 : vector<1x32x8xf32> to vector<32x8xf32>
    %cst_5 = arith.constant dense<0.000000e+00> : vector<16x8xf32>
    %5 = tpu.matmul %2, %4, %cst_5 {dimension_numbers = #tpu.dot_dimension_numbers<[1], [0], [0], [1], [0, 0, 1, 1], [], []>} : vector<16x32xf32>, vector<32x8xf32>, vector<16x8xf32> -> vector<16x8xf32>
    %6 = arith.addf %0, %5 : vector<16x8xf32>
    %c1 = arith.constant 1 : index
    %c0_6 = arith.constant 0 : index
    %c0_7 = arith.constant 0 : index
    %7 = vector.load %arg1[%c1, %c0_6, %c0_7] : memref<4x16x32xf32, #tpu.memory_space<vmem>>, vector<1x16x32xf32>
    %8 = vector.shape_cast %7 : vector<1x16x32xf32> to vector<16x32xf32>
    %c0_8 = arith.constant 0 : index
    %c0_9 = arith.constant 0 : index
    %c1_10 = arith.constant 1 : index
    %9 = vector.load %arg3[%c0_8, %c0_9, %c1_10] : memref<1x32x11xf32, #tpu.memory_space<vmem>>, vector<1x32x8xf32>
    %10 = vector.shape_cast %9 : vector<1x32x8xf32> to vector<32x8xf32>
    %cst_11 = arith.constant dense<0.000000e+00> : vector<16x8xf32>
    %11 = tpu.matmul %8, %10, %cst_11 {dimension_numbers = #tpu.dot_dimension_numbers<[1], [0], [0], [1], [0, 0, 1, 1], [], []>} : vector<16x32xf32>, vector<32x8xf32>, vector<16x8xf32> -> vector<16x8xf32>
    %12 = arith.addf %6, %11 : vector<16x8xf32>
    %c2 = arith.constant 2 : index
    %c0_12 = arith.constant 0 : index
    %c0_13 = arith.constant 0 : index
    %13 = vector.load %arg1[%c2, %c0_12, %c0_13] : memref<4x16x32xf32, #tpu.memory_space<vmem>>, vector<1x16x32xf32>
    %14 = vector.shape_cast %13 : vector<1x16x32xf32> to vector<16x32xf32>
    %c0_14 = arith.constant 0 : index
    %c0_15 = arith.constant 0 : index
    %c2_16 = arith.constant 2 : index
    %15 = vector.load %arg3[%c0_14, %c0_15, %c2_16] : memref<1x32x11xf32, #tpu.memory_space<vmem>>, vector<1x32x8xf32>
    %16 = vector.shape_cast %15 : vector<1x32x8xf32> to vector<32x8xf32>
    %cst_17 = arith.constant dense<0.000000e+00> : vector<16x8xf32>
    %17 = tpu.matmul %14, %16, %cst_17 {dimension_numbers = #tpu.dot_dimension_numbers<[1], [0], [0], [1], [0, 0, 1, 1], [], []>} : vector<16x32xf32>, vector<32x8xf32>, vector<16x8xf32> -> vector<16x8xf32>
    %18 = arith.addf %12, %17 : vector<16x8xf32>
    %c3 = arith.constant 3 : index
    %c0_18 = arith.constant 0 : index
    %c0_19 = arith.constant 0 : index
    %19 = vector.load %arg1[%c3, %c0_18, %c0_19] : memref<4x16x32xf32, #tpu.memory_space<vmem>>, vector<1x16x32xf32>
    %20 = vector.shape_cast %19 : vector<1x16x32xf32> to vector<16x32xf32>
    %c0_20 = arith.constant 0 : index
    %c0_21 = arith.constant 0 : index
    %c3_22 = arith.constant 3 : index
    %21 = vector.load %arg3[%c0_20, %c0_21, %c3_22] : memref<1x32x11xf32, #tpu.memory_space<vmem>>, vector<1x32x8xf32>
    %22 = vector.shape_cast %21 : vector<1x32x8xf32> to vector<32x8xf32>
    %cst_23 = arith.constant dense<0.000000e+00> : vector<16x8xf32>
    %23 = tpu.matmul %20, %22, %cst_23 {dimension_numbers = #tpu.dot_dimension_numbers<[1], [0], [0], [1], [0, 0, 1, 1], [], []>} : vector<16x32xf32>, vector<32x8xf32>, vector<16x8xf32> -> vector<16x8xf32>
    %24 = arith.addf %18, %23 : vector<16x8xf32>
    %c0_24 = arith.constant 0 : index
    %c0_25 = arith.constant 0 : index
    %c0_26 = arith.constant 0 : index
    %25 = vector.load %arg2[%c0_24, %c0_25, %c0_26] : memref<3x16x1xf32, #tpu.memory_space<vmem>>, vector<1x16x1xf32>
    %26 = vector.shape_cast %25 : vector<1x16x1xf32> to vector<16x1xf32>
    %27 = vector.broadcast %26 : vector<16x1xf32> to vector<16x8xf32>
    %28 = arith.mulf %24, %27 : vector<16x8xf32>
    %c1_27 = arith.constant 1 : index
    %c0_28 = arith.constant 0 : index
    %c0_29 = arith.constant 0 : index
    %29 = vector.load %arg2[%c1_27, %c0_28, %c0_29] : memref<3x16x1xf32, #tpu.memory_space<vmem>>, vector<1x16x1xf32>
    %30 = vector.shape_cast %29 : vector<1x16x1xf32> to vector<16x1xf32>
    %31 = vector.broadcast %30 : vector<16x1xf32> to vector<16x8xf32>
    %32 = arith.addf %28, %31 : vector<16x8xf32>
    %cst_30 = arith.constant 0.000000e+00 : f32
    %33 = vector.broadcast %cst_30 : f32 to vector<16x8xf32>
    %34 = arith.cmpf ogt, %32, %33 : vector<16x8xf32>
    %c2_31 = arith.constant 2 : index
    %c0_32 = arith.constant 0 : index
    %c0_33 = arith.constant 0 : index
    %35 = vector.load %arg2[%c2_31, %c0_32, %c0_33] : memref<3x16x1xf32, #tpu.memory_space<vmem>>, vector<1x16x1xf32>
    %36 = vector.shape_cast %35 : vector<1x16x1xf32> to vector<16x1xf32>
    %37 = vector.broadcast %36 : vector<16x1xf32> to vector<16x8xf32>
    %38 = arith.mulf %37, %32 : vector<16x8xf32>
    %39 = arith.select %34, %32, %38 : vector<16x8xi1>, vector<16x8xf32>
    %c0_34 = arith.constant 0 : index
    %c0_35 = arith.constant 0 : index
    %c0_36 = arith.constant 0 : index
    %40 = vector.load %arg4[%c0_34, %c0_35, %c0_36] : memref<1x16x8xf32, #tpu.memory_space<vmem>>, vector<1x16x8xf32>
    %41 = vector.shape_cast %40 : vector<1x16x8xf32> to vector<16x8xf32>
    %42 = vector.shape_cast %39 : vector<16x8xf32> to vector<1x16x8xf32>
    tpu.vector_store %arg4[%c0_34, %c0_35, %c0_36], %42 {strides = array<i32>} : memref<1x16x8xf32, #tpu.memory_space<vmem>>, vector<1x16x8xf32>,
    return
  }
  func.func @transform_0(%arg0: i32) -> (i32, i32, i32) {
    %c0_i32 = arith.constant 0 : i32
    %c0_i32_0 = arith.constant 0 : i32
    %c0_i32_1 = arith.constant 0 : i32
    %c0_i32_2 = arith.constant 0 : i32
    return %c0_i32, %c0_i32_0, %c0_i32_1 : i32, i32, i32
  }
  func.func @transform_1(%arg0: i32) -> (i32, i32, i32) {
    %c0_i32 = arith.constant 0 : i32
    %c0_i32_0 = arith.constant 0 : i32
    %c0_i32_1 = arith.constant 0 : i32
    %c0_i32_2 = arith.constant 0 : i32
    return %c0_i32, %c0_i32_0, %c0_i32_1 : i32, i32, i32
  }
  func.func @transform_2(%arg0: i32) -> (i32, i32, i32) {
    %c0_i32 = arith.constant 0 : i32
    %c0_i32_0 = arith.constant 0 : i32
    %c0_i32_1 = arith.constant 0 : i32
    return %arg0, %c0_i32, %c0_i32_0 : i32, i32, i32
  }
  func.func @transform_3(%arg0: i32) -> (i32, i32, i32) {
    %c0_i32 = arith.constant 0 : i32
    %c0_i32_0 = arith.constant 0 : i32
    %c0_i32_1 = arith.constant 0 : i32
    return %arg0, %c0_i32, %c0_i32_0 : i32, i32, i32
  }
}

module attributes {stable_mosaic.version = 11 : i64} {
  func.func @kernel(%arg0: i32, %arg1: memref<3x32x16xf32, #tpu.memory_space<vmem>>, %arg2: memref<2x32x1xf32, #tpu.memory_space<vmem>>, %arg3: memref<16x17xf32, #tpu.memory_space<vmem>>, %arg4: memref<16x17xf32, #tpu.memory_space<vmem>>, %arg5: memref<1x16x10xf32, #tpu.memory_space<vmem>>, %arg6: memref<1x16x8xf32, #tpu.memory_space<vmem>>, %arg7: memref<1x16x8xf32, #tpu.memory_space<vmem>>, %arg8: memref<1x16x8xf32, #tpu.memory_space<vmem>>) attributes {dimension_semantics = [#tpu.dimension_semantics<parallel>], iteration_bounds = array<i64: 2>, scalar_prefetch = 0 : i64, scratch_operands = 0 : i64, tpu.core_type = #tpu.core_type<tc>, window_params = [{pipeline_mode = #tpu.pipeline_mode<synchronous>, transform_indices = @transform_0, window_bounds = array<i64: 3, 32, 16>}, {pipeline_mode = #tpu.pipeline_mode<synchronous>, transform_indices = @transform_1, window_bounds = array<i64: 2, 32, 1>}, {pipeline_mode = #tpu.pipeline_mode<synchronous>, transform_indices = @transform_2, window_bounds = array<i64: 16, 17>}, {pipeline_mode = #tpu.pipeline_mode<synchronous>, transform_indices = @transform_3, window_bounds = array<i64: 16, 17>}, {transform_indices = @transform_4, window_bounds = array<i64: 1, 16, 10>}, {transform_indices = @transform_5, window_bounds = array<i64: 1, 16, 8>}, {transform_indices = @transform_6, window_bounds = array<i64: 1, 16, 8>}, {transform_indices = @transform_7, window_bounds = array<i64: 1, 16, 8>}]} {
    %cst = arith.constant 0.000000e+00 : f32
    %0 = vector.broadcast %cst : f32 to vector<32x8xf32>
    %c0 = arith.constant 0 : index
    %c0_0 = arith.constant 0 : index
    %c0_1 = arith.constant 0 : index
    %1 = vector.load %arg1[%c0, %c0_0, %c0_1] : memref<3x32x16xf32, #tpu.memory_space<vmem>>, vector<1x32x16xf32>
    %2 = vector.shape_cast %1 : vector<1x32x16xf32> to vector<32x16xf32>
    %c0_2 = arith.constant 0 : index
    %c0_3 = arith.constant 0 : index
    %c0_4 = arith.constant 0 : index
    %3 = vector.load %arg5[%c0_2, %c0_3, %c0_4] : memref<1x16x10xf32, #tpu.memory_space<vmem>>, vector<1x16x8xf32>
    %4 = vector.shape_cast %3 : vector<1x16x8xf32> to vector<16x8xf32>
    %cst_5 = arith.constant dense<0.000000e+00> : vector<32x8xf32>
    %5 = tpu.matmul %2, %4, %cst_5 {dimension_numbers = #tpu.dot_dimension_numbers<[1], [0], [0], [1], [0, 0, 1, 1], [], []>} : vector<32x16xf32>, vector<16x8xf32>, vector<32x8xf32> -> vector<32x8xf32>
    %6 = arith.addf %0, %5 : vector<32x8xf32>
    %c1 = arith.constant 1 : index
    %c0_6 = arith.constant 0 : index
    %c0_7 = arith.constant 0 : index
    %7 = vector.load %arg1[%c1, %c0_6, %c0_7] : memref<3x32x16xf32, #tpu.memory_space<vmem>>, vector<1x32x16xf32>
    %8 = vector.shape_cast %7 : vector<1x32x16xf32> to vector<32x16xf32>
    %c0_8 = arith.constant 0 : index
    %c0_9 = arith.constant 0 : index
    %c1_10 = arith.constant 1 : index
    %9 = vector.load %arg5[%c0_8, %c0_9, %c1_10] : memref<1x16x10xf32, #tpu.memory_space<vmem>>, vector<1x16x8xf32>
    %10 = vector.shape_cast %9 : vector<1x16x8xf32> to vector<16x8xf32>
    %cst_11 = arith.constant dense<0.000000e+00> : vector<32x8xf32>
    %11 = tpu.matmul %8, %10, %cst_11 {dimension_numbers = #tpu.dot_dimension_numbers<[1], [0], [0], [1], [0, 0, 1, 1], [], []>} : vector<32x16xf32>, vector<16x8xf32>, vector<32x8xf32> -> vector<32x8xf32>
    %12 = arith.addf %6, %11 : vector<32x8xf32>
    %c2 = arith.constant 2 : index
    %c0_12 = arith.constant 0 : index
    %c0_13 = arith.constant 0 : index
    %13 = vector.load %arg1[%c2, %c0_12, %c0_13] : memref<3x32x16xf32, #tpu.memory_space<vmem>>, vector<1x32x16xf32>
    %14 = vector.shape_cast %13 : vector<1x32x16xf32> to vector<32x16xf32>
    %c0_14 = arith.constant 0 : index
    %c0_15 = arith.constant 0 : index
    %c2_16 = arith.constant 2 : index
    %15 = vector.load %arg5[%c0_14, %c0_15, %c2_16] : memref<1x16x10xf32, #tpu.memory_space<vmem>>, vector<1x16x8xf32>
    %16 = vector.shape_cast %15 : vector<1x16x8xf32> to vector<16x8xf32>
    %cst_17 = arith.constant dense<0.000000e+00> : vector<32x8xf32>
    %17 = tpu.matmul %14, %16, %cst_17 {dimension_numbers = #tpu.dot_dimension_numbers<[1], [0], [0], [1], [0, 0, 1, 1], [], []>} : vector<32x16xf32>, vector<16x8xf32>, vector<32x8xf32> -> vector<32x8xf32>
    %18 = arith.addf %12, %17 : vector<32x8xf32>
    %c0_18 = arith.constant 0 : index
    %c0_19 = arith.constant 0 : index
    %c0_20 = arith.constant 0 : index
    %19 = vector.load %arg2[%c0_18, %c0_19, %c0_20] : memref<2x32x1xf32, #tpu.memory_space<vmem>>, vector<1x32x1xf32>
    %20 = vector.shape_cast %19 : vector<1x32x1xf32> to vector<32x1xf32>
    %21 = vector.broadcast %20 : vector<32x1xf32> to vector<32x8xf32>
    %22 = arith.mulf %18, %21 : vector<32x8xf32>
    %c1_21 = arith.constant 1 : index
    %c0_22 = arith.constant 0 : index
    %c0_23 = arith.constant 0 : index
    %23 = vector.load %arg2[%c1_21, %c0_22, %c0_23] : memref<2x32x1xf32, #tpu.memory_space<vmem>>, vector<1x32x1xf32>
    %24 = vector.shape_cast %23 : vector<1x32x1xf32> to vector<32x1xf32>
    %25 = vector.broadcast %24 : vector<32x1xf32> to vector<32x8xf32>
    %26 = arith.addf %22, %25 : vector<32x8xf32>
    %27 = vector.extract_strided_slice %26 {offsets = [0, 0], sizes = [16, 8], strides = [1, 1]} : vector<32x8xf32> to vector<16x8xf32>
    %28 = math.tanh %27 : vector<16x8xf32>
    %29 = vector.extract_strided_slice %26 {offsets = [16, 0], sizes = [16, 8], strides = [1, 1]} : vector<32x8xf32> to vector<16x8xf32>
    %30 = arith.negf %29 : vector<16x8xf32>
    %31 = math.exp %30 : vector<16x8xf32>
    %cst_24 = arith.constant 1.000000e+00 : f32
    %32 = vector.broadcast %cst_24 : f32 to vector<16x8xf32>
    %33 = arith.addf %32, %31 : vector<16x8xf32>
    %34 = arith.divf %32, %33 : vector<16x8xf32>
    %35 = arith.mulf %28, %34 : vector<16x8xf32>
    %c0_25 = arith.constant 0 : index
    %c0_26 = arith.constant 0 : index
    %36 = vector.load %arg3[%c0_25, %c0_26] : memref<16x17xf32, #tpu.memory_space<vmem>>, vector<16x16xf32>
    %cst_27 = arith.constant dense<0.000000e+00> : vector<16x8xf32>
    %37 = tpu.matmul %36, %35, %cst_27 {dimension_numbers = #tpu.dot_dimension_numbers<[1], [0], [0], [1], [0, 0, 1, 1], [], []>} : vector<16x16xf32>, vector<16x8xf32>, vector<16x8xf32> -> vector<16x8xf32>
    %c0_28 = arith.constant 0 : index
    %c16 = arith.constant 16 : index
    %38 = vector.load %arg3[%c0_28, %c16] : memref<16x17xf32, #tpu.memory_space<vmem>>, vector<16x1xf32>
    %39 = vector.broadcast %38 : vector<16x1xf32> to vector<16x8xf32>
    %40 = arith.addf %37, %39 : vector<16x8xf32>
    %c0_29 = arith.constant 0 : index
    %c0_30 = arith.constant 0 : index
    %41 = vector.load %arg4[%c0_29, %c0_30] : memref<16x17xf32, #tpu.memory_space<vmem>>, vector<16x16xf32>
    %cst_31 = arith.constant dense<0.000000e+00> : vector<16x8xf32>
    %42 = tpu.matmul %41, %35, %cst_31 {dimension_numbers = #tpu.dot_dimension_numbers<[1], [0], [0], [1], [0, 0, 1, 1], [], []>} : vector<16x16xf32>, vector<16x8xf32>, vector<16x8xf32> -> vector<16x8xf32>
    %c0_32 = arith.constant 0 : index
    %c16_33 = arith.constant 16 : index
    %43 = vector.load %arg4[%c0_32, %c16_33] : memref<16x17xf32, #tpu.memory_space<vmem>>, vector<16x1xf32>
    %44 = vector.broadcast %43 : vector<16x1xf32> to vector<16x8xf32>
    %45 = arith.addf %42, %44 : vector<16x8xf32>
    %c0_34 = arith.constant 0 : index
    %c0_35 = arith.constant 0 : index
    %c1_36 = arith.constant 1 : index
    %46 = vector.load %arg5[%c0_34, %c0_35, %c1_36] : memref<1x16x10xf32, #tpu.memory_space<vmem>>, vector<1x16x8xf32>
    %47 = vector.shape_cast %46 : vector<1x16x8xf32> to vector<16x8xf32>
    %48 = arith.addf %47, %40 : vector<16x8xf32>
    %c0_37 = arith.constant 0 : index
    %c0_38 = arith.constant 0 : index
    %c0_39 = arith.constant 0 : index
    %49 = vector.load %arg7[%c0_37, %c0_38, %c0_39] : memref<1x16x8xf32, #tpu.memory_space<vmem>>, vector<1x16x8xf32>
    %50 = vector.shape_cast %49 : vector<1x16x8xf32> to vector<16x8xf32>
    %51 = vector.shape_cast %48 : vector<16x8xf32> to vector<1x16x8xf32>
    tpu.vector_store %arg7[%c0_37, %c0_38, %c0_39], %51 {strides = array<i32>} : memref<1x16x8xf32, #tpu.memory_space<vmem>>, vector<1x16x8xf32>,
    %c0_40 = arith.constant 0 : index
    %c0_41 = arith.constant 0 : index
    %c0_42 = arith.constant 0 : index
    %52 = vector.load %arg6[%c0_40, %c0_41, %c0_42] : memref<1x16x8xf32, #tpu.memory_space<vmem>>, vector<1x16x8xf32>
    %53 = vector.shape_cast %52 : vector<1x16x8xf32> to vector<16x8xf32>
    %54 = arith.addf %53, %45 : vector<16x8xf32>
    %c0_43 = arith.constant 0 : index
    %c0_44 = arith.constant 0 : index
    %c0_45 = arith.constant 0 : index
    %55 = vector.load %arg8[%c0_43, %c0_44, %c0_45] : memref<1x16x8xf32, #tpu.memory_space<vmem>>, vector<1x16x8xf32>
    %56 = vector.shape_cast %55 : vector<1x16x8xf32> to vector<16x8xf32>
    %57 = vector.shape_cast %54 : vector<16x8xf32> to vector<1x16x8xf32>
    tpu.vector_store %arg8[%c0_43, %c0_44, %c0_45], %57 {strides = array<i32>} : memref<1x16x8xf32, #tpu.memory_space<vmem>>, vector<1x16x8xf32>,
    return
  }
  func.func @transform_0(%arg0: i32) -> (i32, i32, i32) {
    %c0_i32 = arith.constant 0 : i32
    %c0_i32_0 = arith.constant 0 : i32
    %c0_i32_1 = arith.constant 0 : i32
    %c0_i32_2 = arith.constant 0 : i32
    return %c0_i32, %c0_i32_0, %c0_i32_1 : i32, i32, i32
  }
  func.func @transform_1(%arg0: i32) -> (i32, i32, i32) {
    %c0_i32 = arith.constant 0 : i32
    %c0_i32_0 = arith.constant 0 : i32
    %c0_i32_1 = arith.constant 0 : i32
    %c0_i32_2 = arith.constant 0 : i32
    return %c0_i32, %c0_i32_0, %c0_i32_1 : i32, i32, i32
  }
  func.func @transform_2(%arg0: i32) -> (i32, i32) {
    %c0_i32 = arith.constant 0 : i32
    %c0_i32_0 = arith.constant 0 : i32
    %c0_i32_1 = arith.constant 0 : i32
    return %c0_i32, %c0_i32_0 : i32, i32
  }
  func.func @transform_3(%arg0: i32) -> (i32, i32) {
    %c0_i32 = arith.constant 0 : i32
    %c0_i32_0 = arith.constant 0 : i32
    %c0_i32_1 = arith.constant 0 : i32
    return %c0_i32, %c0_i32_0 : i32, i32
  }
  func.func @transform_4(%arg0: i32) -> (i32, i32, i32) {
    %c0_i32 = arith.constant 0 : i32
    %c0_i32_0 = arith.constant 0 : i32
    %c0_i32_1 = arith.constant 0 : i32
    return %arg0, %c0_i32, %c0_i32_0 : i32, i32, i32
  }
  func.func @transform_5(%arg0: i32) -> (i32, i32, i32) {
    %c0_i32 = arith.constant 0 : i32
    %c0_i32_0 = arith.constant 0 : i32
    %c0_i32_1 = arith.constant 0 : i32
    return %arg0, %c0_i32, %c0_i32_0 : i32, i32, i32
  }
  func.func @transform_6(%arg0: i32) -> (i32, i32, i32) {
    %c0_i32 = arith.constant 0 : i32
    %c0_i32_0 = arith.constant 0 : i32
    %c0_i32_1 = arith.constant 0 : i32
    return %arg0, %c0_i32, %c0_i32_0 : i32, i32, i32
  }
  func.func @transform_7(%arg0: i32) -> (i32, i32, i32) {
    %c0_i32 = arith.constant 0 : i32
    %c0_i32_0 = arith.constant 0 : i32
    %c0_i32_1 = arith.constant 0 : i32
    return %arg0, %c0_i32, %c0_i32_0 : i32, i32, i32
  }
}

module attributes {stable_mosaic.version = 11 : i64} {
  func.func @kernel(%arg0: i32, %arg1: memref<3x16x16xf32, #tpu.memory_space<vmem>>, %arg2: memref<3x16x1xf32, #tpu.memory_space<vmem>>, %arg3: memref<16x17xf32, #tpu.memory_space<vmem>>, %arg4: memref<1x16x10xf32, #tpu.memory_space<vmem>>, %arg5: memref<1x16x8xf32, #tpu.memory_space<vmem>>) attributes {dimension_semantics = [#tpu.dimension_semantics<parallel>], iteration_bounds = array<i64: 2>, scalar_prefetch = 0 : i64, scratch_operands = 0 : i64, tpu.core_type = #tpu.core_type<tc>, window_params = [{pipeline_mode = #tpu.pipeline_mode<synchronous>, transform_indices = @transform_0, window_bounds = array<i64: 3, 16, 16>}, {pipeline_mode = #tpu.pipeline_mode<synchronous>, transform_indices = @transform_1, window_bounds = array<i64: 3, 16, 1>}, {pipeline_mode = #tpu.pipeline_mode<synchronous>, transform_indices = @transform_2, window_bounds = array<i64: 16, 17>}, {transform_indices = @transform_3, window_bounds = array<i64: 1, 16, 10>}, {transform_indices = @transform_4, window_bounds = array<i64: 1, 16, 8>}]} {
    %cst = arith.constant 0.000000e+00 : f32
    %0 = vector.broadcast %cst : f32 to vector<16x8xf32>
    %c0 = arith.constant 0 : index
    %c0_0 = arith.constant 0 : index
    %c0_1 = arith.constant 0 : index
    %1 = vector.load %arg1[%c0, %c0_0, %c0_1] : memref<3x16x16xf32, #tpu.memory_space<vmem>>, vector<1x16x16xf32>
    %2 = vector.shape_cast %1 : vector<1x16x16xf32> to vector<16x16xf32>
    %c0_2 = arith.constant 0 : index
    %c0_3 = arith.constant 0 : index
    %c0_4 = arith.constant 0 : index
    %3 = vector.load %arg4[%c0_2, %c0_3, %c0_4] : memref<1x16x10xf32, #tpu.memory_space<vmem>>, vector<1x16x8xf32>
    %4 = vector.shape_cast %3 : vector<1x16x8xf32> to vector<16x8xf32>
    %cst_5 = arith.constant dense<0.000000e+00> : vector<16x8xf32>
    %5 = tpu.matmul %2, %4, %cst_5 {dimension_numbers = #tpu.dot_dimension_numbers<[1], [0], [0], [1], [0, 0, 1, 1], [], []>} : vector<16x16xf32>, vector<16x8xf32>, vector<16x8xf32> -> vector<16x8xf32>
    %6 = arith.addf %0, %5 : vector<16x8xf32>
    %c1 = arith.constant 1 : index
    %c0_6 = arith.constant 0 : index
    %c0_7 = arith.constant 0 : index
    %7 = vector.load %arg1[%c1, %c0_6, %c0_7] : memref<3x16x16xf32, #tpu.memory_space<vmem>>, vector<1x16x16xf32>
    %8 = vector.shape_cast %7 : vector<1x16x16xf32> to vector<16x16xf32>
    %c0_8 = arith.constant 0 : index
    %c0_9 = arith.constant 0 : index
    %c1_10 = arith.constant 1 : index
    %9 = vector.load %arg4[%c0_8, %c0_9, %c1_10] : memref<1x16x10xf32, #tpu.memory_space<vmem>>, vector<1x16x8xf32>
    %10 = vector.shape_cast %9 : vector<1x16x8xf32> to vector<16x8xf32>
    %cst_11 = arith.constant dense<0.000000e+00> : vector<16x8xf32>
    %11 = tpu.matmul %8, %10, %cst_11 {dimension_numbers = #tpu.dot_dimension_numbers<[1], [0], [0], [1], [0, 0, 1, 1], [], []>} : vector<16x16xf32>, vector<16x8xf32>, vector<16x8xf32> -> vector<16x8xf32>
    %12 = arith.addf %6, %11 : vector<16x8xf32>
    %c2 = arith.constant 2 : index
    %c0_12 = arith.constant 0 : index
    %c0_13 = arith.constant 0 : index
    %13 = vector.load %arg1[%c2, %c0_12, %c0_13] : memref<3x16x16xf32, #tpu.memory_space<vmem>>, vector<1x16x16xf32>
    %14 = vector.shape_cast %13 : vector<1x16x16xf32> to vector<16x16xf32>
    %c0_14 = arith.constant 0 : index
    %c0_15 = arith.constant 0 : index
    %c2_16 = arith.constant 2 : index
    %15 = vector.load %arg4[%c0_14, %c0_15, %c2_16] : memref<1x16x10xf32, #tpu.memory_space<vmem>>, vector<1x16x8xf32>
    %16 = vector.shape_cast %15 : vector<1x16x8xf32> to vector<16x8xf32>
    %cst_17 = arith.constant dense<0.000000e+00> : vector<16x8xf32>
    %17 = tpu.matmul %14, %16, %cst_17 {dimension_numbers = #tpu.dot_dimension_numbers<[1], [0], [0], [1], [0, 0, 1, 1], [], []>} : vector<16x16xf32>, vector<16x8xf32>, vector<16x8xf32> -> vector<16x8xf32>
    %18 = arith.addf %12, %17 : vector<16x8xf32>
    %c0_18 = arith.constant 0 : index
    %c0_19 = arith.constant 0 : index
    %c0_20 = arith.constant 0 : index
    %19 = vector.load %arg2[%c0_18, %c0_19, %c0_20] : memref<3x16x1xf32, #tpu.memory_space<vmem>>, vector<1x16x1xf32>
    %20 = vector.shape_cast %19 : vector<1x16x1xf32> to vector<16x1xf32>
    %21 = vector.broadcast %20 : vector<16x1xf32> to vector<16x8xf32>
    %22 = arith.mulf %18, %21 : vector<16x8xf32>
    %c1_21 = arith.constant 1 : index
    %c0_22 = arith.constant 0 : index
    %c0_23 = arith.constant 0 : index
    %23 = vector.load %arg2[%c1_21, %c0_22, %c0_23] : memref<3x16x1xf32, #tpu.memory_space<vmem>>, vector<1x16x1xf32>
    %24 = vector.shape_cast %23 : vector<1x16x1xf32> to vector<16x1xf32>
    %25 = vector.broadcast %24 : vector<16x1xf32> to vector<16x8xf32>
    %26 = arith.addf %22, %25 : vector<16x8xf32>
    %cst_24 = arith.constant 0.000000e+00 : f32
    %27 = vector.broadcast %cst_24 : f32 to vector<16x8xf32>
    %28 = arith.cmpf ogt, %26, %27 : vector<16x8xf32>
    %c2_25 = arith.constant 2 : index
    %c0_26 = arith.constant 0 : index
    %c0_27 = arith.constant 0 : index
    %29 = vector.load %arg2[%c2_25, %c0_26, %c0_27] : memref<3x16x1xf32, #tpu.memory_space<vmem>>, vector<1x16x1xf32>
    %30 = vector.shape_cast %29 : vector<1x16x1xf32> to vector<16x1xf32>
    %31 = vector.broadcast %30 : vector<16x1xf32> to vector<16x8xf32>
    %32 = arith.mulf %31, %26 : vector<16x8xf32>
    %33 = arith.select %28, %26, %32 : vector<16x8xi1>, vector<16x8xf32>
    %c0_28 = arith.constant 0 : index
    %c0_29 = arith.constant 0 : index
    %34 = vector.load %arg3[%c0_28, %c0_29] : memref<16x17xf32, #tpu.memory_space<vmem>>, vector<16x16xf32>
    %cst_30 = arith.constant dense<0.000000e+00> : vector<16x8xf32>
    %35 = tpu.matmul %34, %33, %cst_30 {dimension_numbers = #tpu.dot_dimension_numbers<[1], [0], [0], [1], [0, 0, 1, 1], [], []>} : vector<16x16xf32>, vector<16x8xf32>, vector<16x8xf32> -> vector<16x8xf32>
    %c0_31 = arith.constant 0 : index
    %c16 = arith.constant 16 : index
    %36 = vector.load %arg3[%c0_31, %c16] : memref<16x17xf32, #tpu.memory_space<vmem>>, vector<16x1xf32>
    %37 = vector.broadcast %36 : vector<16x1xf32> to vector<16x8xf32>
    %38 = arith.addf %35, %37 : vector<16x8xf32>
    %c0_32 = arith.constant 0 : index
    %c0_33 = arith.constant 0 : index
    %c0_34 = arith.constant 0 : index
    %39 = vector.load %arg5[%c0_32, %c0_33, %c0_34] : memref<1x16x8xf32, #tpu.memory_space<vmem>>, vector<1x16x8xf32>
    %40 = vector.shape_cast %39 : vector<1x16x8xf32> to vector<16x8xf32>
    %41 = vector.shape_cast %38 : vector<16x8xf32> to vector<1x16x8xf32>
    tpu.vector_store %arg5[%c0_32, %c0_33, %c0_34], %41 {strides = array<i32>} : memref<1x16x8xf32, #tpu.memory_space<vmem>>, vector<1x16x8xf32>,
    return
  }
  func.func @transform_0(%arg0: i32) -> (i32, i32, i32) {
    %c0_i32 = arith.constant 0 : i32
    %c0_i32_0 = arith.constant 0 : i32
    %c0_i32_1 = arith.constant 0 : i32
    %c0_i32_2 = arith.constant 0 : i32
    return %c0_i32, %c0_i32_0, %c0_i32_1 : i32, i32, i32
  }
  func.func @transform_1(%arg0: i32) -> (i32, i32, i32) {
    %c0_i32 = arith.constant 0 : i32
    %c0_i32_0 = arith.constant 0 : i32
    %c0_i32_1 = arith.constant 0 : i32
    %c0_i32_2 = arith.constant 0 : i32
    return %c0_i32, %c0_i32_0, %c0_i32_1 : i32, i32, i32
  }
  func.func @transform_2(%arg0: i32) -> (i32, i32) {
    %c0_i32 = arith.constant 0 : i32
    %c0_i32_0 = arith.constant 0 : i32
    %c0_i32_1 = arith.constant 0 : i32
    return %c0_i32, %c0_i32_0 : i32, i32
  }
  func.func @transform_3(%arg0: i32) -> (i32, i32, i32) {
    %c0_i32 = arith.constant 0 : i32
    %c0_i32_0 = arith.constant 0 : i32
    %c0_i32_1 = arith.constant 0 : i32
    return %arg0, %c0_i32, %c0_i32_0 : i32, i32, i32
  }
  func.func @transform_4(%arg0: i32) -> (i32, i32, i32) {
    %c0_i32 = arith.constant 0 : i32
    %c0_i32_0 = arith.constant 0 : i32
    %c0_i32_1 = arith.constant 0 : i32
    return %arg0, %c0_i32, %c0_i32_0 : i32, i32, i32
  }
}

module attributes {stable_mosaic.version = 11 : i64} {
  func.func @kernel(%arg0: i32, %arg1: memref<3x32x16xf32, #tpu.memory_space<vmem>>, %arg2: memref<2x32x1xf32, #tpu.memory_space<vmem>>, %arg3: memref<16x17xf32, #tpu.memory_space<vmem>>, %arg4: memref<16x17xf32, #tpu.memory_space<vmem>>, %arg5: memref<1x16x12xf32, #tpu.memory_space<vmem>>, %arg6: memref<1x16x8xf32, #tpu.memory_space<vmem>>, %arg7: memref<1x16x8xf32, #tpu.memory_space<vmem>>, %arg8: memref<1x16x8xf32, #tpu.memory_space<vmem>>) attributes {dimension_semantics = [#tpu.dimension_semantics<parallel>], iteration_bounds = array<i64: 2>, scalar_prefetch = 0 : i64, scratch_operands = 0 : i64, tpu.core_type = #tpu.core_type<tc>, window_params = [{pipeline_mode = #tpu.pipeline_mode<synchronous>, transform_indices = @transform_0, window_bounds = array<i64: 3, 32, 16>}, {pipeline_mode = #tpu.pipeline_mode<synchronous>, transform_indices = @transform_1, window_bounds = array<i64: 2, 32, 1>}, {pipeline_mode = #tpu.pipeline_mode<synchronous>, transform_indices = @transform_2, window_bounds = array<i64: 16, 17>}, {pipeline_mode = #tpu.pipeline_mode<synchronous>, transform_indices = @transform_3, window_bounds = array<i64: 16, 17>}, {transform_indices = @transform_4, window_bounds = array<i64: 1, 16, 12>}, {transform_indices = @transform_5, window_bounds = array<i64: 1, 16, 8>}, {transform_indices = @transform_6, window_bounds = array<i64: 1, 16, 8>}, {transform_indices = @transform_7, window_bounds = array<i64: 1, 16, 8>}]} {
    %cst = arith.constant 0.000000e+00 : f32
    %0 = vector.broadcast %cst : f32 to vector<32x8xf32>
    %c0 = arith.constant 0 : index
    %c0_0 = arith.constant 0 : index
    %c0_1 = arith.constant 0 : index
    %1 = vector.load %arg1[%c0, %c0_0, %c0_1] : memref<3x32x16xf32, #tpu.memory_space<vmem>>, vector<1x32x16xf32>
    %2 = vector.shape_cast %1 : vector<1x32x16xf32> to vector<32x16xf32>
    %c0_2 = arith.constant 0 : index
    %c0_3 = arith.constant 0 : index
    %c0_4 = arith.constant 0 : index
    %3 = vector.load %arg5[%c0_2, %c0_3, %c0_4] : memref<1x16x12xf32, #tpu.memory_space<vmem>>, vector<1x16x8xf32>
    %4 = vector.shape_cast %3 : vector<1x16x8xf32> to vector<16x8xf32>
    %cst_5 = arith.constant dense<0.000000e+00> : vector<32x8xf32>
    %5 = tpu.matmul %2, %4, %cst_5 {dimension_numbers = #tpu.dot_dimension_numbers<[1], [0], [0], [1], [0, 0, 1, 1], [], []>} : vector<32x16xf32>, vector<16x8xf32>, vector<32x8xf32> -> vector<32x8xf32>
    %6 = arith.addf %0, %5 : vector<32x8xf32>
    %c1 = arith.constant 1 : index
    %c0_6 = arith.constant 0 : index
    %c0_7 = arith.constant 0 : index
    %7 = vector.load %arg1[%c1, %c0_6, %c0_7] : memref<3x32x16xf32, #tpu.memory_space<vmem>>, vector<1x32x16xf32>
    %8 = vector.shape_cast %7 : vector<1x32x16xf32> to vector<32x16xf32>
    %c0_8 = arith.constant 0 : index
    %c0_9 = arith.constant 0 : index
    %c2 = arith.constant 2 : index
    %9 = vector.load %arg5[%c0_8, %c0_9, %c2] : memref<1x16x12xf32, #tpu.memory_space<vmem>>, vector<1x16x8xf32>
    %10 = vector.shape_cast %9 : vector<1x16x8xf32> to vector<16x8xf32>
    %cst_10 = arith.constant dense<0.000000e+00> : vector<32x8xf32>
    %11 = tpu.matmul %8, %10, %cst_10 {dimension_numbers = #tpu.dot_dimension_numbers<[1], [0], [0], [1], [0, 0, 1, 1], [], []>} : vector<32x16xf32>, vector<16x8xf32>, vector<32x8xf32> -> vector<32x8xf32>
    %12 = arith.addf %6, %11 : vector<32x8xf32>
    %c2_11 = arith.constant 2 : index
    %c0_12 = arith.constant 0 : index
    %c0_13 = arith.constant 0 : index
    %13 = vector.load %arg1[%c2_11, %c0_12, %c0_13] : memref<3x32x16xf32, #tpu.memory_space<vmem>>, vector<1x32x16xf32>
    %14 = vector.shape_cast %13 : vector<1x32x16xf32> to vector<32x16xf32>
    %c0_14 = arith.constant 0 : index
    %c0_15 = arith.constant 0 : index
    %c4 = arith.constant 4 : index
    %15 = vector.load %arg5[%c0_14, %c0_15, %c4] : memref<1x16x12xf32, #tpu.memory_space<vmem>>, vector<1x16x8xf32>
    %16 = vector.shape_cast %15 : vector<1x16x8xf32> to vector<16x8xf32>
    %cst_16 = arith.constant dense<0.000000e+00> : vector<32x8xf32>
    %17 = tpu.matmul %14, %16, %cst_16 {dimension_numbers = #tpu.dot_dimension_numbers<[1], [0], [0], [1], [0, 0, 1, 1], [], []>} : vector<32x16xf32>, vector<16x8xf32>, vector<32x8xf32> -> vector<32x8xf32>
    %18 = arith.addf %12, %17 : vector<32x8xf32>
    %c0_17 = arith.constant 0 : index
    %c0_18 = arith.constant 0 : index
    %c0_19 = arith.constant 0 : index
    %19 = vector.load %arg2[%c0_17, %c0_18, %c0_19] : memref<2x32x1xf32, #tpu.memory_space<vmem>>, vector<1x32x1xf32>
    %20 = vector.shape_cast %19 : vector<1x32x1xf32> to vector<32x1xf32>
    %21 = vector.broadcast %20 : vector<32x1xf32> to vector<32x8xf32>
    %22 = arith.mulf %18, %21 : vector<32x8xf32>
    %c1_20 = arith.constant 1 : index
    %c0_21 = arith.constant 0 : index
    %c0_22 = arith.constant 0 : index
    %23 = vector.load %arg2[%c1_20, %c0_21, %c0_22] : memref<2x32x1xf32, #tpu.memory_space<vmem>>, vector<1x32x1xf32>
    %24 = vector.shape_cast %23 : vector<1x32x1xf32> to vector<32x1xf32>
    %25 = vector.broadcast %24 : vector<32x1xf32> to vector<32x8xf32>
    %26 = arith.addf %22, %25 : vector<32x8xf32>
    %27 = vector.extract_strided_slice %26 {offsets = [0, 0], sizes = [16, 8], strides = [1, 1]} : vector<32x8xf32> to vector<16x8xf32>
    %28 = math.tanh %27 : vector<16x8xf32>
    %29 = vector.extract_strided_slice %26 {offsets = [16, 0], sizes = [16, 8], strides = [1, 1]} : vector<32x8xf32> to vector<16x8xf32>
    %30 = arith.negf %29 : vector<16x8xf32>
    %31 = math.exp %30 : vector<16x8xf32>
    %cst_23 = arith.constant 1.000000e+00 : f32
    %32 = vector.broadcast %cst_23 : f32 to vector<16x8xf32>
    %33 = arith.addf %32, %31 : vector<16x8xf32>
    %34 = arith.divf %32, %33 : vector<16x8xf32>
    %35 = arith.mulf %28, %34 : vector<16x8xf32>
    %c0_24 = arith.constant 0 : index
    %c0_25 = arith.constant 0 : index
    %36 = vector.load %arg3[%c0_24, %c0_25] : memref<16x17xf32, #tpu.memory_space<vmem>>, vector<16x16xf32>
    %cst_26 = arith.constant dense<0.000000e+00> : vector<16x8xf32>
    %37 = tpu.matmul %36, %35, %cst_26 {dimension_numbers = #tpu.dot_dimension_numbers<[1], [0], [0], [1], [0, 0, 1, 1], [], []>} : vector<16x16xf32>, vector<16x8xf32>, vector<16x8xf32> -> vector<16x8xf32>
    %c0_27 = arith.constant 0 : index
    %c16 = arith.constant 16 : index
    %38 = vector.load %arg3[%c0_27, %c16] : memref<16x17xf32, #tpu.memory_space<vmem>>, vector<16x1xf32>
    %39 = vector.broadcast %38 : vector<16x1xf32> to vector<16x8xf32>
    %40 = arith.addf %37, %39 : vector<16x8xf32>
    %c0_28 = arith.constant 0 : index
    %c0_29 = arith.constant 0 : index
    %41 = vector.load %arg4[%c0_28, %c0_29] : memref<16x17xf32, #tpu.memory_space<vmem>>, vector<16x16xf32>
    %cst_30 = arith.constant dense<0.000000e+00> : vector<16x8xf32>
    %42 = tpu.matmul %41, %35, %cst_30 {dimension_numbers = #tpu.dot_dimension_numbers<[1], [0], [0], [1], [0, 0, 1, 1], [], []>} : vector<16x16xf32>, vector<16x8xf32>, vector<16x8xf32> -> vector<16x8xf32>
    %c0_31 = arith.constant 0 : index
    %c16_32 = arith.constant 16 : index
    %43 = vector.load %arg4[%c0_31, %c16_32] : memref<16x17xf32, #tpu.memory_space<vmem>>, vector<16x1xf32>
    %44 = vector.broadcast %43 : vector<16x1xf32> to vector<16x8xf32>
    %45 = arith.addf %42, %44 : vector<16x8xf32>
    %c0_33 = arith.constant 0 : index
    %c0_34 = arith.constant 0 : index
    %c2_35 = arith.constant 2 : index
    %46 = vector.load %arg5[%c0_33, %c0_34, %c2_35] : memref<1x16x12xf32, #tpu.memory_space<vmem>>, vector<1x16x8xf32>
    %47 = vector.shape_cast %46 : vector<1x16x8xf32> to vector<16x8xf32>
    %48 = arith.addf %47, %40 : vector<16x8xf32>
    %c0_36 = arith.constant 0 : index
    %c0_37 = arith.constant 0 : index
    %c0_38 = arith.constant 0 : index
    %49 = vector.load %arg7[%c0_36, %c0_37, %c0_38] : memref<1x16x8xf32, #tpu.memory_space<vmem>>, vector<1x16x8xf32>
    %50 = vector.shape_cast %49 : vector<1x16x8xf32> to vector<16x8xf32>
    %51 = vector.shape_cast %48 : vector<16x8xf32> to vector<1x16x8xf32>
    tpu.vector_store %arg7[%c0_36, %c0_37, %c0_38], %51 {strides = array<i32>} : memref<1x16x8xf32, #tpu.memory_space<vmem>>, vector<1x16x8xf32>,
    %c0_39 = arith.constant 0 : index
    %c0_40 = arith.constant 0 : index
    %c0_41 = arith.constant 0 : index
    %52 = vector.load %arg6[%c0_39, %c0_40, %c0_41] : memref<1x16x8xf32, #tpu.memory_space<vmem>>, vector<1x16x8xf32>
    %53 = vector.shape_cast %52 : vector<1x16x8xf32> to vector<16x8xf32>
    %54 = arith.addf %53, %45 : vector<16x8xf32>
    %c0_42 = arith.constant 0 : index
    %c0_43 = arith.constant 0 : index
    %c0_44 = arith.constant 0 : index
    %55 = vector.load %arg8[%c0_42, %c0_43, %c0_44] : memref<1x16x8xf32, #tpu.memory_space<vmem>>, vector<1x16x8xf32>
    %56 = vector.shape_cast %55 : vector<1x16x8xf32> to vector<16x8xf32>
    %57 = vector.shape_cast %54 : vector<16x8xf32> to vector<1x16x8xf32>
    tpu.vector_store %arg8[%c0_42, %c0_43, %c0_44], %57 {strides = array<i32>} : memref<1x16x8xf32, #tpu.memory_space<vmem>>, vector<1x16x8xf32>,
    return
  }
  func.func @transform_0(%arg0: i32) -> (i32, i32, i32) {
    %c0_i32 = arith.constant 0 : i32
    %c0_i32_0 = arith.constant 0 : i32
    %c0_i32_1 = arith.constant 0 : i32
    %c0_i32_2 = arith.constant 0 : i32
    return %c0_i32, %c0_i32_0, %c0_i32_1 : i32, i32, i32
  }
  func.func @transform_1(%arg0: i32) -> (i32, i32, i32) {
    %c0_i32 = arith.constant 0 : i32
    %c0_i32_0 = arith.constant 0 : i32
    %c0_i32_1 = arith.constant 0 : i32
    %c0_i32_2 = arith.constant 0 : i32
    return %c0_i32, %c0_i32_0, %c0_i32_1 : i32, i32, i32
  }
  func.func @transform_2(%arg0: i32) -> (i32, i32) {
    %c0_i32 = arith.constant 0 : i32
    %c0_i32_0 = arith.constant 0 : i32
    %c0_i32_1 = arith.constant 0 : i32
    return %c0_i32, %c0_i32_0 : i32, i32
  }
  func.func @transform_3(%arg0: i32) -> (i32, i32) {
    %c0_i32 = arith.constant 0 : i32
    %c0_i32_0 = arith.constant 0 : i32
    %c0_i32_1 = arith.constant 0 : i32
    return %c0_i32, %c0_i32_0 : i32, i32
  }
  func.func @transform_4(%arg0: i32) -> (i32, i32, i32) {
    %c0_i32 = arith.constant 0 : i32
    %c0_i32_0 = arith.constant 0 : i32
    %c0_i32_1 = arith.constant 0 : i32
    return %arg0, %c0_i32, %c0_i32_0 : i32, i32, i32
  }
  func.func @transform_5(%arg0: i32) -> (i32, i32, i32) {
    %c0_i32 = arith.constant 0 : i32
    %c0_i32_0 = arith.constant 0 : i32
    %c0_i32_1 = arith.constant 0 : i32
    return %arg0, %c0_i32, %c0_i32_0 : i32, i32, i32
  }
  func.func @transform_6(%arg0: i32) -> (i32, i32, i32) {
    %c0_i32 = arith.constant 0 : i32
    %c0_i32_0 = arith.constant 0 : i32
    %c0_i32_1 = arith.constant 0 : i32
    return %arg0, %c0_i32, %c0_i32_0 : i32, i32, i32
  }
  func.func @transform_7(%arg0: i32) -> (i32, i32, i32) {
    %c0_i32 = arith.constant 0 : i32
    %c0_i32_0 = arith.constant 0 : i32
    %c0_i32_1 = arith.constant 0 : i32
    return %arg0, %c0_i32, %c0_i32_0 : i32, i32, i32
  }
}

</mosaic_0001>

<bundles_post_ra>
// kernel: _lambda_.10
= control target key start
LH: loop header
LB: loop body
LE: loop exit
PB: predicated region body
PF: predicated region fallthrough
CT: control target
= control target key end

     0   :  { %s855_s12 = smov 0   ;;  %s944_s0 = inlined_call_operand.vmem [shape: f32[5,16,4], index: 0, kind: input, shape index: {}]   ;;  %s945_s1 = inlined_call_operand.vmem [shape: f32[3,16,1], index: 1, kind: input, shape index: {}]   ;;  %s946_s2 = inlined_call_operand.vmem [shape: f32[2,4,36], index: 2, kind: input, shape index: {}]   ;;  %s947_s3 = inlined_call_operand.vmem [shape: f32[2,16,32], index: 3, kind: output, shape index: {}]  }
   0x1 LB: > { %s721_s13 = sadd.s32 4294967295, %s828_s12   ;;  %p725_p0 = scmp.ge.s32.totalorder %s828_s12, 1  ;;  %s828_s12 = sphi %s855_s12, %s13_s12  }
   0x2   : > { %p136_p1 = scmp.lt.s32.totalorder %s828_s12, 3 }
   0x4   : > { %p137_p2 = pnand %p725_p0, %p136_p1 }
   0x5   : > { %p159_p3 = scmp.lt.s32.totalorder (!%p137_p2), %s721_s13, 1  ;;  %vm177_vm0 = vcmask (!%p137_p2), 31744   ;;  %v737_v0 = vld [vmem:[%s944_s0 + $0x20] sm:$0xff] (!%p137_p2)  ;;  %v729_v1 = vld [vmem:[%s944_s0 + $0x10] sm:$0xff] (!%p137_p2)  ;;  %s830_s22 = smov (!%p137_p2), 126   ;;  %v616_v3 = vld [vmem:[%s945_s1 + $0x8] sm:$0xff] (!%p137_p2) }
   0x6   : > { %140 = sbr.rel (%p137_p2) target bundleno = 373 (0x175), region = 32  ;;  %786 = vmatprep.mubr.msk.f32.mxu0 (!%p137_p2), %vm177_vm0, %v737_v0  ;;  %776 = vmatprep.mubr.msk.f32.mxu1 (!%p137_p2), %vm177_vm0, %v729_v1  ;;  %s831_s23 = smov (!%p137_p2), 125   ;;  %v615_v4 = vld [vmem:[%s945_s1] sm:$0xff] (!%p137_p2)  ;;  %v834_v5 = vmov (!%p137_p2), 0   ;;  %v752_v6 = vld [vmem:[%s945_s1 + $0x10] sm:$0xff] (!%p137_p2)  ;;  %v753_v7 = vld [vmem:[%s945_s1 + $0x18] sm:$0xff] (!%p137_p2) }
   0x7   : > { %s832_s24 = smov (!%p137_p2), 127   ;;  %s833_s25 = smov (!%p137_p2), 124   ;;  %821 = vset.pattern.permute.xlu1 (!%p137_p2), %v834_v5  ;;  %820 = vset.pattern.permute.xlu0 (!%p137_p2), %v834_v5  ;;  %v754_v8 = vld [vmem:[%s945_s1 + $0x20] sm:$0xff] (!%p137_p2)  ;;  %v755_v9 = vld [vmem:[%s945_s1 + $0x28] sm:$0xff] (!%p137_p2)  ;;  %vm184_vm1 = vcmask (!%p137_p2), 1043456   ;;  %v742_v13 = vld [vmem:[%s944_s0 + $0x30] sm:$0xff] (!%p137_p2) }
   0x8   : > { %v738_v12 = vld [vmem:[%s944_s0 + $0x28] sm:$0xff] (!%p137_p2)  ;;  %v730_v15 = vld [vmem:[%s944_s0 + $0x18] sm:$0xff] (!%p137_p2)  ;;  %v168_v17 = vld [vmem:[%s944_s0] sm:$0xff] (!%p137_p2)  ;;  %vm663_vm3 = vcmask (!%p137_p2), 261120  }
   0x9   : > { %v743_v18 = vld [vmem:[%s944_s0 + $0x38] sm:$0xff] (!%p137_p2)  ;;  %v747_v19 = vld [vmem:[%s944_s0 + $0x40] sm:$0xff] (!%p137_p2)  ;;  %v169_v20 = vld [vmem:[%s944_s0 + $0x8] sm:$0xff] (!%p137_p2) }
   0xa   : > { %v748_v21 = vld [vmem:[%s944_s0 + $0x48] sm:$0xff] (!%p137_p2) }
   0xd   : > { %s949_s13 = smov (!%p159_p3, %s721_s13), 1 }
   0xe   : > { %s726_s18 = sshll.u32 %s949_s13, 2  ;;  %s758_s29 = sshll.u32 %s949_s13, 4 }
   0xf   : > { %s162_s21 = scalar_lea.vmem %s946_s2, %s726_s18  ;;  %s167_s5 = scalar_lea.vmem %s947_s3, %s758_s29 }
  0x10   : > { %v170_v2 = vld [vmem:[%s162_s21] sm:$0xf] }
  0x11   : > { %348 = vrot.lane.b32.xlu0 %v170_v2, %s830_s22  ;;  %438 = vrot.lane.b32.xlu1 %v170_v2, %s831_s23 }
  0x15   : > { %175 = vrot.lane.b32.xlu0 %v170_v2, %s832_s24  ;;  %528 = vrot.lane.b32.xlu1 %v170_v2, %s833_s25 }
  0x19   : > { %624 = vperm.xlu1 %821, %v616_v3   ;;  %619 = vperm.xlu0 %820, %v615_v4  }
  0x1d   : > { %634 = vperm.xlu1 %821, %v752_v6   ;;  %639 = vperm.xlu0 %820, %v753_v7  }
  0x21   : > { %651 = vperm.xlu1 %821, %v754_v8   ;;  %656 = vperm.xlu0 %820, %v755_v9  }
  0x83   : > { %v349_v10 = vpop.permute.xlu0 %348  ;;  %v439_v11 = vpop.permute.xlu1 %438 }
  0x84   : > { %784 = vmatprep.subr.msk.mxu0 %vm184_vm1, %v349_v10 }
  0x85   : > { %785 = vmatpush3.msk.msra.mxu0 %vm184_vm1, %v349_v10 }
  0x86   : > { %787 = vmatmul.mubr.msk.f32.vlgmr.msra.gmra.mrb[0].mxu0 %vm177_vm0, %v738_v12  ;;  %789 = vmatprep.subr.msk.mxu0 %vm184_vm1, %v439_v11 }
  0x87   : > { %790 = vmatpush3.msk.msra.mxu0 %vm184_vm1, %v439_v11  ;;  %v176_v14 = vpop.permute.xlu0 %175  ;;  %v529_v16 = vpop.permute.xlu1 %528  ;;  %791 = vmatprep.mubr.msk.f32.mxu0 %vm177_vm0, %v742_v13 }
  0x88   : > { %774 = vmatprep.subr.msk.mxu1 %vm184_vm1, %v176_v14  ;;  %794 = vmatprep.subr.msk.mxu0 %vm184_vm1, %v529_v16 }
  0x89   : > { %775 = vmatpush3.msk.msra.mxu1 %vm184_vm1, %v176_v14 }
  0x8a   : > { %777 = vmatmul.mubr.msk.f32.vlgmr.msra.gmra.mrb[0].mxu1 %vm177_vm0, %v730_v15  ;;  %779 = vmatprep.subr.msk.mxu1 %vm184_vm1, %v170_v2 }
  0x8b   : > { %780 = vmatpush3.msk.msra.mxu1 %vm184_vm1, %v170_v2  ;;  %781 = vmatprep.mubr.msk.f32.mxu1 %vm177_vm0, %v168_v17 }
  0x8e   : > { %792 = vmatmul.mubr.msk.f32.vlgmr.msra.gmra.mrb[0].mxu0 %vm177_vm0, %v743_v18 }
  0x8f   : > { %795 = vmatpush3.msk.msra.mxu0 %vm184_vm1, %v529_v16  ;;  %796 = vmatprep.mubr.msk.f32.mxu0 %vm177_vm0, %v747_v19 }
  0x92   : > { %782 = vmatmul.mubr.msk.f32.vlgmr.msra.gmra.mrb[0].mxu1 %vm177_vm0, %v169_v20 }
  0x96   : > { %797 = vmatmul.mubr.msk.f32.vlgmr.msra.gmra.mrb[0].mxu0 %vm177_vm0, %v748_v21 }
  0x98   : > { %v620_v22 = vpop.permute.xlu0 %619  ;;  %v625_v23 = vpop.permute.xlu1 %624 }
  0x9c   : > { %v640_v26 = vpop.permute.xlu0 %639  ;;  %v635_v28 = vpop.permute.xlu1 %634 }
  0xa0   : > { %v657_v35 = vpop.permute.xlu0 %656  ;;  %v652_v37 = vpop.permute.xlu1 %651 }
 0x165   : > { %v783_v24 = vpop.f32.mrb[0].mxu1 }
 0x166   : > { %v336_v25 = vpop.f32.mrb[1].mxu1 }
 0x169   : > { %v798_v27 = vpop.f32.mrb[0].mxu0 }
 0x16a   : > { %v799_v29 = vadd.f32 %v798_v27, %v783_v24  ;;  %v604_v30 = vpop.f32.mrb[1].mxu0 }
 0x16b   : > { %v800_v31 = vadd.f32 %v604_v30, %v336_v25 }
 0x16c   : > { %v628_v32 = vmul.f32 %v799_v29, %v625_v23 }
 0x16d   : > { %v627_v33 = vmul.f32 %v800_v31, %v620_v22 }
 0x16e   : > { %v643_v34 = vadd.f32 %v640_v26, %v628_v32 }
 0x16f   : > { %v642_v36 = vadd.f32 %v635_v28, %v627_v33 }
 0x170   : > { %vm645_vm2 = vcmp.gt.f32.partialorder %v643_v34, 0.0  ;;  %v660_v38 = vmul.f32 %v657_v35, %v643_v34 }
 0x171   : > { %vm644_vm4 = vcmp.gt.f32.partialorder %v642_v36, 0.0  ;;  %v659_v39 = vmul.f32 %v652_v37, %v642_v36 }
 0x172   : > { %v662_v40 = vsel %vm645_vm2, %v643_v34, %v660_v38 }
 0x173   : > { %665 = vst.msk [vmem:[%s167_s5 + $0x8] sm:$0xff] %vm663_vm3, %v662_v40  ;;  %v661_v41 = vsel %vm644_vm4, %v642_v36, %v659_v39 }
 0x174   : > { %664 = vst.msk [vmem:[%s167_s5] sm:$0xff] %vm663_vm3, %v661_v41 }
 0x175 PF: > { %s13_s12 = sadd.s32 1, %s828_s12  }
 0x176   : > { %p10_p4 = scmp.ge.s32.totalorder %s13_s12, 4  }
 0x178   :  { %12 = sbr.rel (!%p10_p4) target bundleno = 1 (0x1), region = 68 }

// kernel: _lambda_.11
= control target key start
LH: loop header
LB: loop body
LE: loop exit
PB: predicated region body
PF: predicated region fallthrough
CT: control target
= control target key end

     0   :  { %s874_s12 = smov 0   ;;  %s949_s0 = inlined_call_operand.vmem [shape: f32[4,16,32], index: 0, kind: input, shape index: {}]   ;;  %s950_s1 = inlined_call_operand.vmem [shape: f32[3,16,1], index: 1, kind: input, shape index: {}]   ;;  %s951_s2 = inlined_call_operand.vmem [shape: f32[2,32,19], index: 2, kind: input, shape index: {}]   ;;  %s952_s3 = inlined_call_operand.vmem [shape: f32[2,16,16], index: 3, kind: output, shape index: {}]  }
   0x1 LB: > { %s661_s13 = sadd.s32 4294967295, %s848_s12   ;;  %p665_p0 = scmp.ge.s32.totalorder %s848_s12, 1  ;;  %s848_s12 = sphi %s874_s12, %s13_s12  }
   0x2   : > { %p137_p1 = scmp.lt.s32.totalorder %s848_s12, 3 }
   0x4   : > { %p138_p2 = pnand %p665_p0, %p137_p1 }
   0x5   : > { %p161_p3 = scmp.lt.s32.totalorder (!%p138_p2), %s661_s13, 1  ;;  %v670_v0 = vld [vmem:[%s949_s0 + $0x10] sm:$0xff] (!%p138_p2)  ;;  %vm196_vm0 = vcmask (!%p138_p2), 261120   ;;  %s850_s20 = smov (!%p138_p2), 127   ;;  %v676_v8 = vld [vmem:[%s949_s0 + $0x20] sm:$0xff] (!%p138_p2)  ;;  %v556_v10 = vld [vmem:[%s950_s1 + $0x8] sm:$0xff] (!%p138_p2) }
   0x6   : > { %141 = sbr.rel (%p138_p2) target bundleno = 381 (0x17d), region = 32  ;;  %724 = vmatprep.mubr.msk.f32.mxu1 (!%p138_p2), %vm196_vm0, %v670_v0  ;;  %746 = vmatprep.mubr.msk.f32.mxu0 (!%p138_p2), %vm196_vm0, %v676_v8  ;;  %s851_s23 = smov (!%p138_p2), 126   ;;  %v555_v11 = vld [vmem:[%s950_s1] sm:$0xff] (!%p138_p2)  ;;  %v853_v12 = vmov (!%p138_p2), 0   ;;  %v684_v13 = vld [vmem:[%s950_s1 + $0x10] sm:$0xff] (!%p138_p2)  ;;  %v685_v14 = vld [vmem:[%s950_s1 + $0x18] sm:$0xff] (!%p138_p2) }
   0x7   : > { %s852_s24 = smov (!%p138_p2), 125   ;;  %841 = vset.pattern.permute.xlu1 (!%p138_p2), %v853_v12  ;;  %840 = vset.pattern.permute.xlu0 (!%p138_p2), %v853_v12  ;;  %v686_v15 = vld [vmem:[%s950_s1 + $0x20] sm:$0xff] (!%p138_p2)  ;;  %v687_v16 = vld [vmem:[%s950_s1 + $0x28] sm:$0xff] (!%p138_p2)  ;;  %v671_v37 = vld [vmem:[%s949_s0 + $0x18] sm:$0xff] (!%p138_p2)  ;;  %vm603_vm2 = vcmask (!%p138_p2), 130048  }
   0x8   : > { %v171_v41 = vld [vmem:[%s949_s0] sm:$0xff] (!%p138_p2)  ;;  %v677_v42 = vld [vmem:[%s949_s0 + $0x28] sm:$0xff] (!%p138_p2)  ;;  %v680_v44 = vld [vmem:[%s949_s0 + $0x30] sm:$0xff] (!%p138_p2) }
   0x9   : > { %v172_v45 = vld [vmem:[%s949_s0 + $0x8] sm:$0xff] (!%p138_p2)  ;;  %v681_v46 = vld [vmem:[%s949_s0 + $0x38] sm:$0xff] (!%p138_p2) }
   0xd   : > { %s954_s13 = smov (!%p161_p3, %s661_s13), 1 }
   0xe   : > { %s690_s14 = sshll.u32 %s954_s13, 5 }
   0xf   : > { %s165_s17 = scalar_lea.vmem %s951_s2, %s690_s14 }
  0x10   : > { %v173_v1 = vld [vmem:[%s165_s17] sm:$0xff]  ;;  %v174_v2 = vld [vmem:[%s165_s17 + $0x8] sm:$0xff]  ;;  %v175_v3 = vld [vmem:[%s165_s17 + $0x10] sm:$0xff] }
  0x11   : > { %v810_v4 = vpack.i.bf16 %v174_v2, %v173_v1  ;;  %v176_v5 = vld [vmem:[%s165_s17 + $0x18] sm:$0xff]  ;;  %v768_v6 = vpack.c.bf16 %v174_v2, %v173_v1 }
  0x12   : > { %v820_v7 = vpack.i.bf16 %v176_v5, %v175_v3  ;;  %v895_v9 = vpack.c.bf16 %v176_v5, %v175_v3 }
  0x13   : > { %811 = vrot.lane.b32.xlu0 %v810_v4, %s850_s20 }
  0x14   : > { %821 = vrot.lane.b32.xlu1 %v820_v7, %s850_s20 }
  0x17   : > { %816 = vrot.lane.b32.xlu0 %v810_v4, %s851_s23 }
  0x18   : > { %826 = vrot.lane.b32.xlu1 %v820_v7, %s851_s23 }
  0x1b   : > { %831 = vrot.lane.b32.xlu0 %v810_v4, %s852_s24 }
  0x1c   : > { %836 = vrot.lane.b32.xlu1 %v820_v7, %s852_s24  ;;  %s691_s24 = sshll.u32 %s954_s13, 4 }
  0x1d   : > { %s170_s27 = scalar_lea.vmem %s952_s3, %s691_s24 }
  0x1f   : > { %559 = vperm.xlu0 %840, %v555_v11  }
  0x20   : > { %564 = vperm.xlu1 %841, %v556_v10  }
  0x23   : > { %579 = vperm.xlu0 %840, %v685_v14  }
  0x24   : > { %574 = vperm.xlu1 %841, %v684_v13  }
  0x27   : > { %596 = vperm.xlu0 %840, %v687_v16  }
  0x28   : > { %591 = vperm.xlu1 %841, %v686_v15  }
  0x85   : > { %v812_v17 = vpop.permute.xlu0 %811 }
  0x86   : > { %v814_v18 = vunpack.i.h.bf16 %v812_v17  ;;  %v813_v19 = vunpack.i.l.bf16 %v812_v17  ;;  %v822_v20 = vpop.permute.xlu1 %821 }
  0x87   : > { %v824_v21 = vunpack.i.h.bf16 %v822_v20  ;;  %v823_v22 = vunpack.i.l.bf16 %v822_v20 }
  0x88   : > { %v760_v23 = vpack.c.bf16 %v814_v18, %v813_v19 }
  0x89   : > { %v764_v24 = vpack.c.bf16 %v824_v21, %v823_v22  ;;  %v817_v25 = vpop.permute.xlu0 %816 }
  0x8a   : > { %v819_v26 = vunpack.i.h.bf16 %v817_v25  ;;  %v818_v27 = vunpack.i.l.bf16 %v817_v25  ;;  %761 = vmatprep.subr.bf16.mxu1 %v760_v23  ;;  %v827_v28 = vpop.permute.xlu1 %826 }
  0x8b   : > { %763 = vmatpush3.bf16.msra.mxu1 %v760_v23  ;;  %v829_v29 = vunpack.i.h.bf16 %v827_v28  ;;  %v828_v30 = vunpack.i.l.bf16 %v827_v28 }
  0x8c   : > { %765 = vmatprep.subr.bf16.mxu1 %v764_v24  ;;  %v776_v31 = vpack.c.bf16 %v819_v26, %v818_v27 }
  0x8d   : > { %v780_v32 = vpack.c.bf16 %v829_v29, %v828_v30  ;;  %v832_v33 = vpop.permute.xlu0 %831 }
  0x8e   : > { %777 = vmatprep.subr.bf16.mxu0 %v776_v31  ;;  %v834_v34 = vunpack.i.h.bf16 %v832_v33  ;;  %v833_v35 = vunpack.i.l.bf16 %v832_v33  ;;  %v837_v36 = vpop.permute.xlu1 %836 }
  0x8f   : > { %767 = vmatpush3.bf16.msra.mxu1 %v764_v24  ;;  %779 = vmatpush3.bf16.msra.mxu0 %v776_v31  ;;  %v839_v39 = vunpack.i.h.bf16 %v837_v36  ;;  %v838_v40 = vunpack.i.l.bf16 %v837_v36 }
  0x90   : > { %v784_v38 = vpack.c.bf16 %v834_v34, %v833_v35  ;;  %769 = vmatprep.subr.bf16.mxu1 %v768_v6  ;;  %781 = vmatprep.subr.bf16.mxu0 %v780_v32 }
  0x91   : > { %v788_v43 = vpack.c.bf16 %v839_v39, %v838_v40 }
  0x92   : > { %725 = vmatmul.mubr.msk.f32.vlgmr.msra.gmra.mrb[0].mxu1 %vm196_vm0, %v671_v37 }
  0x93   : > { %771 = vmatpush3.bf16.msra.mxu1 %v768_v6  ;;  %783 = vmatpush3.bf16.msra.mxu0 %v780_v32 }
  0x94   : > { %773 = vmatprep.subr.bf16.mxu1 %v895_v9  ;;  %785 = vmatprep.subr.bf16.mxu0 %v784_v38 }
  0x95   : > { %735 = vmatprep.mubr.msk.f32.mxu1 %vm196_vm0, %v171_v41 }
  0x96   : > { %747 = vmatmul.mubr.msk.f32.vlgmr.msra.gmra.mrb[0].mxu0 %vm196_vm0, %v677_v42 }
  0x97   : > { %775 = vmatpush3.bf16.msra.mxu1 %v895_v9  ;;  %787 = vmatpush3.bf16.msra.mxu0 %v784_v38 }
  0x98   : > { %789 = vmatprep.subr.bf16.mxu0 %v788_v43  ;;  %757 = vmatprep.mubr.msk.f32.mxu0 %vm196_vm0, %v680_v44 }
  0x9a   : > { %736 = vmatmul.mubr.msk.f32.vlgmr.msra.gmra.mrb[0].mxu1 %vm196_vm0, %v172_v45 }
  0x9b   : > { %791 = vmatpush3.bf16.msra.mxu0 %v788_v43 }
  0x9e   : > { %758 = vmatmul.mubr.msk.f32.vlgmr.msra.gmra.mrb[0].mxu0 %vm196_vm0, %v681_v46  ;;  %v560_v47 = vpop.permute.xlu0 %559 }
  0x9f   : > { %v565_v48 = vpop.permute.xlu1 %564 }
  0xa2   : > { %v580_v51 = vpop.permute.xlu0 %579 }
  0xa3   : > { %v575_v53 = vpop.permute.xlu1 %574 }
  0xa6   : > { %v597_v60 = vpop.permute.xlu0 %596 }
  0xa7   : > { %v592_v62 = vpop.permute.xlu1 %591 }
 0x16d   : > { %v737_v49 = vpop.f32.mrb[0].mxu1 }
 0x16e   : > { %v350_v50 = vpop.f32.mrb[1].mxu1 }
 0x171   : > { %v759_v52 = vpop.f32.mrb[0].mxu0 }
 0x172   : > { %v792_v54 = vadd.f32 %v759_v52, %v737_v49  ;;  %v544_v55 = vpop.f32.mrb[1].mxu0 }
 0x173   : > { %v793_v56 = vadd.f32 %v544_v55, %v350_v50 }
 0x174   : > { %v568_v57 = vmul.f32 %v792_v54, %v565_v48 }
 0x175   : > { %v567_v58 = vmul.f32 %v793_v56, %v560_v47 }
 0x176   : > { %v583_v59 = vadd.f32 %v580_v51, %v568_v57 }
 0x177   : > { %v582_v61 = vadd.f32 %v575_v53, %v567_v58 }
 0x178   : > { %vm585_vm1 = vcmp.gt.f32.partialorder %v583_v59, 0.0  ;;  %v600_v63 = vmul.f32 %v597_v60, %v583_v59 }
 0x179   : > { %vm584_vm3 = vcmp.gt.f32.partialorder %v582_v61, 0.0  ;;  %v599_v0 = vmul.f32 %v592_v62, %v582_v61 }
 0x17a   : > { %v602_v1 = vsel %vm585_vm1, %v583_v59, %v600_v63 }
 0x17b   : > { %605 = vst.msk [vmem:[%s170_s27 + $0x8] sm:$0xff] %vm603_vm2, %v602_v1  ;;  %v601_v2 = vsel %vm584_vm3, %v582_v61, %v599_v0 }
 0x17c   : > { %604 = vst.msk [vmem:[%s170_s27] sm:$0xff] %vm603_vm2, %v601_v2 }
 0x17d PF: > { %s13_s12 = sadd.s32 1, %s848_s12  }
 0x17e   : > { %p10_p4 = scmp.ge.s32.totalorder %s13_s12, 4  }
 0x180   :  { %12 = sbr.rel (!%p10_p4) target bundleno = 1 (0x1), region = 67 }

// kernel: _lambda_.12
= control target key start
LH: loop header
LB: loop body
LE: loop exit
PB: predicated region body
PF: predicated region fallthrough
CT: control target
= control target key end

     0   :  { %s1258_s24 = smov 0   ;;  %s1392_s0 = inlined_call_operand.vmem [shape: f32[3,32,16], index: 0, kind: input, shape index: {}]   ;;  %s1393_s1 = inlined_call_operand.vmem [shape: f32[2,32,1], index: 1, kind: input, shape index: {}]   ;;  %s1394_s2 = inlined_call_operand.vmem [shape: f32[16,17], index: 2, kind: input, shape index: {}]   ;;  %s1395_s3 = inlined_call_operand.vmem [shape: f32[16,17], index: 3, kind: input, shape index: {}]   ;;  %s1396_s4 = inlined_call_operand.vmem [shape: f32[2,16,18], index: 4, kind: input, shape index: {}]   ;;  %s1397_s5 = inlined_call_operand.vmem [shape: f32[2,16,16], index: 5, kind: input, shape index: {}]   ;;  %s1398_s6 = inlined_call_operand.vmem [shape: f32[2,16,16], index: 6, kind: output, shape index: {0}]   ;;  %s1399_s7 = inlined_call_operand.vmem [shape: f32[2,16,16], index: 7, kind: output, shape index: {1}]  }
   0x1 LB: > { %s1019_s25 = sadd.s32 4294967295, %s1211_s24   ;;  %p1023_p0 = scmp.ge.s32.totalorder %s1211_s24, 1  ;;  %s1211_s24 = sphi %s1258_s24, %s18_s24  }
   0x2   : > { %p250_p1 = scmp.lt.s32.totalorder %s1211_s24, 3 }
   0x4   : > { %p251_p2 = pnand %p1023_p0, %p250_p1 }
   0x5   : > { %p292_p3 = scmp.lt.s32.totalorder (!%p251_p2), %s1019_s25, 1  ;;  %v312_v0 = vld [vmem:[%s1392_s0] sm:$0xff] (!%p251_p2)  ;;  %vm331_vm0 = vcmask (!%p251_p2), 130048   ;;  %s1213_s11 = smov (!%p251_p2), 127   ;;  %v313_v6 = vld [vmem:[%s1392_s0 + $0x8] sm:$0xff] (!%p251_p2)  ;;  %v314_v7 = vld [vmem:[%s1392_s0 + $0x10] sm:$0xff] (!%p251_p2) }
   0x6   : > { %254 = sbr.rel (%p251_p2) target bundleno = 855 (0x357), region = 44  ;;  %1108 = vmatprep.mubr.msk.f32.mxu0 (!%p251_p2), %vm331_vm0, %v312_v0  ;;  %v1032_v1 = vld [vmem:[%s1392_s0 + $0x20] sm:$0xff] (!%p251_p2)  ;;  %v640_v8 = vld [vmem:[%s1393_s1 + $0x10] sm:$0xff] (!%p251_p2)  ;;  %s1214_s18 = smov (!%p251_p2), 126   ;;  %v315_v9 = vld [vmem:[%s1392_s0 + $0x18] sm:$0xff] (!%p251_p2)  ;;  %v1215_v10 = vmov (!%p251_p2), 0  }
   0x7   : > { %1098 = vmatprep.mubr.msk.f32.mxu1 (!%p251_p2), %vm331_vm0, %v1032_v1  ;;  %1189 = vset.pattern.permute.xlu1 (!%p251_p2), %v1215_v10  ;;  %v1054_v11 = vld [vmem:[%s1393_s1 + $0x30] sm:$0xff] (!%p251_p2)  ;;  %v1044_v12 = vld [vmem:[%s1392_s0 + $0x40] sm:$0xff] (!%p251_p2)  ;;  %v641_v13 = vld [vmem:[%s1393_s1 + $0x18] sm:$0xff] (!%p251_p2)  ;;  %v1216_v35 = vmov (!%p251_p2), 16   ;;  %s1217_s20 = smov (!%p251_p2), 1  }
   0x8   : > { %654 = vperm.xlu1 (!%p251_p2), %1189, %v640_v8   ;;  %1190 = vset.pattern.permute.xlu0 (!%p251_p2), %v1215_v10  ;;  %v639_v14 = vld [vmem:[%s1393_s1 + $0x8] sm:$0xff] (!%p251_p2)  ;;  %v1055_v15 = vld [vmem:[%s1393_s1 + $0x38] sm:$0xff] (!%p251_p2)  ;;  %v638_v17 = vld [vmem:[%s1393_s1] sm:$0xff] (!%p251_p2) }
   0x9   : > { %v1053_v16 = vld [vmem:[%s1393_s1 + $0x28] sm:$0xff] (!%p251_p2)  ;;  %v1052_v18 = vld [vmem:[%s1393_s1 + $0x20] sm:$0xff] (!%p251_p2)  ;;  %v1034_v28 = vld [vmem:[%s1392_s0 + $0x30] sm:$0xff] (!%p251_p2) }
   0xa   : > { %v1033_v26 = vld [vmem:[%s1392_s0 + $0x28] sm:$0xff] (!%p251_p2)  ;;  %v1035_v30 = vld [vmem:[%s1392_s0 + $0x38] sm:$0xff] (!%p251_p2)  ;;  %v1046_v31 = vld [vmem:[%s1392_s0 + $0x50] sm:$0xff] (!%p251_p2) }
   0xb   : > { %v1045_v29 = vld [vmem:[%s1392_s0 + $0x48] sm:$0xff] (!%p251_p2)  ;;  %v1047_v32 = vld [vmem:[%s1392_s0 + $0x58] sm:$0xff] (!%p251_p2)  ;;  %v711_v33 = vld [vmem:[%s1394_s2] sm:$0xff] (!%p251_p2) }
   0xc   : > { %659 = vperm.xlu1 (!%p251_p2), %1189, %v641_v13   ;;  %v712_v34 = vld [vmem:[%s1394_s2 + $0x8] sm:$0xff] (!%p251_p2)  ;;  %v802_v36 = vld [vmem:[%s1395_s3] sm:$0xff] (!%p251_p2) }
   0xd   : > { %s1401_s25 = smov (!%p292_p3, %s1019_s25), 1 }
   0xe   : > { %s1270_s28 = sshll.u32 %s1401_s25, 4 }
   0xf   : > { %s296_s8 = scalar_lea.vmem %s1396_s4, %s1270_s28  ;;  %s301_s19 = scalar_lea.vmem %s1397_s5, %s1270_s28 }
  0x10   : > { %v1279_v2 = vld [vmem:[%s296_s8] sm:$0xff]  ;;  %v1281_v3 = vld [vmem:[%s296_s8 + $0x8] sm:$0xff]  ;;  %688 = vperm.xlu1 %1189, %v1055_v15   ;;  %s311_s23 = scalar_lea.vmem %s1399_s7, %s1270_s28  ;;  %s306_s27 = scalar_lea.vmem %s1398_s6, %s1270_s28 }
  0x11   : > { %v1179_v4 = vpack.i.bf16 %v1281_v3, %v1279_v2  ;;  %v1142_v5 = vpack.c.bf16 %v1281_v3, %v1279_v2 }
  0x13   : > { %1180 = vrot.lane.b32.xlu0 %v1179_v4, %s1213_s11  ;;  %1143 = vmatprep.subr.bf16.mxu0 %v1142_v5 }
  0x14   : > { %1145 = vmatpush3.bf16.msra.mxu0 %v1142_v5  ;;  %644 = vperm.xlu1 %1189, %v638_v17  }
  0x17   : > { %1185 = vrot.lane.b32.xlu0 %v1179_v4, %s1214_s18  ;;  %1109 = vmatmul.mubr.msk.f32.vlgmr.msra.gmra.mrb[0].mxu0 %vm331_vm0, %v313_v6 }
  0x18   : > { %1111 = vmatprep.mubr.msk.f32.mxu0 %vm331_vm0, %v314_v7  ;;  %673 = vperm.xlu1 %1189, %v1052_v18  }
  0x1b   : > { %1112 = vmatmul.mubr.msk.f32.gmra.mrb[2].mxu0 %vm331_vm0, %v315_v9  ;;  %683 = vperm.xlu0 %1190, %v1054_v11  }
  0x1c   : > { %1118 = vmatprep.mubr.msk.f32.mxu0 %vm331_vm0, %v1044_v12  ;;  %1191 = vset.pattern.permute.xlu1 %v1216_v35 }
  0x1d   : > { %715 = vperm.xlu1 %1191, %v711_v33  }
  0x1f   : > { %649 = vperm.xlu0 %1190, %v639_v14  }
  0x23   : > { %678 = vperm.xlu0 %1190, %v1053_v16   ;;  %v803_v16 = vld [vmem:[%s1395_s3 + $0x8] sm:$0xff] }
  0x27   : > { %1192 = vset.pattern.permute.xlu0 %v1216_v35 }
  0x28   : > { %720 = vperm.xlu0 %1192, %v712_v34  }
  0x2c   : > { %806 = vperm.xlu0 %1192, %v802_v36  }
  0x85   : > { %v1181_v19 = vpop.permute.xlu0 %1180 }
  0x86   : > { %v1183_v20 = vunpack.i.h.bf16 %v1181_v19  ;;  %v1182_v21 = vunpack.i.l.bf16 %v1181_v19 }
  0x87   : > { %v655_v37 = vpop.permute.xlu1 %654 }
  0x88   : > { %v1138_v22 = vpack.c.bf16 %v1183_v20, %v1182_v21 }
  0x89   : > { %v1186_v23 = vpop.permute.xlu0 %1185 }
  0x8a   : > { %v1188_v24 = vunpack.i.h.bf16 %v1186_v23  ;;  %v1187_v25 = vunpack.i.l.bf16 %v1186_v23  ;;  %1139 = vmatprep.subr.bf16.mxu1 %v1138_v22 }
  0x8b   : > { %1141 = vmatpush3.bf16.msra.mxu1 %v1138_v22  ;;  %v660_v45 = vpop.permute.xlu1 %659 }
  0x8c   : > { %v1146_v27 = vpack.c.bf16 %v1188_v24, %v1187_v25  ;;  %v913_v25 = vld [vmem:[%s301_s19] sm:$0xff] }
  0x8e   : > { %1147 = vmatprep.subr.bf16.mxu0 %v1146_v27  ;;  %1099 = vmatmul.mubr.msk.f32.vlgmr.msra.gmra.mrb[0].mxu1 %vm331_vm0, %v1033_v26 }
  0x8f   : > { %1149 = vmatpush3.bf16.msra.mxu0 %v1146_v27  ;;  %1101 = vmatprep.mubr.msk.f32.mxu1 %vm331_vm0, %v1034_v28  ;;  %v689_v53 = vpop.permute.xlu1 %688 }
  0x92   : > { %1119 = vmatmul.mubr.msk.f32.vlgmr.msra.gmra.mrb[0].mxu0 %vm331_vm0, %v1045_v29  ;;  %1102 = vmatmul.mubr.msk.f32.gmra.mrb[2].mxu1 %vm331_vm0, %v1035_v30 }
  0x93   : > { %1121 = vmatprep.mubr.msk.f32.mxu0 %vm331_vm0, %v1046_v31  ;;  %1128 = vmatprep.mubr.msk.f32.mxu1 %vm331_vm0, %v711_v33  ;;  %v645_v60 = vpop.permute.xlu1 %644  ;;  %v914_v33 = vld [vmem:[%s301_s19 + $0x8] sm:$0xff] }
  0x96   : > { %1122 = vmatmul.mubr.msk.f32.gmra.mrb[2].mxu0 %vm331_vm0, %v1047_v32 }
  0x97   : > { %v674_v0 = vpop.permute.xlu1 %673 }
  0x9a   : > { %v684_v48 = vpop.permute.xlu0 %683 }
  0x9c   : > { %v716_v18 = vpop.permute.xlu1 %715 }
  0x9e   : > { %v650_v57 = vpop.permute.xlu0 %649 }
  0xa2   : > { %v679_v63 = vpop.permute.xlu0 %678 }
  0xa7   : > { %v721_v17 = vpop.permute.xlu0 %720 }
  0xab   : > { %v807_v22 = vpop.permute.xlu0 %806 }
 0x161   : > { %v1100_v38 = vpop.f32.mrb[0].mxu1 }
 0x162   : > { %v410_v39 = vpop.f32.mrb[1].mxu1 }
 0x165   : > { %v1120_v40 = vpop.f32.mrb[0].mxu0  ;;  %v1103_v41 = vpop.f32.mrb[2].mxu1 }
 0x166   : > { %v1158_v42 = vadd.f32 %v1120_v40, %v1100_v38  ;;  %v615_v43 = vpop.f32.mrb[1].mxu0  ;;  %v420_v44 = vpop.f32.mrb[3].mxu1 }
 0x167   : > { %v1159_v46 = vadd.f32 %v615_v43, %v410_v39 }
 0x168   : > { %v663_v61 = vmul.f32 %v1158_v42, %v650_v57 }
 0x169   : > { %v1123_v47 = vpop.f32.mrb[2].mxu0  ;;  %v662_v62 = vmul.f32 %v1159_v46, %v645_v60 }
 0x16a   : > { %v1160_v49 = vadd.f32 %v1123_v47, %v1103_v41  ;;  %v625_v50 = vpop.f32.mrb[3].mxu0  ;;  %v692_v1 = vadd.f32 %v679_v63, %v663_v61 }
 0x16b   : > { %v1161_v51 = vadd.f32 %v625_v50, %v420_v44  ;;  %v691_v4 = vadd.f32 %v674_v0, %v662_v62 }
 0x16c   : > { %v665_v52 = vmul.f32 %v1160_v49, %v660_v45 }
 0x16d   : > { %v664_v54 = vmul.f32 %v1161_v51, %v655_v37 }
 0x16e   : > { %v694_v55 = vadd.f32 %v689_v53, %v665_v52 }
 0x16f   : > { %v693_v56 = vadd.f32 %v684_v48, %v664_v54 }
 0x170   : > { %v1057_v58 = vmul.f32 -1.442695, %v694_v55 }
 0x171   : > { %v1056_v59 = vmul.f32 -1.442695, %v693_v56 }
 0x172   : > { %1193 = vpow2.f32 %v1057_v58 }
 0x173   : > { %1195 = vpow2.f32 %v1056_v59 }
 0x174   : > { %1197 = vtanh.f32 %v692_v1 }
 0x175   : > { %1199 = vtanh.f32 %v691_v4 }
 0x17c   : > { %v1194_v5 = vpop.eup %1193 }
 0x17d   : > { %v1196_v6 = vpop.eup %1195  ;;  %v704_v7 = vadd.f32 1.0, %v1194_v5 }
 0x17e   : > { %v703_v8 = vadd.f32 1.0, %v1196_v6  ;;  %v1198_v9 = vpop.eup %1197 }
 0x17f   : > { %1201 = vrcp.f32 %v704_v7  ;;  %v1200_v10 = vpop.eup %1199 }
 0x180   : > { %1203 = vrcp.f32 %v703_v8 }
 0x189   : > { %v1202_v11 = vpop.eup %1201 }
 0x18a   : > { %v1204_v12 = vpop.eup %1203  ;;  %v710_v13 = vmul.f32 %v1202_v11, %v1198_v9 }
 0x18b   : > { %v709_v14 = vmul.f32 %v1204_v12, %v1200_v10 }
 0x18d   : > { %v1150_v15 = vpack.c.bf16 %v710_v13, %v709_v14 }
 0x18f   : > { %1151 = vmatprep.subr.bf16.mxu1 %v1150_v15 }
 0x190   : > { %1153 = vmatpush3.bf16.msra.mxu1 %v1150_v15 }
 0x191   : > { %1155 = vmatprep.subr.bf16.mxu1 %v1150_v15 }
 0x193   : > { %1129 = vmatmul.mubr.msk.f32.vlgmr.msra.gmra.mrb[4].mxu1 %vm331_vm0, %v712_v34 }
 0x194   : > { %1157 = vmatpush3.bf16.msra.mxu1 %v1150_v15  ;;  %1135 = vmatprep.mubr.msk.f32.mxu1 %vm331_vm0, %v802_v36 }
 0x197   : > { %1136 = vmatmul.mubr.msk.f32.vlgmr.msra.gmra.mrb[6].mxu1 %vm331_vm0, %v803_v16 }
 0x266   : > { %v1130_v19 = vpop.f32.mrb[4].mxu1 }
 0x267   : > { %v793_v20 = vpop.f32.mrb[5].mxu1  ;;  %v799_v26 = vadd.f32 %v1130_v19, %v721_v17 }
 0x268   : > { %v794_v21 = vadd.f32 %v793_v20, %v716_v18 }
 0x26a   : > { %895 = vrot.lane.b32.xlu1 %v794_v21, %s1217_s20  ;;  %v1137_v23 = vpop.f32.mrb[6].mxu1 }
 0x26b   : > { %v884_v24 = vpop.f32.mrb[7].mxu1 }
 0x26c   : > { %v885_v27 = vadd.f32 %v884_v24, %v807_v22 }
 0x26e   : > { %897 = vrot.lane.b32.xlu1 %v799_v26, %s1217_s20  ;;  %v915_v28 = vadd.f32 %v913_v25, %v885_v27 }
 0x270   : > { %917 = vst.msk [vmem:[%s311_s23] sm:$0xff] %vm331_vm0, %v915_v28 }
 0x272   : > { %811 = vperm.xlu1 %1191, %v803_v16  }
 0x2dc   : > { %v896_v29 = vpop.permute.xlu1 %895 }
 0x2dd   : > { %v901_v30 = vadd.f32 %v896_v29, %v1279_v2 }
 0x2df   : > { %905 = vrot.lane.b32.xlu0 %v901_v30, %s1213_s11 }
 0x2e0   : > { %v898_v31 = vpop.permute.xlu1 %897 }
 0x2e1   : > { %v902_v32 = vadd.f32 %v898_v31, %v1281_v3 }
 0x2e3   : > { %907 = vrot.lane.b32.xlu1 %v902_v32, %s1213_s11 }
 0x2f1   : > { %v812_v34 = vpop.permute.xlu1 %811 }
 0x2f2   : > { %v890_v35 = vadd.f32 %v1137_v23, %v812_v34 }
 0x2f4   : > { %v916_v36 = vadd.f32 %v914_v33, %v890_v35 }
 0x2f6   : > { %918 = vst.msk [vmem:[%s311_s23 + $0x8] sm:$0xff] %vm331_vm0, %v916_v36 }
 0x351   : > { %v906_v37 = vpop.permute.xlu0 %905 }
 0x352   : > { %911 = vst.msk [vmem:[%s306_s27] sm:$0xff] %vm331_vm0, %v906_v37 }
 0x355   : > { %v908_v2 = vpop.permute.xlu1 %907 }
 0x356   : > { %912 = vst.msk [vmem:[%s306_s27 + $0x8] sm:$0xff] %vm331_vm0, %v908_v2 }
 0x357 PF: > { %s18_s24 = sadd.s32 1, %s1211_s24  }
 0x358   : > { %p15_p4 = scmp.ge.s32.totalorder %s18_s24, 4  }
 0x35a   :  { %17 = sbr.rel (!%p15_p4) target bundleno = 1 (0x1), region = 92 }

// kernel: _lambda_.13
= control target key start
LH: loop header
LB: loop body
LE: loop exit
PB: predicated region body
PF: predicated region fallthrough
CT: control target
= control target key end

     0   :  { %13 = vsyncpa [#allocation3], 0  ;;  %s1589_s0 = inlined_call_operand.vmem [shape: f32[3,32,16], index: 0, kind: input, shape index: {}]   ;;  %s1590_s1 = inlined_call_operand.vmem [shape: f32[2,32,1], index: 1, kind: input, shape index: {}]   ;;  %s1591_s2 = inlined_call_operand.vmem [shape: f32[16,17], index: 2, kind: input, shape index: {}]   ;;  %s1592_s3 = inlined_call_operand.vmem [shape: f32[16,17], index: 3, kind: input, shape index: {}]   ;;  %s1593_s4 = inlined_call_operand.vmem [shape: f32[2,16,20], index: 4, kind: input, shape index: {}]   ;;  %s1594_s5 = inlined_call_operand.vmem [shape: f32[2,16,16], index: 5, kind: input, shape index: {}]   ;;  %s1595_s6 = inlined_call_operand.hbm [shape: f32[2,16,16], index: 6, kind: output, shape index: {0}]   ;;  %s1596_s7 = inlined_call_operand.vmem [shape: f32[2,16,16], index: 7, kind: output, shape index: {1}]  }
   0x1   :  { %15 = vsyncpa [#allocation3 + $0x1], 0  ;;  %s1370_s24 = smov 0   ;;  %s1372_s25 = smov 0  }
   0x2   :  { %s1374_s26 = smov 0   ;;  %s1376_s27 = smov 0  }
   0x3 LB: > { %s1391_s28 = sadd.s32 4294967295, %s1320_s27   ;;  %s1038_s29 = sadd.s32 4294967294, %s1320_s27   ;;  %s1320_s27 = sphi %s1376_s27, %s1602_s27   ;;  %s1316_s26 = sphi %s1374_s26, %s1601_s26   ;;  %s1312_s25 = sphi %s1372_s25, %s1600_s25   ;;  %s1308_s24 = sphi %s1370_s24, %s1599_s24  }
   0x4   : > { %s1395_s30 = sadd.s32 1, %s1320_s27   ;;  %s164_s8 = sadd.s32 1, %s1316_s26 }
   0x5   : > { %s161_s9 = ssub.s32 %s1320_s27, %s1395_s30  ;;  %p174_p0 = scmp.ne.s32.totalorder %s1316_s26, %s1312_s25 }
   0x6   : > { %p162_p1 = scmp.eq.s32.totalorder %s161_s9, 0  ;;  %p175_p2 = scmp.eq.s32.totalorder %s1391_s28, 1 }
   0x7   : > { %p180_p3 = scmp.ne.s32.totalorder %s1312_s25, %s1308_s24  ;;  %p181_p4 = scmp.eq.s32.totalorder %s1038_s29, 1 }
   0x8   : > { %s1406_s10 = scalar_select %p162_p1, %s1316_s26, %s164_s8  }
   0x9   : > { %p1408_p5 = por %p175_p2, %p174_p0  ;;  %p1412_p6 = por %p181_p4, %p180_p3 }
   0xa   : > { %p1041_p7 = scmp.ge.s32.totalorder %s1320_s27, 1  ;;  %p253_p8 = scmp.lt.s32.totalorder %s1320_s27, 3 }
   0xc   : > { %p254_p9 = pnand %p1041_p7, %p253_p8 }
   0xd   : > { %p295_p10 = scmp.lt.s32.totalorder (!%p254_p9), %s1391_s28, 1  ;;  %v310_v0 = vld [vmem:[%s1589_s0] sm:$0xff] (!%p254_p9)  ;;  %vm329_vm0 = vcmask (!%p254_p9), 130048   ;;  %s1322_s22 = smov (!%p254_p9), 126   ;;  %v311_v6 = vld [vmem:[%s1589_s0 + $0x8] sm:$0xff] (!%p254_p9)  ;;  %v312_v7 = vld [vmem:[%s1589_s0 + $0x10] sm:$0xff] (!%p254_p9) }
   0xe   : > { %257 = sbr.rel (%p254_p9) target bundleno = 878 (0x36e), region = 44  ;;  %1128 = vmatprep.mubr.msk.f32.mxu0 (!%p254_p9), %vm329_vm0, %v310_v0  ;;  %v1049_v1 = vld [vmem:[%s1589_s0 + $0x20] sm:$0xff] (!%p254_p9)  ;;  %v638_v8 = vld [vmem:[%s1590_s1 + $0x10] sm:$0xff] (!%p254_p9)  ;;  %v313_v9 = vld [vmem:[%s1589_s0 + $0x18] sm:$0xff] (!%p254_p9)  ;;  %v1324_v10 = vmov (!%p254_p9), 0   ;;  %v1325_v35 = vmov (!%p254_p9), 16  }
   0xf   : > { %1118 = vmatprep.mubr.msk.f32.mxu1 (!%p254_p9), %vm329_vm0, %v1049_v1  ;;  %1242 = vset.pattern.permute.xlu1 (!%p254_p9), %v1324_v10  ;;  %v1071_v11 = vld [vmem:[%s1590_s1 + $0x30] sm:$0xff] (!%p254_p9)  ;;  %v1061_v12 = vld [vmem:[%s1589_s0 + $0x40] sm:$0xff] (!%p254_p9)  ;;  %v639_v13 = vld [vmem:[%s1590_s1 + $0x18] sm:$0xff] (!%p254_p9)  ;;  %s1326_s23 = smov (!%p254_p9), 2   ;;  %s1087_s17 = sshll.u32 (!%p254_p9), %s1391_s28, 8 }
  0x10   : > { %652 = vperm.xlu1 (!%p254_p9), %1242, %v638_v8   ;;  %1243 = vset.pattern.permute.xlu0 (!%p254_p9), %v1324_v10  ;;  %v637_v14 = vld [vmem:[%s1590_s1 + $0x8] sm:$0xff] (!%p254_p9)  ;;  %v1072_v15 = vld [vmem:[%s1590_s1 + $0x38] sm:$0xff] (!%p254_p9)  ;;  %v636_v17 = vld [vmem:[%s1590_s1] sm:$0xff] (!%p254_p9) }
  0x11   : > { %v1070_v16 = vld [vmem:[%s1590_s1 + $0x28] sm:$0xff] (!%p254_p9)  ;;  %v1069_v18 = vld [vmem:[%s1590_s1 + $0x20] sm:$0xff] (!%p254_p9)  ;;  %v1051_v28 = vld [vmem:[%s1589_s0 + $0x30] sm:$0xff] (!%p254_p9) }
  0x12   : > { %v1050_v26 = vld [vmem:[%s1589_s0 + $0x28] sm:$0xff] (!%p254_p9)  ;;  %v1052_v30 = vld [vmem:[%s1589_s0 + $0x38] sm:$0xff] (!%p254_p9)  ;;  %v1063_v31 = vld [vmem:[%s1589_s0 + $0x50] sm:$0xff] (!%p254_p9) }
  0x13   : > { %v1062_v29 = vld [vmem:[%s1589_s0 + $0x48] sm:$0xff] (!%p254_p9)  ;;  %v1064_v32 = vld [vmem:[%s1589_s0 + $0x58] sm:$0xff] (!%p254_p9)  ;;  %v709_v33 = vld [vmem:[%s1591_s2] sm:$0xff] (!%p254_p9) }
  0x14   : > { %657 = vperm.xlu1 (!%p254_p9), %1242, %v639_v13   ;;  %v710_v34 = vld [vmem:[%s1591_s2 + $0x8] sm:$0xff] (!%p254_p9)  ;;  %v800_v36 = vld [vmem:[%s1592_s3] sm:$0xff] (!%p254_p9) }
  0x15   : > { %s296_s15 = scalar_select %p295_p10, %s1391_s28, 1 }
  0x16   : > { %s1327_s28 = smov [#allocation2]  }
  0x17   : > { %s1424_s16 = sshll.u32 %s296_s15, 4  ;;  %s1323_s15 = smov 124  }
  0x18   : > { %s299_s19 = scalar_lea.vmem %s1593_s4, %s1424_s16  ;;  %686 = vperm.xlu1 %1242, %v1072_v15   ;;  %s304_s21 = scalar_lea.vmem %s1594_s5, %s1424_s16 }
  0x19   : > { %v1433_v2 = vld [vmem:[%s299_s19] sm:$0xff]  ;;  %v1435_v3 = vld [vmem:[%s299_s19 + $0x8] sm:$0xff]  ;;  %s309_s9 = scalar_lea.vmem %s1596_s7, %s1424_s16  ;;  %s285_s16 = sand.u32 1, %s1312_s25  }
  0x1a   : > { %v1232_v4 = vpack.i.bf16 %v1435_v3, %v1433_v2  ;;  %v1162_v5 = vpack.c.bf16 %v1435_v3, %v1433_v2  ;;  %s1042_s13 = sshll.u32 %s285_s16, 4  ;;  %s1548_s20 = scalar_lea.sflag [#allocation3], %s285_s16 }
  0x1b   : > { %s287_s14 = scalar_lea.vmem [#allocation2], %s1042_s13 }
  0x1c   : > { %1233 = vrot.lane.b32.xlu0 %v1232_v4, %s1322_s22  ;;  %1163 = vmatprep.subr.bf16.mxu0 %v1162_v5 }
  0x1d   : > { %1165 = vmatpush3.bf16.msra.mxu0 %v1162_v5  ;;  %642 = vperm.xlu1 %1242, %v636_v17  }
  0x20   : > { %1238 = vrot.lane.b32.xlu0 %v1232_v4, %s1323_s15  ;;  %1129 = vmatmul.mubr.msk.f32.vlgmr.msra.gmra.mrb[0].mxu0 %vm329_vm0, %v311_v6  ;;  %s936_s15 = sshll.u32 %s287_s14, 4  ;;  %s1540_s15 = int_to_ptr.vmem [resolvable:$true] %s936_s15 }
  0x21   : > { %1131 = vmatprep.mubr.msk.f32.mxu0 %vm329_vm0, %v312_v7  ;;  %671 = vperm.xlu1 %1242, %v1069_v18  }
  0x24   : > { %1132 = vmatmul.mubr.msk.f32.gmra.mrb[2].mxu0 %vm329_vm0, %v313_v9  ;;  %681 = vperm.xlu0 %1243, %v1071_v11  }
  0x25   : > { %1138 = vmatprep.mubr.msk.f32.mxu0 %vm329_vm0, %v1061_v12  ;;  %1244 = vset.pattern.permute.xlu1 %v1325_v35 }
  0x26   : > { %713 = vperm.xlu1 %1244, %v709_v33  }
  0x28   : > { %647 = vperm.xlu0 %1243, %v637_v14  }
  0x2c   : > { %676 = vperm.xlu0 %1243, %v1070_v16   ;;  %v801_v16 = vld [vmem:[%s1592_s3 + $0x8] sm:$0xff] }
  0x30   : > { %1245 = vset.pattern.permute.xlu0 %v1325_v35 }
  0x31   : > { %718 = vperm.xlu0 %1245, %v710_v34  }
  0x35   : > { %804 = vperm.xlu0 %1245, %v800_v36  }
  0x8e   : > { %v1234_v19 = vpop.permute.xlu0 %1233 }
  0x8f   : > { %v1236_v20 = vunpack.i.h.bf16 %v1234_v19  ;;  %v1235_v21 = vunpack.i.l.bf16 %v1234_v19  ;;  %v653_v37 = vpop.permute.xlu1 %652 }
  0x91   : > { %v1158_v22 = vpack.c.bf16 %v1236_v20, %v1235_v21 }
  0x92   : > { %v1239_v23 = vpop.permute.xlu0 %1238 }
  0x93   : > { %v1241_v24 = vunpack.i.h.bf16 %v1239_v23  ;;  %v1240_v25 = vunpack.i.l.bf16 %v1239_v23  ;;  %1159 = vmatprep.subr.bf16.mxu1 %v1158_v22  ;;  %v658_v45 = vpop.permute.xlu1 %657 }
  0x94   : > { %1161 = vmatpush3.bf16.msra.mxu1 %v1158_v22 }
  0x95   : > { %v1166_v27 = vpack.c.bf16 %v1241_v24, %v1240_v25  ;;  %v911_v25 = vld [vmem:[%s304_s21] sm:$0xff] }
  0x97   : > { %1167 = vmatprep.subr.bf16.mxu0 %v1166_v27  ;;  %1119 = vmatmul.mubr.msk.f32.vlgmr.msra.gmra.mrb[0].mxu1 %vm329_vm0, %v1050_v26  ;;  %v687_v53 = vpop.permute.xlu1 %686 }
  0x98   : > { %1169 = vmatpush3.bf16.msra.mxu0 %v1166_v27  ;;  %1121 = vmatprep.mubr.msk.f32.mxu1 %vm329_vm0, %v1051_v28 }
  0x9b   : > { %1139 = vmatmul.mubr.msk.f32.vlgmr.msra.gmra.mrb[0].mxu0 %vm329_vm0, %v1062_v29  ;;  %1122 = vmatmul.mubr.msk.f32.gmra.mrb[2].mxu1 %vm329_vm0, %v1052_v30 }
  0x9c   : > { %1141 = vmatprep.mubr.msk.f32.mxu0 %vm329_vm0, %v1063_v31  ;;  %1148 = vmatprep.mubr.msk.f32.mxu1 %vm329_vm0, %v709_v33  ;;  %v643_v60 = vpop.permute.xlu1 %642  ;;  %v912_v33 = vld [vmem:[%s304_s21 + $0x8] sm:$0xff]  ;;  %s1258_s21 = scalar_lea.vmem %s1540_s15, 256 }
  0x9d   : > { %p1259_p11 = scmp.ne.s32.totalorder %s1540_s15, %s1258_s21 }
  0x9f   : > { %1142 = vmatmul.mubr.msk.f32.gmra.mrb[2].mxu0 %vm329_vm0, %v1064_v32  ;;  %p1260_p12 = pnand %p1259_p11, %p1408_p5 }
  0xa0   : > { %v672_v0 = vpop.permute.xlu1 %671 }
  0xa1   : > { %p1261_p13 = pneg %p1260_p12 }
  0xa3   : > { %v682_v48 = vpop.permute.xlu0 %681 }
  0xa5   : > { %v714_v18 = vpop.permute.xlu1 %713 }
  0xa7   : > { %v648_v57 = vpop.permute.xlu0 %647 }
  0xab   : > { %v677_v63 = vpop.permute.xlu0 %676 }
  0xb0   : > { %v719_v17 = vpop.permute.xlu0 %718 }
  0xb4   : > { %v805_v22 = vpop.permute.xlu0 %804 }
 0x16a   : > { %v1120_v38 = vpop.f32.mrb[0].mxu1 }
 0x16b   : > { %v408_v39 = vpop.f32.mrb[1].mxu1 }
 0x16e   : > { %v1140_v40 = vpop.f32.mrb[0].mxu0  ;;  %v1123_v41 = vpop.f32.mrb[2].mxu1 }
 0x16f   : > { %v1178_v42 = vadd.f32 %v1140_v40, %v1120_v38  ;;  %v613_v43 = vpop.f32.mrb[1].mxu0  ;;  %v418_v44 = vpop.f32.mrb[3].mxu1 }
 0x170   : > { %v1179_v46 = vadd.f32 %v613_v43, %v408_v39 }
 0x171   : > { %v661_v61 = vmul.f32 %v1178_v42, %v648_v57 }
 0x172   : > { %v1143_v47 = vpop.f32.mrb[2].mxu0  ;;  %v660_v62 = vmul.f32 %v1179_v46, %v643_v60 }
 0x173   : > { %v1180_v49 = vadd.f32 %v1143_v47, %v1123_v41  ;;  %v623_v50 = vpop.f32.mrb[3].mxu0  ;;  %v690_v1 = vadd.f32 %v677_v63, %v661_v61 }
 0x174   : > { %v1181_v51 = vadd.f32 %v623_v50, %v418_v44  ;;  %v689_v4 = vadd.f32 %v672_v0, %v660_v62 }
 0x175   : > { %v663_v52 = vmul.f32 %v1180_v49, %v658_v45 }
 0x176   : > { %v662_v54 = vmul.f32 %v1181_v51, %v653_v37 }
 0x177   : > { %v692_v55 = vadd.f32 %v687_v53, %v663_v52 }
 0x178   : > { %v691_v56 = vadd.f32 %v682_v48, %v662_v54 }
 0x179   : > { %v1074_v58 = vmul.f32 -1.442695, %v692_v55 }
 0x17a   : > { %v1073_v59 = vmul.f32 -1.442695, %v691_v56 }
 0x17b   : > { %1246 = vpow2.f32 %v1074_v58 }
 0x17c   : > { %1248 = vpow2.f32 %v1073_v59 }
 0x17d   : > { %1250 = vtanh.f32 %v690_v1 }
 0x17e   : > { %1252 = vtanh.f32 %v689_v4 }
 0x185   : > { %v1247_v5 = vpop.eup %1246 }
 0x186   : > { %v1249_v6 = vpop.eup %1248  ;;  %v702_v7 = vadd.f32 1.0, %v1247_v5 }
 0x187   : > { %v701_v8 = vadd.f32 1.0, %v1249_v6  ;;  %v1251_v9 = vpop.eup %1250 }
 0x188   : > { %1254 = vrcp.f32 %v702_v7  ;;  %v1253_v10 = vpop.eup %1252 }
 0x189   : > { %1256 = vrcp.f32 %v701_v8 }
 0x192   : > { %v1255_v11 = vpop.eup %1254 }
 0x193   : > { %v1257_v12 = vpop.eup %1256  ;;  %v708_v13 = vmul.f32 %v1255_v11, %v1251_v9 }
 0x194   : > { %v707_v14 = vmul.f32 %v1257_v12, %v1253_v10 }
 0x196   : > { %v1170_v15 = vpack.c.bf16 %v708_v13, %v707_v14 }
 0x198   : > { %1171 = vmatprep.subr.bf16.mxu1 %v1170_v15 }
 0x199   : > { %1173 = vmatpush3.bf16.msra.mxu1 %v1170_v15 }
 0x19a   : > { %1175 = vmatprep.subr.bf16.mxu1 %v1170_v15 }
 0x19c   : > { %1149 = vmatmul.mubr.msk.f32.vlgmr.msra.gmra.mrb[4].mxu1 %vm329_vm0, %v710_v34 }
 0x19d   : > { %1177 = vmatpush3.bf16.msra.mxu1 %v1170_v15  ;;  %1155 = vmatprep.mubr.msk.f32.mxu1 %vm329_vm0, %v800_v36 }
 0x1a0   : > { %1156 = vmatmul.mubr.msk.f32.vlgmr.msra.gmra.mrb[6].mxu1 %vm329_vm0, %v801_v16 }
 0x26f   : > { %v1150_v19 = vpop.f32.mrb[4].mxu1 }
 0x270   : > { %v791_v20 = vpop.f32.mrb[5].mxu1  ;;  %v797_v26 = vadd.f32 %v1150_v19, %v719_v17 }
 0x271   : > { %v792_v21 = vadd.f32 %v791_v20, %v714_v18 }
 0x273   : > { %893 = vrot.lane.b32.xlu1 %v792_v21, %s1326_s23  ;;  %v1157_v23 = vpop.f32.mrb[6].mxu1 }
 0x274   : > { %v882_v24 = vpop.f32.mrb[7].mxu1 }
 0x275   : > { %v883_v27 = vadd.f32 %v882_v24, %v805_v22 }
 0x277   : > { %895 = vrot.lane.b32.xlu1 %v797_v26, %s1326_s23  ;;  %v913_v28 = vadd.f32 %v911_v25, %v883_v27  ;;  %s1262_s23 = sshll.u32 %s1327_s28, 4  ;;  %s1263_s23 = int_to_ptr.vmem [resolvable:$false] %s1262_s23 }
 0x278   : > { %s1264_s29 = scalar_lea.vmem %s1263_s23, 512  ;;  %p1265_p0 = scmp.lt.s32.totalorder %s1540_s15, %s1263_s23 }
 0x279   : > { %915 = vst.msk [vmem:[%s309_s9] sm:$0xff] %vm329_vm0, %v913_v28  ;;  %p1266_p1 = scmp.lt.s32.totalorder %s1264_s29, %s1258_s21 }
 0x27b   : > { %809 = vperm.xlu1 %1244, %v801_v16   ;;  %p1267_p2 = por %p1266_p1, %p1265_p0 }
 0x27d   : > { %p1268_p3 = pnand %p1267_p2, %p1261_p13 }
 0x2e5   : > { %v894_v29 = vpop.permute.xlu1 %893 }
 0x2e6   : > { %v899_v30 = vadd.f32 %v894_v29, %v1433_v2 }
 0x2e8   : > { %903 = vrot.lane.b32.xlu0 %v899_v30, %s1322_s22 }
 0x2e9   : > { %v896_v31 = vpop.permute.xlu1 %895 }
 0x2ea   : > { %v900_v32 = vadd.f32 %v896_v31, %v1435_v3 }
 0x2ec   : > { %905 = vrot.lane.b32.xlu1 %v900_v32, %s1322_s22  ;;  %s1545_s22 = scalar_lea.hbm %s1595_s6, %s1087_s17 }
 0x2fa   : > { %v810_v34 = vpop.permute.xlu1 %809 }
 0x2fb   : > { %v888_v35 = vadd.f32 %v1157_v23, %v810_v34 }
 0x2fd   : > { %v914_v36 = vadd.f32 %v912_v33, %v888_v35 }
 0x2ff   : > { %916 = vst.msk [vmem:[%s309_s9 + $0x8] sm:$0xff] %vm329_vm0, %v914_v36 }
 0x35a   : > { %v904_v2 = vpop.permute.xlu0 %903 }
 0x35b   : > { %909 = vst.msk [vmem:[%s287_s14] sm:$0xff] %vm329_vm0, %v904_v2 }
 0x35e   : > { %v906_v3 = vpop.permute.xlu1 %905 }
 0x35f   : > { %910 = vst.msk [vmem:[%s287_s14 + $0x8] sm:$0xff] %vm329_vm0, %v906_v3 }
 0x360   : > { %1271 = shalt.err (!%p1268_p3)
}
 0x361   : > { %s1272_s8 = scalar_lea.hbm %s1545_s22, 256  ;;  %s1276_s13 = scalar_lea.hbm %s1595_s6, 512 }
 0x362   : > { %p1273_p4 = scmp.ne.s32.totalorder %s1545_s22, %s1272_s8  ;;  %p1277_p9 = scmp.lt.u32.totalorder %s1545_s22, %s1595_s6 }
 0x363   : > { %p1278_p10 = scmp.lt.u32.totalorder %s1276_s13, %s1272_s8  ;;  %p1280_p12 = scmp.lt.u32.totalorder %s1272_s8, %s1545_s22 }
 0x364   : > { %p1274_p7 = pnand %p1273_p4, %p1408_p5 }
 0x365   : > { %p1279_p11 = por %p1278_p10, %p1277_p9 }
 0x366   : > { %p1275_p8 = pneg %p1274_p7 }
 0x367   : > { %p1281_p13 = por %p1280_p12, %p1279_p11 }
 0x369   : > { %p1282_p0 = pnand %p1281_p13, %p1275_p8 }
 0x36b   : > { %1285 = shalt.err (!%p1282_p0)
}
 0x36c   : > { %s1328_s18 = smov 128   ;;  %s1329_s19 = smov 8  }
 0x36d   : > { %1186 = dma.vmem_to_hbm [thread:$0]  (%p1408_p5), %s1540_s15, 256, %s1545_s22, %s1548_s20, %s1328_s18, %s1328_s18, %s1329_s19  }
 0x36e PF: > { %p1192_p1 = scmp.ge.s32.totalorder %s1320_s27, 2  ;;  %s954_s21 = sand.u32 1, %s1308_s24  }
 0x36f   : > { %s955_s28 = scalar_lea.sflag [#allocation3], %s954_s21 }
 0x370   : > { %p1189_p2 = pnand %p1192_p1, %p1412_p6 }
 0x372   : > { %1303 = dma.done.wait (!%p1189_p2), %s955_s28, 256  }
 0x373   : > { %1305 = vsyncadd (!%p1189_p2), %s955_s28, 4294967040  ;;  %p18_p3 = scmp.ge.s32.totalorder %s1395_s30, 4   ;;  %s1599_s24 = smov %s1312_s25 }
 0x374   : > { %s1600_s25 = smov %s1316_s26  ;;  %s1601_s26 = smov %s1406_s10 }
 0x375   : > { %s1602_s27 = smov %s1395_s30  ;;  %20 = sbr.rel (!%p18_p3) target bundleno = 3 (0x3), region = 97 }
 0x37c   :  { %968 = vsyncpa [#allocation3], 1 }
 0x37d   :  { %970 = vsyncpa [#allocation3 + $0x1], 1 }

// kernel: _lambda_.14
= control target key start
LH: loop header
LB: loop body
LE: loop exit
PB: predicated region body
PF: predicated region fallthrough
CT: control target
= control target key end

     0   :  { %s931_s15 = smov 0   ;;  %s1052_s0 = inlined_call_operand.vmem [shape: f32[3,24,16], index: 0, kind: input, shape index: {}]   ;;  %s1053_s1 = inlined_call_operand.vmem [shape: f32[3,24,1], index: 1, kind: input, shape index: {}]   ;;  %s1054_s2 = inlined_call_operand.vmem [shape: f32[24,25], index: 2, kind: input, shape index: {}]   ;;  %s1055_s3 = inlined_call_operand.vmem [shape: f32[2,16,18], index: 3, kind: input, shape index: {}]   ;;  %s1056_s4 = inlined_call_operand.vmem [shape: f32[2,24,16], index: 4, kind: output, shape index: {}]  }
   0x1 LB: > { %s730_s16 = sadd.s32 4294967295, %s897_s15   ;;  %p734_p0 = scmp.ge.s32.totalorder %s897_s15, 1  ;;  %s897_s15 = sphi %s931_s15, %s14_s15  }
   0x2   : > { %p162_p1 = scmp.lt.s32.totalorder %s897_s15, 3 }
   0x4   : > { %p163_p2 = pnand %p734_p0, %p162_p1 }
   0x5   : > { %p188_p3 = scmp.lt.s32.totalorder (!%p163_p2), %s730_s16, 1  ;;  %v899_v0 = vmov (!%p163_p2), 0.0|0.0   ;;  %vm900_vm0 = vmmov (!%p163_p2), 0   ;;  %v901_v1 = vmov (!%p163_p2), 0.0   ;;  %s902_s21 = smov (!%p163_p2), 127   ;;  %v198_v6 = vld [vmem:[%s1052_s0] sm:$0xff] (!%p163_p2) }
   0x6   : > { %166 = sbr.rel (%p163_p2) target bundleno = 600 (0x258), region = 36  ;;  %843 = vmatprep.subr.bf16.mxu0 (!%p163_p2), %v899_v0  ;;  %803 = vmatprep.mubr.msk.f32.mxu0 (!%p163_p2), %vm900_vm0, %v901_v1  ;;  %vm215_vm1 = vcmask (!%p163_p2), 130048   ;;  %s903_s24 = smov (!%p163_p2), 126   ;;  %v199_v7 = vld [vmem:[%s1052_s0 + $0x8] sm:$0xff] (!%p163_p2)  ;;  %v496_v8 = vld [vmem:[%s1053_s1] sm:$0xff] (!%p163_p2)  ;;  %v904_v9 = vmov (!%p163_p2), 0  }
   0x7   : > { %840 = vmatprep.subr.bf16.mxu1 (!%p163_p2), %v899_v0  ;;  %790 = vmatprep.mubr.msk.f32.mxu1 (!%p163_p2), %vm900_vm0, %v901_v1  ;;  %v200_v10 = vld [vmem:[%s1052_s0 + $0x10] sm:$0xff] (!%p163_p2)  ;;  %v753_v11 = vld [vmem:[%s1053_s1 + $0x18] sm:$0xff] (!%p163_p2)  ;;  %v497_v12 = vld [vmem:[%s1053_s1 + $0x8] sm:$0xff] (!%p163_p2)  ;;  %v905_v35 = vmov (!%p163_p2), 24   ;;  %vm585_vm5 = vcmask (!%p163_p2), 195584  }
   0x8   : > { %887 = vset.pattern.permute.xlu1 (!%p163_p2), %v904_v9  ;;  %888 = vset.pattern.permute.xlu0 (!%p163_p2), %v904_v9  ;;  %v757_v13 = vld [vmem:[%s1053_s1 + $0x38] sm:$0xff] (!%p163_p2)  ;;  %v754_v14 = vld [vmem:[%s1053_s1 + $0x20] sm:$0xff] (!%p163_p2)  ;;  %v755_v15 = vld [vmem:[%s1053_s1 + $0x28] sm:$0xff] (!%p163_p2) }
   0x9   : > { %501 = vperm.xlu1 (!%p163_p2), %887, %v496_v8   ;;  %v756_v16 = vld [vmem:[%s1053_s1 + $0x30] sm:$0xff] (!%p163_p2)  ;;  %v758_v18 = vld [vmem:[%s1053_s1 + $0x40] sm:$0xff] (!%p163_p2)  ;;  %v738_v26 = vld [vmem:[%s1052_s0 + $0x18] sm:$0xff] (!%p163_p2) }
   0xa   : > { %v498_v17 = vld [vmem:[%s1053_s1 + $0x10] sm:$0xff] (!%p163_p2)  ;;  %v739_v29 = vld [vmem:[%s1052_s0 + $0x20] sm:$0xff] (!%p163_p2)  ;;  %v748_v30 = vld [vmem:[%s1052_s0 + $0x38] sm:$0xff] (!%p163_p2) }
   0xb   : > { %v747_v28 = vld [vmem:[%s1052_s0 + $0x30] sm:$0xff] (!%p163_p2)  ;;  %v740_v31 = vld [vmem:[%s1052_s0 + $0x28] sm:$0xff] (!%p163_p2)  ;;  %v749_v32 = vld [vmem:[%s1052_s0 + $0x40] sm:$0xff] (!%p163_p2) }
   0xc   : > { %v567_v33 = vld [vmem:[%s1054_s2] sm:$0xff] (!%p163_p2)  ;;  %v568_v34 = vld [vmem:[%s1054_s2 + $0x8] sm:$0xff] (!%p163_p2)  ;;  %v569_v36 = vld [vmem:[%s1054_s2 + $0x10] sm:$0xff] (!%p163_p2) }
   0xd   : > { %s1058_s16 = smov (!%p188_p3, %s730_s16), 1  ;;  %506 = vperm.xlu1 %887, %v497_v12  }
   0xe   : > { %s764_s17 = sshll.u32 %s1058_s16, 4 }
   0xf   : > { %s192_s20 = scalar_lea.vmem %s1055_s3, %s764_s17  ;;  %s861_s17 = smul.u32 24, %s1058_s16 }
  0x10   : > { %v201_v2 = vld [vmem:[%s192_s20] sm:$0xff]  ;;  %v202_v3 = vld [vmem:[%s192_s20 + $0x8] sm:$0xff] }
  0x11   : > { %v877_v4 = vpack.i.bf16 %v202_v3, %v201_v2  ;;  %v844_v5 = vpack.c.bf16 %v202_v3, %v201_v2  ;;  %528 = vperm.xlu1 %887, %v754_v14   ;;  %s197_s20 = scalar_lea.vmem %s1056_s4, %s861_s17 }
  0x13   : > { %878 = vrot.lane.b32.xlu0 %v877_v4, %s902_s21  ;;  %845 = vmatpush3.bf16.msra.mxu0 %v844_v5 }
  0x14   : > { %846 = vmatprep.subr.bf16.mxu0 %v899_v0 }
  0x15   : > { %548 = vperm.xlu1 %887, %v756_v16  }
  0x16   : > { %804 = vmatmul.mubr.msk.f32.vlgmr.msra.gmra.mrb[0].mxu0 %vm215_vm1, %v198_v6 }
  0x17   : > { %883 = vrot.lane.b32.xlu0 %v877_v4, %s903_s24  ;;  %806 = vmatprep.mubr.msk.f32.mxu0 %vm900_vm0, %v901_v1 }
  0x19   : > { %511 = vperm.xlu1 %887, %v498_v17  }
  0x1a   : > { %807 = vmatmul.mubr.msk.f32.gmra.mrb[2].mxu0 %vm215_vm1, %v199_v7 }
  0x1b   : > { %809 = vmatprep.mubr.msk.f32.mxu0 %vm900_vm0, %v901_v1  ;;  %523 = vperm.xlu0 %888, %v753_v11  }
  0x1d   : > { %558 = vperm.xlu1 %887, %v758_v18  }
  0x1e   : > { %810 = vmatmul.mubr.msk.f32.gmra.mrb[4].mxu0 %vm215_vm1, %v200_v10 }
  0x1f   : > { %816 = vmatprep.mubr.msk.f32.mxu0 %vm900_vm0, %v901_v1  ;;  %553 = vperm.xlu0 %888, %v757_v13  }
  0x21   : > { %890 = vset.pattern.permute.xlu1 %v905_v35 }
  0x22   : > { %577 = vperm.xlu1 %890, %v568_v34  }
  0x23   : > { %533 = vperm.xlu0 %888, %v755_v15  }
  0x26   : > { %582 = vperm.xlu1 %890, %v569_v36  }
  0x27   : > { %889 = vset.pattern.permute.xlu0 %v905_v35 }
  0x28   : > { %572 = vperm.xlu0 %889, %v567_v33  }
  0x85   : > { %v879_v19 = vpop.permute.xlu0 %878 }
  0x86   : > { %v881_v20 = vunpack.i.h.bf16 %v879_v19  ;;  %v880_v21 = vunpack.i.l.bf16 %v879_v19 }
  0x88   : > { %v841_v22 = vpack.c.bf16 %v881_v20, %v880_v21  ;;  %v502_v37 = vpop.permute.xlu1 %501 }
  0x89   : > { %v884_v23 = vpop.permute.xlu0 %883 }
  0x8a   : > { %v886_v24 = vunpack.i.h.bf16 %v884_v23  ;;  %v885_v25 = vunpack.i.l.bf16 %v884_v23  ;;  %842 = vmatpush3.bf16.msra.mxu1 %v841_v22 }
  0x8b   : > { %849 = vmatprep.subr.bf16.mxu1 %v899_v0 }
  0x8c   : > { %v847_v27 = vpack.c.bf16 %v886_v24, %v885_v25  ;;  %v507_v38 = vpop.permute.xlu1 %506 }
  0x8d   : > { %791 = vmatmul.mubr.msk.f32.vlgmr.msra.gmra.mrb[0].mxu1 %vm215_vm1, %v738_v26 }
  0x8e   : > { %848 = vmatpush3.bf16.msra.mxu0 %v847_v27  ;;  %793 = vmatprep.mubr.msk.f32.mxu1 %vm900_vm0, %v901_v1 }
  0x90   : > { %v529_v39 = vpop.permute.xlu1 %528 }
  0x91   : > { %817 = vmatmul.mubr.msk.f32.vlgmr.msra.gmra.mrb[0].mxu0 %vm215_vm1, %v747_v28  ;;  %794 = vmatmul.mubr.msk.f32.gmra.mrb[2].mxu1 %vm215_vm1, %v739_v29 }
  0x92   : > { %819 = vmatprep.mubr.msk.f32.mxu0 %vm900_vm0, %v901_v1  ;;  %796 = vmatprep.mubr.msk.f32.mxu1 %vm900_vm0, %v901_v1 }
  0x94   : > { %v549_v48 = vpop.permute.xlu1 %548 }
  0x95   : > { %820 = vmatmul.mubr.msk.f32.gmra.mrb[2].mxu0 %vm215_vm1, %v748_v30  ;;  %797 = vmatmul.mubr.msk.f32.gmra.mrb[4].mxu1 %vm215_vm1, %v740_v31 }
  0x96   : > { %822 = vmatprep.mubr.msk.f32.mxu0 %vm900_vm0, %v901_v1  ;;  %831 = vmatprep.mubr.msk.f32.mxu1 %vm900_vm0, %v901_v1 }
  0x98   : > { %v512_v58 = vpop.permute.xlu1 %511 }
  0x99   : > { %823 = vmatmul.mubr.msk.f32.gmra.mrb[4].mxu0 %vm215_vm1, %v749_v32 }
  0x9a   : > { %v524_v42 = vpop.permute.xlu0 %523 }
  0x9c   : > { %v559_v7 = vpop.permute.xlu1 %558 }
  0x9e   : > { %v554_v56 = vpop.permute.xlu0 %553 }
  0xa1   : > { %v578_v15 = vpop.permute.xlu1 %577 }
  0xa2   : > { %v534_v3 = vpop.permute.xlu0 %533 }
  0xa5   : > { %v583_v19 = vpop.permute.xlu1 %582 }
  0xa7   : > { %v573_v11 = vpop.permute.xlu0 %572 }
 0x160   : > { %v291_v40 = vpop.f32.mrb[0].mxu1 }
 0x161   : > { %v792_v41 = vpop.f32.mrb[1].mxu1 }
 0x164   : > { %v479_v43 = vpop.f32.mrb[0].mxu0  ;;  %v296_v44 = vpop.f32.mrb[2].mxu1 }
 0x165   : > { %v852_v45 = vadd.f32 %v479_v43, %v291_v40  ;;  %v818_v46 = vpop.f32.mrb[1].mxu0  ;;  %v795_v47 = vpop.f32.mrb[3].mxu1 }
 0x167   : > { %v514_v49 = vmul.f32 %v852_v45, %v502_v37 }
 0x168   : > { %v484_v50 = vpop.f32.mrb[2].mxu0  ;;  %v301_v51 = vpop.f32.mrb[4].mxu1 }
 0x169   : > { %v536_v52 = vadd.f32 %v524_v42, %v514_v49  ;;  %v853_v53 = vadd.f32 %v484_v50, %v296_v44  ;;  %v821_v54 = vpop.f32.mrb[3].mxu0  ;;  %v798_v55 = vpop.f32.mrb[5].mxu1 }
 0x16b   : > { %v515_v57 = vmul.f32 %v853_v53, %v507_v38  ;;  %v561_v60 = vmul.f32 %v549_v48, %v536_v52  ;;  %vm539_vm2 = vcmp.gt.f32.partialorder %v536_v52, 0.0 }
 0x16c   : > { %v489_v59 = vpop.f32.mrb[4].mxu0 }
 0x16d   : > { %v537_v61 = vadd.f32 %v529_v39, %v515_v57  ;;  %v854_v62 = vadd.f32 %v489_v59, %v301_v51  ;;  %v824_v63 = vpop.f32.mrb[5].mxu0  ;;  %v564_v5 = vsel %vm539_vm2, %v536_v52, %v561_v60 }
 0x16f   : > { %vm540_vm3 = vcmp.gt.f32.partialorder %v537_v61, 0.0  ;;  %v562_v0 = vmul.f32 %v554_v56, %v537_v61  ;;  %v516_v2 = vmul.f32 %v854_v62, %v512_v58 }
 0x171   : > { %v538_v4 = vadd.f32 %v534_v3, %v516_v2  ;;  %v565_v6 = vsel %vm540_vm3, %v537_v61, %v562_v0 }
 0x172   : > { %v850_v8 = vpack.c.bf16 %v565_v6, %v564_v5 }
 0x173   : > { %v563_v9 = vmul.f32 %v559_v7, %v538_v4  ;;  %vm541_vm4 = vcmp.gt.f32.partialorder %v538_v4, 0.0 }
 0x174   : > { %851 = vmatpush3.bf16.msra.mxu1 %v850_v8 }
 0x175   : > { %829 = vmatprep.subr.mxu1 %v901_v1  ;;  %v566_v10 = vsel %vm541_vm4, %v538_v4, %v563_v9 }
 0x178   : > { %830 = vmatpush3.msra.mxu1 %v566_v10 }
 0x179   : > { %832 = vmatmul.mubr.msk.f32.vlgmr.msra.gmra.mrb[6].mxu1 %vm585_vm5, %v567_v33 }
 0x17a   : > { %834 = vmatprep.mubr.msk.f32.mxu1 %vm900_vm0, %v901_v1 }
 0x17d   : > { %835 = vmatmul.mubr.msk.f32.gmra.mrb[8].mxu1 %vm585_vm5, %v568_v34 }
 0x17e   : > { %837 = vmatprep.mubr.msk.f32.mxu1 %vm900_vm0, %v901_v1 }
 0x181   : > { %838 = vmatmul.mubr.msk.f32.gmra.mrb[10].mxu1 %vm585_vm5, %v569_v36 }
 0x24c   : > { %v658_v12 = vpop.f32.mrb[6].mxu1 }
 0x24d   : > { %v659_v13 = vadd.f32 %v658_v12, %v573_v11  ;;  %v833_v14 = vpop.f32.mrb[7].mxu1 }
 0x24f   : > { %672 = vst.msk [vmem:[%s197_s20] sm:$0xff] %vm215_vm1, %v659_v13 }
 0x250   : > { %v663_v16 = vpop.f32.mrb[8].mxu1 }
 0x251   : > { %v664_v17 = vadd.f32 %v663_v16, %v578_v15  ;;  %v836_v18 = vpop.f32.mrb[9].mxu1 }
 0x253   : > { %673 = vst.msk [vmem:[%s197_s20 + $0x8] sm:$0xff] %vm215_vm1, %v664_v17 }
 0x254   : > { %v668_v1 = vpop.f32.mrb[10].mxu1 }
 0x255   : > { %v669_v20 = vadd.f32 %v668_v1, %v583_v19  ;;  %v839_v21 = vpop.f32.mrb[11].mxu1 }
 0x257   : > { %674 = vst.msk [vmem:[%s197_s20 + $0x10] sm:$0xff] %vm215_vm1, %v669_v20 }
 0x258 PF: > { %s14_s15 = sadd.s32 1, %s897_s15  }
 0x259   : > { %p11_p4 = scmp.ge.s32.totalorder %s14_s15, 4  }
 0x25b   :  { %13 = sbr.rel (!%p11_p4) target bundleno = 1 (0x1), region = 70 }

// kernel: _lambda_.15
= control target key start
LH: loop header
LB: loop body
LE: loop exit
PB: predicated region body
PF: predicated region fallthrough
CT: control target
= control target key end

     0   :  { %s916_s12 = smov 0   ;;  %s1000_s0 = inlined_call_operand.vmem [shape: f32[5,16,16], index: 0, kind: input, shape index: {}]   ;;  %s1001_s1 = inlined_call_operand.vmem [shape: f32[3,16,1], index: 1, kind: input, shape index: {}]   ;;  %s1002_s2 = inlined_call_operand.vmem [shape: f32[2,16,20], index: 2, kind: input, shape index: {}]   ;;  %s1003_s3 = inlined_call_operand.vmem [shape: f32[2,16,16], index: 3, kind: output, shape index: {}]  }
   0x1 LB: > { %s730_s13 = sadd.s32 4294967295, %s889_s12   ;;  %p734_p0 = scmp.ge.s32.totalorder %s889_s12, 1  ;;  %s889_s12 = sphi %s916_s12, %s13_s12  }
   0x2   : > { %p137_p1 = scmp.lt.s32.totalorder %s889_s12, 3 }
   0x4   : > { %p138_p2 = pnand %p734_p0, %p137_p1 }
   0x5   : > { %p161_p3 = scmp.lt.s32.totalorder (!%p138_p2), %s730_s13, 1  ;;  %vm186_vm0 = vcmask (!%p138_p2), 130048   ;;  %v745_v0 = vld [vmem:[%s1000_s0 + $0x20] sm:$0xff] (!%p138_p2)  ;;  %v739_v1 = vld [vmem:[%s1000_s0 + $0x10] sm:$0xff] (!%p138_p2)  ;;  %s891_s22 = smov (!%p138_p2), 126   ;;  %v626_v6 = vld [vmem:[%s1001_s1 + $0x8] sm:$0xff] (!%p138_p2) }
   0x6   : > { %141 = sbr.rel (%p138_p2) target bundleno = 381 (0x17d), region = 32  ;;  %803 = vmatprep.mubr.msk.f32.mxu0 (!%p138_p2), %vm186_vm0, %v745_v0  ;;  %789 = vmatprep.mubr.msk.f32.mxu1 (!%p138_p2), %vm186_vm0, %v739_v1  ;;  %s892_s23 = smov (!%p138_p2), 125   ;;  %v625_v7 = vld [vmem:[%s1001_s1] sm:$0xff] (!%p138_p2)  ;;  %v895_v8 = vmov (!%p138_p2), 0   ;;  %v757_v9 = vld [vmem:[%s1001_s1 + $0x10] sm:$0xff] (!%p138_p2)  ;;  %v758_v10 = vld [vmem:[%s1001_s1 + $0x18] sm:$0xff] (!%p138_p2) }
   0x7   : > { %s893_s24 = smov (!%p138_p2), 127   ;;  %s894_s25 = smov (!%p138_p2), 124   ;;  %882 = vset.pattern.permute.xlu1 (!%p138_p2), %v895_v8  ;;  %881 = vset.pattern.permute.xlu0 (!%p138_p2), %v895_v8  ;;  %v759_v11 = vld [vmem:[%s1001_s1 + $0x20] sm:$0xff] (!%p138_p2)  ;;  %v760_v12 = vld [vmem:[%s1001_s1 + $0x28] sm:$0xff] (!%p138_p2)  ;;  %v749_v30 = vld [vmem:[%s1000_s0 + $0x30] sm:$0xff] (!%p138_p2) }
   0x8   : > { %v746_v27 = vld [vmem:[%s1000_s0 + $0x28] sm:$0xff] (!%p138_p2)  ;;  %v740_v31 = vld [vmem:[%s1000_s0 + $0x18] sm:$0xff] (!%p138_p2)  ;;  %v171_v32 = vld [vmem:[%s1000_s0] sm:$0xff] (!%p138_p2) }
   0x9   : > { %v750_v33 = vld [vmem:[%s1000_s0 + $0x38] sm:$0xff] (!%p138_p2)  ;;  %v753_v34 = vld [vmem:[%s1000_s0 + $0x40] sm:$0xff] (!%p138_p2)  ;;  %v172_v35 = vld [vmem:[%s1000_s0 + $0x8] sm:$0xff] (!%p138_p2) }
   0xa   : > { %v754_v36 = vld [vmem:[%s1000_s0 + $0x48] sm:$0xff] (!%p138_p2) }
   0xd   : > { %s1005_s13 = smov (!%p161_p3, %s730_s13), 1 }
   0xe   : > { %s763_s16 = sshll.u32 %s1005_s13, 4 }
   0xf   : > { %s165_s19 = scalar_lea.vmem %s1002_s2, %s763_s16  ;;  %s170_s5 = scalar_lea.vmem %s1003_s3, %s763_s16 }
  0x10   : > { %v173_v2 = vld [vmem:[%s165_s19] sm:$0xff]  ;;  %v174_v3 = vld [vmem:[%s165_s19 + $0x8] sm:$0xff] }
  0x11   : > { %v861_v4 = vpack.i.bf16 %v174_v3, %v173_v2  ;;  %v824_v5 = vpack.c.bf16 %v174_v3, %v173_v2 }
  0x13   : > { %862 = vrot.lane.b32.xlu0 %v861_v4, %s891_s22  ;;  %872 = vrot.lane.b32.xlu1 %v861_v4, %s892_s23 }
  0x17   : > { %867 = vrot.lane.b32.xlu0 %v861_v4, %s893_s24  ;;  %877 = vrot.lane.b32.xlu1 %v861_v4, %s894_s25 }
  0x1b   : > { %634 = vperm.xlu1 %882, %v626_v6   ;;  %629 = vperm.xlu0 %881, %v625_v7  }
  0x1f   : > { %644 = vperm.xlu1 %882, %v757_v9   ;;  %649 = vperm.xlu0 %881, %v758_v10  }
  0x23   : > { %661 = vperm.xlu1 %882, %v759_v11   ;;  %666 = vperm.xlu0 %881, %v760_v12  }
  0x85   : > { %v863_v13 = vpop.permute.xlu0 %862  ;;  %v873_v14 = vpop.permute.xlu1 %872 }
  0x86   : > { %v865_v15 = vunpack.i.h.bf16 %v863_v13  ;;  %v864_v16 = vunpack.i.l.bf16 %v863_v13  ;;  %v875_v17 = vunpack.i.h.bf16 %v873_v14  ;;  %v874_v18 = vunpack.i.l.bf16 %v873_v14 }
  0x88   : > { %v832_v19 = vpack.c.bf16 %v875_v17, %v874_v18  ;;  %v828_v20 = vpack.c.bf16 %v865_v15, %v864_v16 }
  0x89   : > { %v868_v21 = vpop.permute.xlu0 %867  ;;  %v878_v22 = vpop.permute.xlu1 %877 }
  0x8a   : > { %v870_v23 = vunpack.i.h.bf16 %v868_v21  ;;  %v869_v24 = vunpack.i.l.bf16 %v868_v21  ;;  %829 = vmatprep.subr.bf16.mxu0 %v828_v20  ;;  %v880_v25 = vunpack.i.h.bf16 %v878_v22  ;;  %v879_v26 = vunpack.i.l.bf16 %v878_v22 }
  0x8b   : > { %831 = vmatpush3.bf16.msra.mxu0 %v828_v20 }
  0x8c   : > { %v820_v28 = vpack.c.bf16 %v870_v23, %v869_v24  ;;  %833 = vmatprep.subr.bf16.mxu0 %v832_v19  ;;  %v836_v29 = vpack.c.bf16 %v880_v25, %v879_v26 }
  0x8e   : > { %821 = vmatprep.subr.bf16.mxu1 %v820_v28  ;;  %804 = vmatmul.mubr.msk.f32.vlgmr.msra.gmra.mrb[0].mxu0 %vm186_vm0, %v746_v27 }
  0x8f   : > { %823 = vmatpush3.bf16.msra.mxu1 %v820_v28  ;;  %835 = vmatpush3.bf16.msra.mxu0 %v832_v19 }
  0x90   : > { %810 = vmatprep.mubr.msk.f32.mxu0 %vm186_vm0, %v749_v30  ;;  %837 = vmatprep.subr.bf16.mxu0 %v836_v29 }
  0x91   : > { %825 = vmatprep.subr.bf16.mxu1 %v824_v5 }
  0x92   : > { %790 = vmatmul.mubr.msk.f32.vlgmr.msra.gmra.mrb[0].mxu1 %vm186_vm0, %v740_v31 }
  0x93   : > { %827 = vmatpush3.bf16.msra.mxu1 %v824_v5  ;;  %796 = vmatprep.mubr.msk.f32.mxu1 %vm186_vm0, %v171_v32 }
  0x96   : > { %811 = vmatmul.mubr.msk.f32.vlgmr.msra.gmra.mrb[0].mxu0 %vm186_vm0, %v750_v33 }
  0x97   : > { %839 = vmatpush3.bf16.msra.mxu0 %v836_v29  ;;  %817 = vmatprep.mubr.msk.f32.mxu0 %vm186_vm0, %v753_v34 }
  0x9a   : > { %797 = vmatmul.mubr.msk.f32.vlgmr.msra.gmra.mrb[0].mxu1 %vm186_vm0, %v172_v35  ;;  %v630_v37 = vpop.permute.xlu0 %629  ;;  %v635_v38 = vpop.permute.xlu1 %634 }
  0x9e   : > { %818 = vmatmul.mubr.msk.f32.vlgmr.msra.gmra.mrb[0].mxu0 %vm186_vm0, %v754_v36  ;;  %v650_v41 = vpop.permute.xlu0 %649  ;;  %v645_v43 = vpop.permute.xlu1 %644 }
  0xa2   : > { %v667_v50 = vpop.permute.xlu0 %666  ;;  %v662_v52 = vpop.permute.xlu1 %661 }
 0x16d   : > { %v798_v39 = vpop.f32.mrb[0].mxu1 }
 0x16e   : > { %v340_v40 = vpop.f32.mrb[1].mxu1 }
 0x171   : > { %v819_v42 = vpop.f32.mrb[0].mxu0 }
 0x172   : > { %v840_v44 = vadd.f32 %v819_v42, %v798_v39  ;;  %v614_v45 = vpop.f32.mrb[1].mxu0 }
 0x173   : > { %v841_v46 = vadd.f32 %v614_v45, %v340_v40 }
 0x174   : > { %v638_v47 = vmul.f32 %v840_v44, %v635_v38 }
 0x175   : > { %v637_v48 = vmul.f32 %v841_v46, %v630_v37 }
 0x176   : > { %v653_v49 = vadd.f32 %v650_v41, %v638_v47 }
 0x177   : > { %v652_v51 = vadd.f32 %v645_v43, %v637_v48 }
 0x178   : > { %vm655_vm1 = vcmp.gt.f32.partialorder %v653_v49, 0.0  ;;  %v670_v53 = vmul.f32 %v667_v50, %v653_v49 }
 0x179   : > { %vm654_vm2 = vcmp.gt.f32.partialorder %v652_v51, 0.0  ;;  %v669_v54 = vmul.f32 %v662_v52, %v652_v51 }
 0x17a   : > { %v672_v55 = vsel %vm655_vm1, %v653_v49, %v670_v53 }
 0x17b   : > { %674 = vst.msk [vmem:[%s170_s5 + $0x8] sm:$0xff] %vm186_vm0, %v672_v55  ;;  %v671_v56 = vsel %vm654_vm2, %v652_v51, %v669_v54 }
 0x17c   : > { %673 = vst.msk [vmem:[%s170_s5] sm:$0xff] %vm186_vm0, %v671_v56 }
 0x17d PF: > { %s13_s12 = sadd.s32 1, %s889_s12  }
 0x17e   : > { %p10_p4 = scmp.ge.s32.totalorder %s13_s12, 4  }
 0x180   :  { %12 = sbr.rel (!%p10_p4) target bundleno = 1 (0x1), region = 68 }

// kernel: _lambda_.16
= control target key start
LH: loop header
LB: loop body
LE: loop exit
PB: predicated region body
PF: predicated region fallthrough
CT: control target
= control target key end

     0   :  { %s874_s12 = smov 0   ;;  %s949_s0 = inlined_call_operand.vmem [shape: f32[4,16,32], index: 0, kind: input, shape index: {}]   ;;  %s950_s1 = inlined_call_operand.vmem [shape: f32[3,16,1], index: 1, kind: input, shape index: {}]   ;;  %s951_s2 = inlined_call_operand.vmem [shape: f32[2,32,11], index: 2, kind: input, shape index: {}]   ;;  %s952_s3 = inlined_call_operand.vmem [shape: f32[2,16,8], index: 3, kind: output, shape index: {}]  }
   0x1 LB: > { %s661_s13 = sadd.s32 4294967295, %s848_s12   ;;  %p665_p0 = scmp.ge.s32.totalorder %s848_s12, 1  ;;  %s848_s12 = sphi %s874_s12, %s13_s12  }
   0x2   : > { %p137_p1 = scmp.lt.s32.totalorder %s848_s12, 3 }
   0x4   : > { %p138_p2 = pnand %p665_p0, %p137_p1 }
   0x5   : > { %p161_p3 = scmp.lt.s32.totalorder (!%p138_p2), %s661_s13, 1  ;;  %v670_v0 = vld [vmem:[%s949_s0 + $0x10] sm:$0xff] (!%p138_p2)  ;;  %vm196_vm0 = vcmask (!%p138_p2), 261120   ;;  %s850_s20 = smov (!%p138_p2), 127   ;;  %v676_v8 = vld [vmem:[%s949_s0 + $0x20] sm:$0xff] (!%p138_p2)  ;;  %v556_v10 = vld [vmem:[%s950_s1 + $0x8] sm:$0xff] (!%p138_p2) }
   0x6   : > { %141 = sbr.rel (%p138_p2) target bundleno = 381 (0x17d), region = 32  ;;  %724 = vmatprep.mubr.msk.f32.mxu1 (!%p138_p2), %vm196_vm0, %v670_v0  ;;  %746 = vmatprep.mubr.msk.f32.mxu0 (!%p138_p2), %vm196_vm0, %v676_v8  ;;  %s851_s23 = smov (!%p138_p2), 126   ;;  %v555_v11 = vld [vmem:[%s950_s1] sm:$0xff] (!%p138_p2)  ;;  %v853_v12 = vmov (!%p138_p2), 0   ;;  %v684_v13 = vld [vmem:[%s950_s1 + $0x10] sm:$0xff] (!%p138_p2)  ;;  %v685_v14 = vld [vmem:[%s950_s1 + $0x18] sm:$0xff] (!%p138_p2) }
   0x7   : > { %s852_s24 = smov (!%p138_p2), 125   ;;  %841 = vset.pattern.permute.xlu1 (!%p138_p2), %v853_v12  ;;  %840 = vset.pattern.permute.xlu0 (!%p138_p2), %v853_v12  ;;  %v686_v15 = vld [vmem:[%s950_s1 + $0x20] sm:$0xff] (!%p138_p2)  ;;  %v687_v16 = vld [vmem:[%s950_s1 + $0x28] sm:$0xff] (!%p138_p2)  ;;  %v671_v37 = vld [vmem:[%s949_s0 + $0x18] sm:$0xff] (!%p138_p2)  ;;  %vm603_vm2 = vcmask (!%p138_p2), 64512  }
   0x8   : > { %v171_v41 = vld [vmem:[%s949_s0] sm:$0xff] (!%p138_p2)  ;;  %v677_v42 = vld [vmem:[%s949_s0 + $0x28] sm:$0xff] (!%p138_p2)  ;;  %v680_v44 = vld [vmem:[%s949_s0 + $0x30] sm:$0xff] (!%p138_p2) }
   0x9   : > { %v172_v45 = vld [vmem:[%s949_s0 + $0x8] sm:$0xff] (!%p138_p2)  ;;  %v681_v46 = vld [vmem:[%s949_s0 + $0x38] sm:$0xff] (!%p138_p2) }
   0xd   : > { %s954_s13 = smov (!%p161_p3, %s661_s13), 1 }
   0xe   : > { %s690_s14 = sshll.u32 %s954_s13, 5 }
   0xf   : > { %s165_s17 = scalar_lea.vmem %s951_s2, %s690_s14 }
  0x10   : > { %v173_v1 = vld [vmem:[%s165_s17] sm:$0xff]  ;;  %v174_v2 = vld [vmem:[%s165_s17 + $0x8] sm:$0xff]  ;;  %v175_v3 = vld [vmem:[%s165_s17 + $0x10] sm:$0xff] }
  0x11   : > { %v810_v4 = vpack.i.bf16 %v174_v2, %v173_v1  ;;  %v176_v5 = vld [vmem:[%s165_s17 + $0x18] sm:$0xff]  ;;  %v768_v6 = vpack.c.bf16 %v174_v2, %v173_v1 }
  0x12   : > { %v820_v7 = vpack.i.bf16 %v176_v5, %v175_v3  ;;  %v895_v9 = vpack.c.bf16 %v176_v5, %v175_v3 }
  0x13   : > { %811 = vrot.lane.b32.xlu0 %v810_v4, %s850_s20 }
  0x14   : > { %821 = vrot.lane.b32.xlu1 %v820_v7, %s850_s20 }
  0x17   : > { %816 = vrot.lane.b32.xlu0 %v810_v4, %s851_s23 }
  0x18   : > { %826 = vrot.lane.b32.xlu1 %v820_v7, %s851_s23 }
  0x1b   : > { %831 = vrot.lane.b32.xlu0 %v810_v4, %s852_s24 }
  0x1c   : > { %836 = vrot.lane.b32.xlu1 %v820_v7, %s852_s24  ;;  %s691_s24 = sshll.u32 %s954_s13, 4 }
  0x1d   : > { %s170_s27 = scalar_lea.vmem %s952_s3, %s691_s24 }
  0x1f   : > { %559 = vperm.xlu0 %840, %v555_v11  }
  0x20   : > { %564 = vperm.xlu1 %841, %v556_v10  }
  0x23   : > { %579 = vperm.xlu0 %840, %v685_v14  }
  0x24   : > { %574 = vperm.xlu1 %841, %v684_v13  }
  0x27   : > { %596 = vperm.xlu0 %840, %v687_v16  }
  0x28   : > { %591 = vperm.xlu1 %841, %v686_v15  }
  0x85   : > { %v812_v17 = vpop.permute.xlu0 %811 }
  0x86   : > { %v814_v18 = vunpack.i.h.bf16 %v812_v17  ;;  %v813_v19 = vunpack.i.l.bf16 %v812_v17  ;;  %v822_v20 = vpop.permute.xlu1 %821 }
  0x87   : > { %v824_v21 = vunpack.i.h.bf16 %v822_v20  ;;  %v823_v22 = vunpack.i.l.bf16 %v822_v20 }
  0x88   : > { %v760_v23 = vpack.c.bf16 %v814_v18, %v813_v19 }
  0x89   : > { %v764_v24 = vpack.c.bf16 %v824_v21, %v823_v22  ;;  %v817_v25 = vpop.permute.xlu0 %816 }
  0x8a   : > { %v819_v26 = vunpack.i.h.bf16 %v817_v25  ;;  %v818_v27 = vunpack.i.l.bf16 %v817_v25  ;;  %761 = vmatprep.subr.bf16.mxu1 %v760_v23  ;;  %v827_v28 = vpop.permute.xlu1 %826 }
  0x8b   : > { %763 = vmatpush3.bf16.msra.mxu1 %v760_v23  ;;  %v829_v29 = vunpack.i.h.bf16 %v827_v28  ;;  %v828_v30 = vunpack.i.l.bf16 %v827_v28 }
  0x8c   : > { %765 = vmatprep.subr.bf16.mxu1 %v764_v24  ;;  %v776_v31 = vpack.c.bf16 %v819_v26, %v818_v27 }
  0x8d   : > { %v780_v32 = vpack.c.bf16 %v829_v29, %v828_v30  ;;  %v832_v33 = vpop.permute.xlu0 %831 }
  0x8e   : > { %777 = vmatprep.subr.bf16.mxu0 %v776_v31  ;;  %v834_v34 = vunpack.i.h.bf16 %v832_v33  ;;  %v833_v35 = vunpack.i.l.bf16 %v832_v33  ;;  %v837_v36 = vpop.permute.xlu1 %836 }
  0x8f   : > { %767 = vmatpush3.bf16.msra.mxu1 %v764_v24  ;;  %779 = vmatpush3.bf16.msra.mxu0 %v776_v31  ;;  %v839_v39 = vunpack.i.h.bf16 %v837_v36  ;;  %v838_v40 = vunpack.i.l.bf16 %v837_v36 }
  0x90   : > { %v784_v38 = vpack.c.bf16 %v834_v34, %v833_v35  ;;  %769 = vmatprep.subr.bf16.mxu1 %v768_v6  ;;  %781 = vmatprep.subr.bf16.mxu0 %v780_v32 }
  0x91   : > { %v788_v43 = vpack.c.bf16 %v839_v39, %v838_v40 }
  0x92   : > { %725 = vmatmul.mubr.msk.f32.vlgmr.msra.gmra.mrb[0].mxu1 %vm196_vm0, %v671_v37 }
  0x93   : > { %771 = vmatpush3.bf16.msra.mxu1 %v768_v6  ;;  %783 = vmatpush3.bf16.msra.mxu0 %v780_v32 }
  0x94   : > { %773 = vmatprep.subr.bf16.mxu1 %v895_v9  ;;  %785 = vmatprep.subr.bf16.mxu0 %v784_v38 }
  0x95   : > { %735 = vmatprep.mubr.msk.f32.mxu1 %vm196_vm0, %v171_v41 }
  0x96   : > { %747 = vmatmul.mubr.msk.f32.vlgmr.msra.gmra.mrb[0].mxu0 %vm196_vm0, %v677_v42 }
  0x97   : > { %775 = vmatpush3.bf16.msra.mxu1 %v895_v9  ;;  %787 = vmatpush3.bf16.msra.mxu0 %v784_v38 }
  0x98   : > { %789 = vmatprep.subr.bf16.mxu0 %v788_v43  ;;  %757 = vmatprep.mubr.msk.f32.mxu0 %vm196_vm0, %v680_v44 }
  0x9a   : > { %736 = vmatmul.mubr.msk.f32.vlgmr.msra.gmra.mrb[0].mxu1 %vm196_vm0, %v172_v45 }
  0x9b   : > { %791 = vmatpush3.bf16.msra.mxu0 %v788_v43 }
  0x9e   : > { %758 = vmatmul.mubr.msk.f32.vlgmr.msra.gmra.mrb[0].mxu0 %vm196_vm0, %v681_v46  ;;  %v560_v47 = vpop.permute.xlu0 %559 }
  0x9f   : > { %v565_v48 = vpop.permute.xlu1 %564 }
  0xa2   : > { %v580_v51 = vpop.permute.xlu0 %579 }
  0xa3   : > { %v575_v53 = vpop.permute.xlu1 %574 }
  0xa6   : > { %v597_v60 = vpop.permute.xlu0 %596 }
  0xa7   : > { %v592_v62 = vpop.permute.xlu1 %591 }
 0x16d   : > { %v737_v49 = vpop.f32.mrb[0].mxu1 }
 0x16e   : > { %v350_v50 = vpop.f32.mrb[1].mxu1 }
 0x171   : > { %v759_v52 = vpop.f32.mrb[0].mxu0 }
 0x172   : > { %v792_v54 = vadd.f32 %v759_v52, %v737_v49  ;;  %v544_v55 = vpop.f32.mrb[1].mxu0 }
 0x173   : > { %v793_v56 = vadd.f32 %v544_v55, %v350_v50 }
 0x174   : > { %v568_v57 = vmul.f32 %v792_v54, %v565_v48 }
 0x175   : > { %v567_v58 = vmul.f32 %v793_v56, %v560_v47 }
 0x176   : > { %v583_v59 = vadd.f32 %v580_v51, %v568_v57 }
 0x177   : > { %v582_v61 = vadd.f32 %v575_v53, %v567_v58 }
 0x178   : > { %vm585_vm1 = vcmp.gt.f32.partialorder %v583_v59, 0.0  ;;  %v600_v63 = vmul.f32 %v597_v60, %v583_v59 }
 0x179   : > { %vm584_vm3 = vcmp.gt.f32.partialorder %v582_v61, 0.0  ;;  %v599_v0 = vmul.f32 %v592_v62, %v582_v61 }
 0x17a   : > { %v602_v1 = vsel %vm585_vm1, %v583_v59, %v600_v63 }
 0x17b   : > { %605 = vst.msk [vmem:[%s170_s27 + $0x8] sm:$0xff] %vm603_vm2, %v602_v1  ;;  %v601_v2 = vsel %vm584_vm3, %v582_v61, %v599_v0 }
 0x17c   : > { %604 = vst.msk [vmem:[%s170_s27] sm:$0xff] %vm603_vm2, %v601_v2 }
 0x17d PF: > { %s13_s12 = sadd.s32 1, %s848_s12  }
 0x17e   : > { %p10_p4 = scmp.ge.s32.totalorder %s13_s12, 4  }
 0x180   :  { %12 = sbr.rel (!%p10_p4) target bundleno = 1 (0x1), region = 67 }

// kernel: _lambda_.17
= control target key start
LH: loop header
LB: loop body
LE: loop exit
PB: predicated region body
PF: predicated region fallthrough
CT: control target
= control target key end

     0   :  { %s1259_s24 = smov 0   ;;  %s1393_s0 = inlined_call_operand.vmem [shape: f32[3,32,16], index: 0, kind: input, shape index: {}]   ;;  %s1394_s1 = inlined_call_operand.vmem [shape: f32[2,32,1], index: 1, kind: input, shape index: {}]   ;;  %s1395_s2 = inlined_call_operand.vmem [shape: f32[16,17], index: 2, kind: input, shape index: {}]   ;;  %s1396_s3 = inlined_call_operand.vmem [shape: f32[16,17], index: 3, kind: input, shape index: {}]   ;;  %s1397_s4 = inlined_call_operand.vmem [shape: f32[2,16,10], index: 4, kind: input, shape index: {}]   ;;  %s1398_s5 = inlined_call_operand.vmem [shape: f32[2,16,8], index: 5, kind: input, shape index: {}]   ;;  %s1399_s6 = inlined_call_operand.vmem [shape: f32[2,16,8], index: 6, kind: output, shape index: {0}]   ;;  %s1400_s7 = inlined_call_operand.vmem [shape: f32[2,16,8], index: 7, kind: output, shape index: {1}]  }
   0x1 LB: > { %s1020_s25 = sadd.s32 4294967295, %s1212_s24   ;;  %p1024_p0 = scmp.ge.s32.totalorder %s1212_s24, 1  ;;  %s1212_s24 = sphi %s1259_s24, %s18_s24  }
   0x2   : > { %p250_p1 = scmp.lt.s32.totalorder %s1212_s24, 3 }
   0x4   : > { %p251_p2 = pnand %p1024_p0, %p250_p1 }
   0x5   : > { %p292_p3 = scmp.lt.s32.totalorder (!%p251_p2), %s1020_s25, 1  ;;  %v312_v0 = vld [vmem:[%s1393_s0] sm:$0xff] (!%p251_p2)  ;;  %vm331_vm0 = vcmask (!%p251_p2), 130048   ;;  %s1214_s11 = smov (!%p251_p2), 127   ;;  %v313_v6 = vld [vmem:[%s1393_s0 + $0x8] sm:$0xff] (!%p251_p2)  ;;  %v314_v7 = vld [vmem:[%s1393_s0 + $0x10] sm:$0xff] (!%p251_p2) }
   0x6   : > { %254 = sbr.rel (%p251_p2) target bundleno = 855 (0x357), region = 44  ;;  %1109 = vmatprep.mubr.msk.f32.mxu0 (!%p251_p2), %vm331_vm0, %v312_v0  ;;  %v1033_v1 = vld [vmem:[%s1393_s0 + $0x20] sm:$0xff] (!%p251_p2)  ;;  %v640_v8 = vld [vmem:[%s1394_s1 + $0x10] sm:$0xff] (!%p251_p2)  ;;  %s1215_s18 = smov (!%p251_p2), 126   ;;  %v315_v9 = vld [vmem:[%s1393_s0 + $0x18] sm:$0xff] (!%p251_p2)  ;;  %v1216_v10 = vmov (!%p251_p2), 0  }
   0x7   : > { %1099 = vmatprep.mubr.msk.f32.mxu1 (!%p251_p2), %vm331_vm0, %v1033_v1  ;;  %1190 = vset.pattern.permute.xlu1 (!%p251_p2), %v1216_v10  ;;  %v1055_v11 = vld [vmem:[%s1394_s1 + $0x30] sm:$0xff] (!%p251_p2)  ;;  %v1045_v12 = vld [vmem:[%s1393_s0 + $0x40] sm:$0xff] (!%p251_p2)  ;;  %v641_v13 = vld [vmem:[%s1394_s1 + $0x18] sm:$0xff] (!%p251_p2)  ;;  %v1217_v35 = vmov (!%p251_p2), 16   ;;  %s1218_s20 = smov (!%p251_p2), 1   ;;  %vm911_vm1 = vcmask (!%p251_p2), 64512  }
   0x8   : > { %654 = vperm.xlu1 (!%p251_p2), %1190, %v640_v8   ;;  %1191 = vset.pattern.permute.xlu0 (!%p251_p2), %v1216_v10  ;;  %v639_v14 = vld [vmem:[%s1394_s1 + $0x8] sm:$0xff] (!%p251_p2)  ;;  %v1056_v15 = vld [vmem:[%s1394_s1 + $0x38] sm:$0xff] (!%p251_p2)  ;;  %v638_v17 = vld [vmem:[%s1394_s1] sm:$0xff] (!%p251_p2) }
   0x9   : > { %v1054_v16 = vld [vmem:[%s1394_s1 + $0x28] sm:$0xff] (!%p251_p2)  ;;  %v1053_v18 = vld [vmem:[%s1394_s1 + $0x20] sm:$0xff] (!%p251_p2)  ;;  %v1035_v28 = vld [vmem:[%s1393_s0 + $0x30] sm:$0xff] (!%p251_p2) }
   0xa   : > { %v1034_v26 = vld [vmem:[%s1393_s0 + $0x28] sm:$0xff] (!%p251_p2)  ;;  %v1036_v30 = vld [vmem:[%s1393_s0 + $0x38] sm:$0xff] (!%p251_p2)  ;;  %v1047_v31 = vld [vmem:[%s1393_s0 + $0x50] sm:$0xff] (!%p251_p2) }
   0xb   : > { %v1046_v29 = vld [vmem:[%s1393_s0 + $0x48] sm:$0xff] (!%p251_p2)  ;;  %v1048_v32 = vld [vmem:[%s1393_s0 + $0x58] sm:$0xff] (!%p251_p2)  ;;  %v711_v33 = vld [vmem:[%s1395_s2] sm:$0xff] (!%p251_p2) }
   0xc   : > { %659 = vperm.xlu1 (!%p251_p2), %1190, %v641_v13   ;;  %v712_v34 = vld [vmem:[%s1395_s2 + $0x8] sm:$0xff] (!%p251_p2)  ;;  %v802_v36 = vld [vmem:[%s1396_s3] sm:$0xff] (!%p251_p2) }
   0xd   : > { %s1402_s25 = smov (!%p292_p3, %s1020_s25), 1 }
   0xe   : > { %s1271_s28 = sshll.u32 %s1402_s25, 4 }
   0xf   : > { %s296_s8 = scalar_lea.vmem %s1397_s4, %s1271_s28  ;;  %s301_s19 = scalar_lea.vmem %s1398_s5, %s1271_s28 }
  0x10   : > { %v1280_v2 = vld [vmem:[%s296_s8] sm:$0xff]  ;;  %v1282_v3 = vld [vmem:[%s296_s8 + $0x8] sm:$0xff]  ;;  %688 = vperm.xlu1 %1190, %v1056_v15   ;;  %s311_s23 = scalar_lea.vmem %s1400_s7, %s1271_s28  ;;  %s306_s27 = scalar_lea.vmem %s1399_s6, %s1271_s28 }
  0x11   : > { %v1180_v4 = vpack.i.bf16 %v1282_v3, %v1280_v2  ;;  %v1143_v5 = vpack.c.bf16 %v1282_v3, %v1280_v2 }
  0x13   : > { %1181 = vrot.lane.b32.xlu0 %v1180_v4, %s1214_s11  ;;  %1144 = vmatprep.subr.bf16.mxu0 %v1143_v5 }
  0x14   : > { %1146 = vmatpush3.bf16.msra.mxu0 %v1143_v5  ;;  %644 = vperm.xlu1 %1190, %v638_v17  }
  0x17   : > { %1186 = vrot.lane.b32.xlu0 %v1180_v4, %s1215_s18  ;;  %1110 = vmatmul.mubr.msk.f32.vlgmr.msra.gmra.mrb[0].mxu0 %vm331_vm0, %v313_v6 }
  0x18   : > { %1112 = vmatprep.mubr.msk.f32.mxu0 %vm331_vm0, %v314_v7  ;;  %673 = vperm.xlu1 %1190, %v1053_v18  }
  0x1b   : > { %1113 = vmatmul.mubr.msk.f32.gmra.mrb[2].mxu0 %vm331_vm0, %v315_v9  ;;  %683 = vperm.xlu0 %1191, %v1055_v11  }
  0x1c   : > { %1119 = vmatprep.mubr.msk.f32.mxu0 %vm331_vm0, %v1045_v12  ;;  %1192 = vset.pattern.permute.xlu1 %v1217_v35 }
  0x1d   : > { %715 = vperm.xlu1 %1192, %v711_v33  }
  0x1f   : > { %649 = vperm.xlu0 %1191, %v639_v14  }
  0x23   : > { %678 = vperm.xlu0 %1191, %v1054_v16   ;;  %v803_v16 = vld [vmem:[%s1396_s3 + $0x8] sm:$0xff] }
  0x27   : > { %1193 = vset.pattern.permute.xlu0 %v1217_v35 }
  0x28   : > { %720 = vperm.xlu0 %1193, %v712_v34  }
  0x2c   : > { %806 = vperm.xlu0 %1193, %v802_v36  }
  0x85   : > { %v1182_v19 = vpop.permute.xlu0 %1181 }
  0x86   : > { %v1184_v20 = vunpack.i.h.bf16 %v1182_v19  ;;  %v1183_v21 = vunpack.i.l.bf16 %v1182_v19 }
  0x87   : > { %v655_v37 = vpop.permute.xlu1 %654 }
  0x88   : > { %v1139_v22 = vpack.c.bf16 %v1184_v20, %v1183_v21 }
  0x89   : > { %v1187_v23 = vpop.permute.xlu0 %1186 }
  0x8a   : > { %v1189_v24 = vunpack.i.h.bf16 %v1187_v23  ;;  %v1188_v25 = vunpack.i.l.bf16 %v1187_v23  ;;  %1140 = vmatprep.subr.bf16.mxu1 %v1139_v22 }
  0x8b   : > { %1142 = vmatpush3.bf16.msra.mxu1 %v1139_v22  ;;  %v660_v45 = vpop.permute.xlu1 %659 }
  0x8c   : > { %v1147_v27 = vpack.c.bf16 %v1189_v24, %v1188_v25  ;;  %v914_v25 = vld [vmem:[%s301_s19] sm:$0xff] }
  0x8e   : > { %1148 = vmatprep.subr.bf16.mxu0 %v1147_v27  ;;  %1100 = vmatmul.mubr.msk.f32.vlgmr.msra.gmra.mrb[0].mxu1 %vm331_vm0, %v1034_v26 }
  0x8f   : > { %1150 = vmatpush3.bf16.msra.mxu0 %v1147_v27  ;;  %1102 = vmatprep.mubr.msk.f32.mxu1 %vm331_vm0, %v1035_v28  ;;  %v689_v53 = vpop.permute.xlu1 %688 }
  0x92   : > { %1120 = vmatmul.mubr.msk.f32.vlgmr.msra.gmra.mrb[0].mxu0 %vm331_vm0, %v1046_v29  ;;  %1103 = vmatmul.mubr.msk.f32.gmra.mrb[2].mxu1 %vm331_vm0, %v1036_v30 }
  0x93   : > { %1122 = vmatprep.mubr.msk.f32.mxu0 %vm331_vm0, %v1047_v31  ;;  %1129 = vmatprep.mubr.msk.f32.mxu1 %vm331_vm0, %v711_v33  ;;  %v645_v60 = vpop.permute.xlu1 %644  ;;  %v915_v33 = vld [vmem:[%s301_s19 + $0x8] sm:$0xff] }
  0x96   : > { %1123 = vmatmul.mubr.msk.f32.gmra.mrb[2].mxu0 %vm331_vm0, %v1048_v32 }
  0x97   : > { %v674_v0 = vpop.permute.xlu1 %673 }
  0x9a   : > { %v684_v48 = vpop.permute.xlu0 %683 }
  0x9c   : > { %v716_v18 = vpop.permute.xlu1 %715 }
  0x9e   : > { %v650_v57 = vpop.permute.xlu0 %649 }
  0xa2   : > { %v679_v63 = vpop.permute.xlu0 %678 }
  0xa7   : > { %v721_v17 = vpop.permute.xlu0 %720 }
  0xab   : > { %v807_v22 = vpop.permute.xlu0 %806 }
 0x161   : > { %v1101_v38 = vpop.f32.mrb[0].mxu1 }
 0x162   : > { %v410_v39 = vpop.f32.mrb[1].mxu1 }
 0x165   : > { %v1121_v40 = vpop.f32.mrb[0].mxu0  ;;  %v1104_v41 = vpop.f32.mrb[2].mxu1 }
 0x166   : > { %v1159_v42 = vadd.f32 %v1121_v40, %v1101_v38  ;;  %v615_v43 = vpop.f32.mrb[1].mxu0  ;;  %v420_v44 = vpop.f32.mrb[3].mxu1 }
 0x167   : > { %v1160_v46 = vadd.f32 %v615_v43, %v410_v39 }
 0x168   : > { %v663_v61 = vmul.f32 %v1159_v42, %v650_v57 }
 0x169   : > { %v1124_v47 = vpop.f32.mrb[2].mxu0  ;;  %v662_v62 = vmul.f32 %v1160_v46, %v645_v60 }
 0x16a   : > { %v1161_v49 = vadd.f32 %v1124_v47, %v1104_v41  ;;  %v625_v50 = vpop.f32.mrb[3].mxu0  ;;  %v692_v1 = vadd.f32 %v679_v63, %v663_v61 }
 0x16b   : > { %v1162_v51 = vadd.f32 %v625_v50, %v420_v44  ;;  %v691_v4 = vadd.f32 %v674_v0, %v662_v62 }
 0x16c   : > { %v665_v52 = vmul.f32 %v1161_v49, %v660_v45 }
 0x16d   : > { %v664_v54 = vmul.f32 %v1162_v51, %v655_v37 }
 0x16e   : > { %v694_v55 = vadd.f32 %v689_v53, %v665_v52 }
 0x16f   : > { %v693_v56 = vadd.f32 %v684_v48, %v664_v54 }
 0x170   : > { %v1058_v58 = vmul.f32 -1.442695, %v694_v55 }
 0x171   : > { %v1057_v59 = vmul.f32 -1.442695, %v693_v56 }
 0x172   : > { %1194 = vpow2.f32 %v1058_v58 }
 0x173   : > { %1196 = vpow2.f32 %v1057_v59 }
 0x174   : > { %1198 = vtanh.f32 %v692_v1 }
 0x175   : > { %1200 = vtanh.f32 %v691_v4 }
 0x17c   : > { %v1195_v5 = vpop.eup %1194 }
 0x17d   : > { %v1197_v6 = vpop.eup %1196  ;;  %v704_v7 = vadd.f32 1.0, %v1195_v5 }
 0x17e   : > { %v703_v8 = vadd.f32 1.0, %v1197_v6  ;;  %v1199_v9 = vpop.eup %1198 }
 0x17f   : > { %1202 = vrcp.f32 %v704_v7  ;;  %v1201_v10 = vpop.eup %1200 }
 0x180   : > { %1204 = vrcp.f32 %v703_v8 }
 0x189   : > { %v1203_v11 = vpop.eup %1202 }
 0x18a   : > { %v1205_v12 = vpop.eup %1204  ;;  %v710_v13 = vmul.f32 %v1203_v11, %v1199_v9 }
 0x18b   : > { %v709_v14 = vmul.f32 %v1205_v12, %v1201_v10 }
 0x18d   : > { %v1151_v15 = vpack.c.bf16 %v710_v13, %v709_v14 }
 0x18f   : > { %1152 = vmatprep.subr.bf16.mxu1 %v1151_v15 }
 0x190   : > { %1154 = vmatpush3.bf16.msra.mxu1 %v1151_v15 }
 0x191   : > { %1156 = vmatprep.subr.bf16.mxu1 %v1151_v15 }
 0x193   : > { %1130 = vmatmul.mubr.msk.f32.vlgmr.msra.gmra.mrb[4].mxu1 %vm331_vm0, %v712_v34 }
 0x194   : > { %1158 = vmatpush3.bf16.msra.mxu1 %v1151_v15  ;;  %1136 = vmatprep.mubr.msk.f32.mxu1 %vm331_vm0, %v802_v36 }
 0x197   : > { %1137 = vmatmul.mubr.msk.f32.vlgmr.msra.gmra.mrb[6].mxu1 %vm331_vm0, %v803_v16 }
 0x266   : > { %v1131_v19 = vpop.f32.mrb[4].mxu1 }
 0x267   : > { %v793_v20 = vpop.f32.mrb[5].mxu1  ;;  %v799_v26 = vadd.f32 %v1131_v19, %v721_v17 }
 0x268   : > { %v794_v21 = vadd.f32 %v793_v20, %v716_v18 }
 0x26a   : > { %895 = vrot.lane.b32.xlu1 %v794_v21, %s1218_s20  ;;  %v1138_v23 = vpop.f32.mrb[6].mxu1 }
 0x26b   : > { %v884_v24 = vpop.f32.mrb[7].mxu1 }
 0x26c   : > { %v885_v27 = vadd.f32 %v884_v24, %v807_v22 }
 0x26e   : > { %897 = vrot.lane.b32.xlu1 %v799_v26, %s1218_s20  ;;  %v916_v28 = vadd.f32 %v914_v25, %v885_v27 }
 0x270   : > { %918 = vst.msk [vmem:[%s311_s23] sm:$0xff] %vm911_vm1, %v916_v28 }
 0x272   : > { %811 = vperm.xlu1 %1192, %v803_v16  }
 0x2dc   : > { %v896_v29 = vpop.permute.xlu1 %895 }
 0x2dd   : > { %v901_v30 = vadd.f32 %v896_v29, %v1280_v2 }
 0x2df   : > { %905 = vrot.lane.b32.xlu0 %v901_v30, %s1214_s11 }
 0x2e0   : > { %v898_v31 = vpop.permute.xlu1 %897 }
 0x2e1   : > { %v902_v32 = vadd.f32 %v898_v31, %v1282_v3 }
 0x2e3   : > { %907 = vrot.lane.b32.xlu1 %v902_v32, %s1214_s11 }
 0x2f1   : > { %v812_v34 = vpop.permute.xlu1 %811 }
 0x2f2   : > { %v890_v35 = vadd.f32 %v1138_v23, %v812_v34 }
 0x2f4   : > { %v917_v36 = vadd.f32 %v915_v33, %v890_v35 }
 0x2f6   : > { %919 = vst.msk [vmem:[%s311_s23 + $0x8] sm:$0xff] %vm911_vm1, %v917_v36 }
 0x351   : > { %v906_v37 = vpop.permute.xlu0 %905 }
 0x352   : > { %912 = vst.msk [vmem:[%s306_s27] sm:$0xff] %vm911_vm1, %v906_v37 }
 0x355   : > { %v908_v2 = vpop.permute.xlu1 %907 }
 0x356   : > { %913 = vst.msk [vmem:[%s306_s27 + $0x8] sm:$0xff] %vm911_vm1, %v908_v2 }
 0x357 PF: > { %s18_s24 = sadd.s32 1, %s1212_s24  }
 0x358   : > { %p15_p4 = scmp.ge.s32.totalorder %s18_s24, 4  }
 0x35a   :  { %17 = sbr.rel (!%p15_p4) target bundleno = 1 (0x1), region = 92 }

// kernel: _lambda_.19
= control target key start
LH: loop header
LB: loop body
LE: loop exit
PB: predicated region body
PF: predicated region fallthrough
CT: control target
= control target key end

     0   :  { %s821_s15 = smov 0   ;;  %s895_s0 = inlined_call_operand.vmem [shape: f32[3,16,16], index: 0, kind: input, shape index: {}]   ;;  %s896_s1 = inlined_call_operand.vmem [shape: f32[3,16,1], index: 1, kind: input, shape index: {}]   ;;  %s897_s2 = inlined_call_operand.vmem [shape: f32[16,17], index: 2, kind: input, shape index: {}]   ;;  %s898_s3 = inlined_call_operand.vmem [shape: f32[2,16,10], index: 3, kind: input, shape index: {}]   ;;  %s899_s4 = inlined_call_operand.vmem [shape: f32[2,16,8], index: 4, kind: output, shape index: {}]  }
   0x1 LB: > { %s665_s16 = sadd.s32 4294967295, %s790_s15   ;;  %p669_p0 = scmp.ge.s32.totalorder %s790_s15, 1  ;;  %s790_s15 = sphi %s821_s15, %s14_s15  }
   0x2   : > { %p162_p1 = scmp.lt.s32.totalorder %s790_s15, 3 }
   0x4   : > { %p163_p2 = pnand %p669_p0, %p162_p1 }
   0x5   : > { %p188_p3 = scmp.lt.s32.totalorder (!%p163_p2), %s665_s16, 1  ;;  %v198_v0 = vld [vmem:[%s895_s0] sm:$0xff] (!%p163_p2)  ;;  %vm213_vm0 = vcmask (!%p163_p2), 130048   ;;  %v674_v1 = vld [vmem:[%s895_s0 + $0x10] sm:$0xff] (!%p163_p2)  ;;  %s792_s27 = smov (!%p163_p2), 127   ;;  %v199_v7 = vld [vmem:[%s895_s0 + $0x8] sm:$0xff] (!%p163_p2) }
   0x6   : > { %166 = sbr.rel (%p163_p2) target bundleno = 590 (0x24e), region = 36  ;;  %721 = vmatprep.mubr.msk.f32.mxu0 (!%p163_p2), %vm213_vm0, %v198_v0  ;;  %714 = vmatprep.mubr.msk.f32.mxu1 (!%p163_p2), %vm213_vm0, %v674_v1  ;;  %v468_v6 = vld [vmem:[%s896_s1] sm:$0xff] (!%p163_p2)  ;;  %v793_v8 = vmov (!%p163_p2), 0   ;;  %v469_v10 = vld [vmem:[%s896_s1 + $0x8] sm:$0xff] (!%p163_p2)  ;;  %s794_s8 = smov (!%p163_p2), 126   ;;  %v684_v11 = vld [vmem:[%s896_s1 + $0x10] sm:$0xff] (!%p163_p2) }
   0x7   : > { %780 = vset.pattern.permute.xlu1 (!%p163_p2), %v793_v8  ;;  %v680_v9 = vld [vmem:[%s895_s0 + $0x20] sm:$0xff] (!%p163_p2)  ;;  %781 = vset.pattern.permute.xlu0 (!%p163_p2), %v793_v8  ;;  %v685_v12 = vld [vmem:[%s896_s1 + $0x18] sm:$0xff] (!%p163_p2)  ;;  %v687_v13 = vld [vmem:[%s896_s1 + $0x28] sm:$0xff] (!%p163_p2)  ;;  %v795_v27 = vmov (!%p163_p2), 16   ;;  %vm607_vm3 = vcmask (!%p163_p2), 64512  }
   0x8   : > { %472 = vperm.xlu1 (!%p163_p2), %780, %v468_v6   ;;  %v686_v14 = vld [vmem:[%s896_s1 + $0x20] sm:$0xff] (!%p163_p2)  ;;  %v675_v22 = vld [vmem:[%s895_s0 + $0x18] sm:$0xff] (!%p163_p2)  ;;  %v681_v24 = vld [vmem:[%s895_s0 + $0x28] sm:$0xff] (!%p163_p2) }
   0x9   : > { %v516_v25 = vld [vmem:[%s897_s2] sm:$0xff] (!%p163_p2)  ;;  %v517_v26 = vld [vmem:[%s897_s2 + $0x8] sm:$0xff] (!%p163_p2) }
   0xc   : > { %477 = vperm.xlu1 (!%p163_p2), %780, %v469_v10  }
   0xd   : > { %s901_s16 = smov (!%p188_p3, %s665_s16), 1 }
   0xe   : > { %s692_s19 = sshll.u32 %s901_s16, 4 }
   0xf   : > { %s192_s22 = scalar_lea.vmem %s898_s3, %s692_s19  ;;  %s197_s30 = scalar_lea.vmem %s899_s4, %s692_s19 }
  0x10   : > { %v200_v2 = vld [vmem:[%s192_s22] sm:$0xff]  ;;  %v201_v3 = vld [vmem:[%s192_s22 + $0x8] sm:$0xff]  ;;  %492 = vperm.xlu1 %780, %v685_v12  }
  0x11   : > { %v770_v4 = vpack.i.bf16 %v201_v3, %v200_v2  ;;  %v742_v5 = vpack.c.bf16 %v201_v3, %v200_v2 }
  0x13   : > { %771 = vrot.lane.b32.xlu0 %v770_v4, %s792_s27  ;;  %743 = vmatprep.subr.bf16.mxu0 %v742_v5 }
  0x14   : > { %745 = vmatpush3.bf16.msra.mxu0 %v742_v5  ;;  %504 = vperm.xlu1 %780, %v686_v14  }
  0x17   : > { %776 = vrot.lane.b32.xlu0 %v770_v4, %s794_s8  ;;  %722 = vmatmul.mubr.msk.f32.vlgmr.msra.gmra.mrb[0].mxu0 %vm213_vm0, %v199_v7 }
  0x18   : > { %728 = vmatprep.mubr.msk.f32.mxu0 %vm213_vm0, %v680_v9  ;;  %782 = vset.pattern.permute.xlu1 %v795_v27 }
  0x19   : > { %520 = vperm.xlu1 %782, %v516_v25  }
  0x1b   : > { %487 = vperm.xlu0 %781, %v684_v11  }
  0x1f   : > { %509 = vperm.xlu0 %781, %v687_v13  }
  0x23   : > { %783 = vset.pattern.permute.xlu0 %v795_v27 }
  0x24   : > { %525 = vperm.xlu0 %783, %v517_v26  }
  0x85   : > { %v772_v15 = vpop.permute.xlu0 %771 }
  0x86   : > { %v774_v16 = vunpack.i.h.bf16 %v772_v15  ;;  %v773_v17 = vunpack.i.l.bf16 %v772_v15 }
  0x87   : > { %v473_v28 = vpop.permute.xlu1 %472 }
  0x88   : > { %v738_v18 = vpack.c.bf16 %v774_v16, %v773_v17 }
  0x89   : > { %v777_v19 = vpop.permute.xlu0 %776 }
  0x8a   : > { %v779_v20 = vunpack.i.h.bf16 %v777_v19  ;;  %v778_v21 = vunpack.i.l.bf16 %v777_v19  ;;  %739 = vmatprep.subr.bf16.mxu1 %v738_v18 }
  0x8b   : > { %741 = vmatpush3.bf16.msra.mxu1 %v738_v18  ;;  %v478_v29 = vpop.permute.xlu1 %477 }
  0x8c   : > { %v746_v23 = vpack.c.bf16 %v779_v20, %v778_v21 }
  0x8e   : > { %747 = vmatprep.subr.bf16.mxu0 %v746_v23  ;;  %715 = vmatmul.mubr.msk.f32.vlgmr.msra.gmra.mrb[0].mxu1 %vm213_vm0, %v675_v22 }
  0x8f   : > { %749 = vmatpush3.bf16.msra.mxu0 %v746_v23  ;;  %735 = vmatprep.mubr.msk.f32.mxu1 %vm213_vm0, %v516_v25  ;;  %v493_v34 = vpop.permute.xlu1 %492 }
  0x92   : > { %729 = vmatmul.mubr.msk.f32.vlgmr.msra.gmra.mrb[0].mxu0 %vm213_vm0, %v681_v24 }
  0x93   : > { %v505_v43 = vpop.permute.xlu1 %504 }
  0x98   : > { %v521_v50 = vpop.permute.xlu1 %520 }
  0x9a   : > { %v488_v33 = vpop.permute.xlu0 %487 }
  0x9e   : > { %v510_v42 = vpop.permute.xlu0 %509 }
  0xa3   : > { %v526_v49 = vpop.permute.xlu0 %525 }
 0x161   : > { %v716_v30 = vpop.f32.mrb[0].mxu1 }
 0x162   : > { %v286_v31 = vpop.f32.mrb[1].mxu1 }
 0x165   : > { %v730_v32 = vpop.f32.mrb[0].mxu0 }
 0x166   : > { %v754_v35 = vadd.f32 %v730_v32, %v716_v30  ;;  %v457_v36 = vpop.f32.mrb[1].mxu0 }
 0x167   : > { %v755_v37 = vadd.f32 %v457_v36, %v286_v31 }
 0x168   : > { %v481_v38 = vmul.f32 %v754_v35, %v478_v29 }
 0x169   : > { %v480_v39 = vmul.f32 %v755_v37, %v473_v28 }
 0x16a   : > { %v496_v40 = vadd.f32 %v493_v34, %v481_v38 }
 0x16b   : > { %v495_v41 = vadd.f32 %v488_v33, %v480_v39 }
 0x16c   : > { %v513_v44 = vmul.f32 %v510_v42, %v496_v40  ;;  %vm498_vm1 = vcmp.gt.f32.partialorder %v496_v40, 0.0 }
 0x16d   : > { %vm497_vm2 = vcmp.gt.f32.partialorder %v495_v41, 0.0  ;;  %v512_v45 = vmul.f32 %v505_v43, %v495_v41 }
 0x16e   : > { %v515_v46 = vsel %vm498_vm1, %v496_v40, %v513_v44 }
 0x16f   : > { %v514_v47 = vsel %vm497_vm2, %v495_v41, %v512_v45 }
 0x170   : > { %v750_v48 = vpack.c.bf16 %v515_v46, %v514_v47 }
 0x172   : > { %751 = vmatprep.subr.bf16.mxu1 %v750_v48 }
 0x173   : > { %753 = vmatpush3.bf16.msra.mxu1 %v750_v48 }
 0x176   : > { %736 = vmatmul.mubr.msk.f32.vlgmr.msra.gmra.mrb[2].mxu1 %vm213_vm0, %v517_v26 }
 0x249   : > { %v737_v51 = vpop.f32.mrb[2].mxu1 }
 0x24a   : > { %v604_v52 = vadd.f32 %v737_v51, %v526_v49  ;;  %v598_v53 = vpop.f32.mrb[3].mxu1 }
 0x24b   : > { %v599_v54 = vadd.f32 %v598_v53, %v521_v50 }
 0x24c   : > { %609 = vst.msk [vmem:[%s197_s30 + $0x8] sm:$0xff] %vm607_vm3, %v604_v52 }
 0x24d   : > { %608 = vst.msk [vmem:[%s197_s30] sm:$0xff] %vm607_vm3, %v599_v54 }
 0x24e PF: > { %s14_s15 = sadd.s32 1, %s790_s15  }
 0x24f   : > { %p11_p4 = scmp.ge.s32.totalorder %s14_s15, 4  }
 0x251   :  { %13 = sbr.rel (!%p11_p4) target bundleno = 1 (0x1), region = 70 }

// kernel: _lambda_.18
= control target key start
LH: loop header
LB: loop body
LE: loop exit
PB: predicated region body
PF: predicated region fallthrough
CT: control target
= control target key end

     0   :  { %13 = vsyncpa [#allocation3], 0  ;;  %s1590_s0 = inlined_call_operand.vmem [shape: f32[3,32,16], index: 0, kind: input, shape index: {}]   ;;  %s1591_s1 = inlined_call_operand.vmem [shape: f32[2,32,1], index: 1, kind: input, shape index: {}]   ;;  %s1592_s2 = inlined_call_operand.vmem [shape: f32[16,17], index: 2, kind: input, shape index: {}]   ;;  %s1593_s3 = inlined_call_operand.vmem [shape: f32[16,17], index: 3, kind: input, shape index: {}]   ;;  %s1594_s4 = inlined_call_operand.vmem [shape: f32[2,16,12], index: 4, kind: input, shape index: {}]   ;;  %s1595_s5 = inlined_call_operand.vmem [shape: f32[2,16,8], index: 5, kind: input, shape index: {}]   ;;  %s1596_s6 = inlined_call_operand.hbm [shape: f32[2,16,8], index: 6, kind: output, shape index: {0}]   ;;  %s1597_s7 = inlined_call_operand.vmem [shape: f32[2,16,8], index: 7, kind: output, shape index: {1}]  }
   0x1   :  { %15 = vsyncpa [#allocation3 + $0x1], 0  ;;  %s1371_s24 = smov 0   ;;  %s1373_s25 = smov 0  }
   0x2   :  { %s1375_s26 = smov 0   ;;  %s1377_s27 = smov 0  }
   0x3 LB: > { %s1392_s28 = sadd.s32 4294967295, %s1321_s27   ;;  %s1039_s29 = sadd.s32 4294967294, %s1321_s27   ;;  %s1321_s27 = sphi %s1377_s27, %s1603_s27   ;;  %s1317_s26 = sphi %s1375_s26, %s1602_s26   ;;  %s1313_s25 = sphi %s1373_s25, %s1601_s25   ;;  %s1309_s24 = sphi %s1371_s24, %s1600_s24  }
   0x4   : > { %s1396_s30 = sadd.s32 1, %s1321_s27   ;;  %s164_s8 = sadd.s32 1, %s1317_s26 }
   0x5   : > { %s161_s9 = ssub.s32 %s1321_s27, %s1396_s30  ;;  %p174_p0 = scmp.ne.s32.totalorder %s1317_s26, %s1313_s25 }
   0x6   : > { %p162_p1 = scmp.eq.s32.totalorder %s161_s9, 0  ;;  %p175_p2 = scmp.eq.s32.totalorder %s1392_s28, 1 }
   0x7   : > { %p180_p3 = scmp.ne.s32.totalorder %s1313_s25, %s1309_s24  ;;  %p181_p4 = scmp.eq.s32.totalorder %s1039_s29, 1 }
   0x8   : > { %s1407_s10 = scalar_select %p162_p1, %s1317_s26, %s164_s8  }
   0x9   : > { %p1409_p5 = por %p175_p2, %p174_p0  ;;  %p1413_p6 = por %p181_p4, %p180_p3 }
   0xa   : > { %p1042_p7 = scmp.ge.s32.totalorder %s1321_s27, 1  ;;  %p253_p8 = scmp.lt.s32.totalorder %s1321_s27, 3 }
   0xc   : > { %p254_p9 = pnand %p1042_p7, %p253_p8 }
   0xd   : > { %p295_p10 = scmp.lt.s32.totalorder (!%p254_p9), %s1392_s28, 1  ;;  %v310_v0 = vld [vmem:[%s1590_s0] sm:$0xff] (!%p254_p9)  ;;  %vm329_vm0 = vcmask (!%p254_p9), 130048   ;;  %s1323_s22 = smov (!%p254_p9), 126   ;;  %v311_v6 = vld [vmem:[%s1590_s0 + $0x8] sm:$0xff] (!%p254_p9)  ;;  %v312_v7 = vld [vmem:[%s1590_s0 + $0x10] sm:$0xff] (!%p254_p9) }
   0xe   : > { %257 = sbr.rel (%p254_p9) target bundleno = 878 (0x36e), region = 44  ;;  %1129 = vmatprep.mubr.msk.f32.mxu0 (!%p254_p9), %vm329_vm0, %v310_v0  ;;  %v1050_v1 = vld [vmem:[%s1590_s0 + $0x20] sm:$0xff] (!%p254_p9)  ;;  %v638_v8 = vld [vmem:[%s1591_s1 + $0x10] sm:$0xff] (!%p254_p9)  ;;  %v313_v9 = vld [vmem:[%s1590_s0 + $0x18] sm:$0xff] (!%p254_p9)  ;;  %v1325_v10 = vmov (!%p254_p9), 0   ;;  %v1326_v35 = vmov (!%p254_p9), 16  }
   0xf   : > { %1119 = vmatprep.mubr.msk.f32.mxu1 (!%p254_p9), %vm329_vm0, %v1050_v1  ;;  %1243 = vset.pattern.permute.xlu1 (!%p254_p9), %v1325_v10  ;;  %v1072_v11 = vld [vmem:[%s1591_s1 + $0x30] sm:$0xff] (!%p254_p9)  ;;  %v1062_v12 = vld [vmem:[%s1590_s0 + $0x40] sm:$0xff] (!%p254_p9)  ;;  %v639_v13 = vld [vmem:[%s1591_s1 + $0x18] sm:$0xff] (!%p254_p9)  ;;  %s1327_s23 = smov (!%p254_p9), 2   ;;  %vm909_vm1 = vcmask (!%p254_p9), 64512   ;;  %s1088_s17 = sshll.u32 (!%p254_p9), %s1392_s28, 8 }
  0x10   : > { %652 = vperm.xlu1 (!%p254_p9), %1243, %v638_v8   ;;  %1244 = vset.pattern.permute.xlu0 (!%p254_p9), %v1325_v10  ;;  %v637_v14 = vld [vmem:[%s1591_s1 + $0x8] sm:$0xff] (!%p254_p9)  ;;  %v1073_v15 = vld [vmem:[%s1591_s1 + $0x38] sm:$0xff] (!%p254_p9)  ;;  %v636_v17 = vld [vmem:[%s1591_s1] sm:$0xff] (!%p254_p9) }
  0x11   : > { %v1071_v16 = vld [vmem:[%s1591_s1 + $0x28] sm:$0xff] (!%p254_p9)  ;;  %v1070_v18 = vld [vmem:[%s1591_s1 + $0x20] sm:$0xff] (!%p254_p9)  ;;  %v1052_v28 = vld [vmem:[%s1590_s0 + $0x30] sm:$0xff] (!%p254_p9) }
  0x12   : > { %v1051_v26 = vld [vmem:[%s1590_s0 + $0x28] sm:$0xff] (!%p254_p9)  ;;  %v1053_v30 = vld [vmem:[%s1590_s0 + $0x38] sm:$0xff] (!%p254_p9)  ;;  %v1064_v31 = vld [vmem:[%s1590_s0 + $0x50] sm:$0xff] (!%p254_p9) }
  0x13   : > { %v1063_v29 = vld [vmem:[%s1590_s0 + $0x48] sm:$0xff] (!%p254_p9)  ;;  %v1065_v32 = vld [vmem:[%s1590_s0 + $0x58] sm:$0xff] (!%p254_p9)  ;;  %v709_v33 = vld [vmem:[%s1592_s2] sm:$0xff] (!%p254_p9) }
  0x14   : > { %657 = vperm.xlu1 (!%p254_p9), %1243, %v639_v13   ;;  %v710_v34 = vld [vmem:[%s1592_s2 + $0x8] sm:$0xff] (!%p254_p9)  ;;  %v800_v36 = vld [vmem:[%s1593_s3] sm:$0xff] (!%p254_p9) }
  0x15   : > { %s296_s15 = scalar_select %p295_p10, %s1392_s28, 1 }
  0x16   : > { %s1328_s28 = smov [#allocation2]  }
  0x17   : > { %s1425_s16 = sshll.u32 %s296_s15, 4  ;;  %s1324_s15 = smov 124  }
  0x18   : > { %s299_s19 = scalar_lea.vmem %s1594_s4, %s1425_s16  ;;  %686 = vperm.xlu1 %1243, %v1073_v15   ;;  %s304_s21 = scalar_lea.vmem %s1595_s5, %s1425_s16 }
  0x19   : > { %v1434_v2 = vld [vmem:[%s299_s19] sm:$0xff]  ;;  %v1436_v3 = vld [vmem:[%s299_s19 + $0x8] sm:$0xff]  ;;  %s309_s9 = scalar_lea.vmem %s1597_s7, %s1425_s16  ;;  %s285_s16 = sand.u32 1, %s1313_s25  }
  0x1a   : > { %v1233_v4 = vpack.i.bf16 %v1436_v3, %v1434_v2  ;;  %v1163_v5 = vpack.c.bf16 %v1436_v3, %v1434_v2  ;;  %s1043_s13 = sshll.u32 %s285_s16, 4  ;;  %s1549_s20 = scalar_lea.sflag [#allocation3], %s285_s16 }
  0x1b   : > { %s287_s14 = scalar_lea.vmem [#allocation2], %s1043_s13 }
  0x1c   : > { %1234 = vrot.lane.b32.xlu0 %v1233_v4, %s1323_s22  ;;  %1164 = vmatprep.subr.bf16.mxu0 %v1163_v5 }
  0x1d   : > { %1166 = vmatpush3.bf16.msra.mxu0 %v1163_v5  ;;  %642 = vperm.xlu1 %1243, %v636_v17  }
  0x20   : > { %1239 = vrot.lane.b32.xlu0 %v1233_v4, %s1324_s15  ;;  %1130 = vmatmul.mubr.msk.f32.vlgmr.msra.gmra.mrb[0].mxu0 %vm329_vm0, %v311_v6  ;;  %s937_s15 = sshll.u32 %s287_s14, 4  ;;  %s1541_s15 = int_to_ptr.vmem [resolvable:$true] %s937_s15 }
  0x21   : > { %1132 = vmatprep.mubr.msk.f32.mxu0 %vm329_vm0, %v312_v7  ;;  %671 = vperm.xlu1 %1243, %v1070_v18  }
  0x24   : > { %1133 = vmatmul.mubr.msk.f32.gmra.mrb[2].mxu0 %vm329_vm0, %v313_v9  ;;  %681 = vperm.xlu0 %1244, %v1072_v11  }
  0x25   : > { %1139 = vmatprep.mubr.msk.f32.mxu0 %vm329_vm0, %v1062_v12  ;;  %1245 = vset.pattern.permute.xlu1 %v1326_v35 }
  0x26   : > { %713 = vperm.xlu1 %1245, %v709_v33  }
  0x28   : > { %647 = vperm.xlu0 %1244, %v637_v14  }
  0x2c   : > { %676 = vperm.xlu0 %1244, %v1071_v16   ;;  %v801_v16 = vld [vmem:[%s1593_s3 + $0x8] sm:$0xff] }
  0x30   : > { %1246 = vset.pattern.permute.xlu0 %v1326_v35 }
  0x31   : > { %718 = vperm.xlu0 %1246, %v710_v34  }
  0x35   : > { %804 = vperm.xlu0 %1246, %v800_v36  }
  0x8e   : > { %v1235_v19 = vpop.permute.xlu0 %1234 }
  0x8f   : > { %v1237_v20 = vunpack.i.h.bf16 %v1235_v19  ;;  %v1236_v21 = vunpack.i.l.bf16 %v1235_v19  ;;  %v653_v37 = vpop.permute.xlu1 %652 }
  0x91   : > { %v1159_v22 = vpack.c.bf16 %v1237_v20, %v1236_v21 }
  0x92   : > { %v1240_v23 = vpop.permute.xlu0 %1239 }
  0x93   : > { %v1242_v24 = vunpack.i.h.bf16 %v1240_v23  ;;  %v1241_v25 = vunpack.i.l.bf16 %v1240_v23  ;;  %1160 = vmatprep.subr.bf16.mxu1 %v1159_v22  ;;  %v658_v45 = vpop.permute.xlu1 %657 }
  0x94   : > { %1162 = vmatpush3.bf16.msra.mxu1 %v1159_v22 }
  0x95   : > { %v1167_v27 = vpack.c.bf16 %v1242_v24, %v1241_v25  ;;  %v912_v25 = vld [vmem:[%s304_s21] sm:$0xff] }
  0x97   : > { %1168 = vmatprep.subr.bf16.mxu0 %v1167_v27  ;;  %1120 = vmatmul.mubr.msk.f32.vlgmr.msra.gmra.mrb[0].mxu1 %vm329_vm0, %v1051_v26  ;;  %v687_v53 = vpop.permute.xlu1 %686 }
  0x98   : > { %1170 = vmatpush3.bf16.msra.mxu0 %v1167_v27  ;;  %1122 = vmatprep.mubr.msk.f32.mxu1 %vm329_vm0, %v1052_v28 }
  0x9b   : > { %1140 = vmatmul.mubr.msk.f32.vlgmr.msra.gmra.mrb[0].mxu0 %vm329_vm0, %v1063_v29  ;;  %1123 = vmatmul.mubr.msk.f32.gmra.mrb[2].mxu1 %vm329_vm0, %v1053_v30 }
  0x9c   : > { %1142 = vmatprep.mubr.msk.f32.mxu0 %vm329_vm0, %v1064_v31  ;;  %1149 = vmatprep.mubr.msk.f32.mxu1 %vm329_vm0, %v709_v33  ;;  %v643_v60 = vpop.permute.xlu1 %642  ;;  %v913_v33 = vld [vmem:[%s304_s21 + $0x8] sm:$0xff]  ;;  %s1259_s21 = scalar_lea.vmem %s1541_s15, 256 }
  0x9d   : > { %p1260_p11 = scmp.ne.s32.totalorder %s1541_s15, %s1259_s21 }
  0x9f   : > { %1143 = vmatmul.mubr.msk.f32.gmra.mrb[2].mxu0 %vm329_vm0, %v1065_v32  ;;  %p1261_p12 = pnand %p1260_p11, %p1409_p5 }
  0xa0   : > { %v672_v0 = vpop.permute.xlu1 %671 }
  0xa1   : > { %p1262_p13 = pneg %p1261_p12 }
  0xa3   : > { %v682_v48 = vpop.permute.xlu0 %681 }
  0xa5   : > { %v714_v18 = vpop.permute.xlu1 %713 }
  0xa7   : > { %v648_v57 = vpop.permute.xlu0 %647 }
  0xab   : > { %v677_v63 = vpop.permute.xlu0 %676 }
  0xb0   : > { %v719_v17 = vpop.permute.xlu0 %718 }
  0xb4   : > { %v805_v22 = vpop.permute.xlu0 %804 }
 0x16a   : > { %v1121_v38 = vpop.f32.mrb[0].mxu1 }
 0x16b   : > { %v408_v39 = vpop.f32.mrb[1].mxu1 }
 0x16e   : > { %v1141_v40 = vpop.f32.mrb[0].mxu0  ;;  %v1124_v41 = vpop.f32.mrb[2].mxu1 }
 0x16f   : > { %v1179_v42 = vadd.f32 %v1141_v40, %v1121_v38  ;;  %v613_v43 = vpop.f32.mrb[1].mxu0  ;;  %v418_v44 = vpop.f32.mrb[3].mxu1 }
 0x170   : > { %v1180_v46 = vadd.f32 %v613_v43, %v408_v39 }
 0x171   : > { %v661_v61 = vmul.f32 %v1179_v42, %v648_v57 }
 0x172   : > { %v1144_v47 = vpop.f32.mrb[2].mxu0  ;;  %v660_v62 = vmul.f32 %v1180_v46, %v643_v60 }
 0x173   : > { %v1181_v49 = vadd.f32 %v1144_v47, %v1124_v41  ;;  %v623_v50 = vpop.f32.mrb[3].mxu0  ;;  %v690_v1 = vadd.f32 %v677_v63, %v661_v61 }
 0x174   : > { %v1182_v51 = vadd.f32 %v623_v50, %v418_v44  ;;  %v689_v4 = vadd.f32 %v672_v0, %v660_v62 }
 0x175   : > { %v663_v52 = vmul.f32 %v1181_v49, %v658_v45 }
 0x176   : > { %v662_v54 = vmul.f32 %v1182_v51, %v653_v37 }
 0x177   : > { %v692_v55 = vadd.f32 %v687_v53, %v663_v52 }
 0x178   : > { %v691_v56 = vadd.f32 %v682_v48, %v662_v54 }
 0x179   : > { %v1075_v58 = vmul.f32 -1.442695, %v692_v55 }
 0x17a   : > { %v1074_v59 = vmul.f32 -1.442695, %v691_v56 }
 0x17b   : > { %1247 = vpow2.f32 %v1075_v58 }
 0x17c   : > { %1249 = vpow2.f32 %v1074_v59 }
 0x17d   : > { %1251 = vtanh.f32 %v690_v1 }
 0x17e   : > { %1253 = vtanh.f32 %v689_v4 }
 0x185   : > { %v1248_v5 = vpop.eup %1247 }
 0x186   : > { %v1250_v6 = vpop.eup %1249  ;;  %v702_v7 = vadd.f32 1.0, %v1248_v5 }
 0x187   : > { %v701_v8 = vadd.f32 1.0, %v1250_v6  ;;  %v1252_v9 = vpop.eup %1251 }
 0x188   : > { %1255 = vrcp.f32 %v702_v7  ;;  %v1254_v10 = vpop.eup %1253 }
 0x189   : > { %1257 = vrcp.f32 %v701_v8 }
 0x192   : > { %v1256_v11 = vpop.eup %1255 }
 0x193   : > { %v1258_v12 = vpop.eup %1257  ;;  %v708_v13 = vmul.f32 %v1256_v11, %v1252_v9 }
 0x194   : > { %v707_v14 = vmul.f32 %v1258_v12, %v1254_v10 }
 0x196   : > { %v1171_v15 = vpack.c.bf16 %v708_v13, %v707_v14 }
 0x198   : > { %1172 = vmatprep.subr.bf16.mxu1 %v1171_v15 }
 0x199   : > { %1174 = vmatpush3.bf16.msra.mxu1 %v1171_v15 }
 0x19a   : > { %1176 = vmatprep.subr.bf16.mxu1 %v1171_v15 }
 0x19c   : > { %1150 = vmatmul.mubr.msk.f32.vlgmr.msra.gmra.mrb[4].mxu1 %vm329_vm0, %v710_v34 }
 0x19d   : > { %1178 = vmatpush3.bf16.msra.mxu1 %v1171_v15  ;;  %1156 = vmatprep.mubr.msk.f32.mxu1 %vm329_vm0, %v800_v36 }
 0x1a0   : > { %1157 = vmatmul.mubr.msk.f32.vlgmr.msra.gmra.mrb[6].mxu1 %vm329_vm0, %v801_v16 }
 0x26f   : > { %v1151_v19 = vpop.f32.mrb[4].mxu1 }
 0x270   : > { %v791_v20 = vpop.f32.mrb[5].mxu1  ;;  %v797_v26 = vadd.f32 %v1151_v19, %v719_v17 }
 0x271   : > { %v792_v21 = vadd.f32 %v791_v20, %v714_v18 }
 0x273   : > { %893 = vrot.lane.b32.xlu1 %v792_v21, %s1327_s23  ;;  %v1158_v23 = vpop.f32.mrb[6].mxu1 }
 0x274   : > { %v882_v24 = vpop.f32.mrb[7].mxu1 }
 0x275   : > { %v883_v27 = vadd.f32 %v882_v24, %v805_v22 }
 0x277   : > { %895 = vrot.lane.b32.xlu1 %v797_v26, %s1327_s23  ;;  %v914_v28 = vadd.f32 %v912_v25, %v883_v27  ;;  %s1263_s23 = sshll.u32 %s1328_s28, 4  ;;  %s1264_s23 = int_to_ptr.vmem [resolvable:$false] %s1263_s23 }
 0x278   : > { %s1265_s29 = scalar_lea.vmem %s1264_s23, 512  ;;  %p1266_p0 = scmp.lt.s32.totalorder %s1541_s15, %s1264_s23 }
 0x279   : > { %916 = vst.msk [vmem:[%s309_s9] sm:$0xff] %vm909_vm1, %v914_v28  ;;  %p1267_p1 = scmp.lt.s32.totalorder %s1265_s29, %s1259_s21 }
 0x27b   : > { %809 = vperm.xlu1 %1245, %v801_v16   ;;  %p1268_p2 = por %p1267_p1, %p1266_p0 }
 0x27d   : > { %p1269_p3 = pnand %p1268_p2, %p1262_p13 }
 0x2e5   : > { %v894_v29 = vpop.permute.xlu1 %893 }
 0x2e6   : > { %v899_v30 = vadd.f32 %v894_v29, %v1434_v2 }
 0x2e8   : > { %903 = vrot.lane.b32.xlu0 %v899_v30, %s1323_s22 }
 0x2e9   : > { %v896_v31 = vpop.permute.xlu1 %895 }
 0x2ea   : > { %v900_v32 = vadd.f32 %v896_v31, %v1436_v3 }
 0x2ec   : > { %905 = vrot.lane.b32.xlu1 %v900_v32, %s1323_s22  ;;  %s1546_s22 = scalar_lea.hbm %s1596_s6, %s1088_s17 }
 0x2fa   : > { %v810_v34 = vpop.permute.xlu1 %809 }
 0x2fb   : > { %v888_v35 = vadd.f32 %v1158_v23, %v810_v34 }
 0x2fd   : > { %v915_v36 = vadd.f32 %v913_v33, %v888_v35 }
 0x2ff   : > { %917 = vst.msk [vmem:[%s309_s9 + $0x8] sm:$0xff] %vm909_vm1, %v915_v36 }
 0x35a   : > { %v904_v2 = vpop.permute.xlu0 %903 }
 0x35b   : > { %910 = vst.msk [vmem:[%s287_s14] sm:$0xff] %vm909_vm1, %v904_v2 }
 0x35e   : > { %v906_v3 = vpop.permute.xlu1 %905 }
 0x35f   : > { %911 = vst.msk [vmem:[%s287_s14 + $0x8] sm:$0xff] %vm909_vm1, %v906_v3 }
 0x360   : > { %1272 = shalt.err (!%p1269_p3)
}
 0x361   : > { %s1273_s8 = scalar_lea.hbm %s1546_s22, 256  ;;  %s1277_s13 = scalar_lea.hbm %s1596_s6, 512 }
 0x362   : > { %p1274_p4 = scmp.ne.s32.totalorder %s1546_s22, %s1273_s8  ;;  %p1278_p9 = scmp.lt.u32.totalorder %s1546_s22, %s1596_s6 }
 0x363   : > { %p1279_p10 = scmp.lt.u32.totalorder %s1277_s13, %s1273_s8  ;;  %p1281_p12 = scmp.lt.u32.totalorder %s1273_s8, %s1546_s22 }
 0x364   : > { %p1275_p7 = pnand %p1274_p4, %p1409_p5 }
 0x365   : > { %p1280_p11 = por %p1279_p10, %p1278_p9 }
 0x366   : > { %p1276_p8 = pneg %p1275_p7 }
 0x367   : > { %p1282_p13 = por %p1281_p12, %p1280_p11 }
 0x369   : > { %p1283_p0 = pnand %p1282_p13, %p1276_p8 }
 0x36b   : > { %1286 = shalt.err (!%p1283_p0)
}
 0x36c   : > { %s1329_s18 = smov 128   ;;  %s1330_s19 = smov 8  }
 0x36d   : > { %1187 = dma.vmem_to_hbm [thread:$0]  (%p1409_p5), %s1541_s15, 256, %s1546_s22, %s1549_s20, %s1329_s18, %s1329_s18, %s1330_s19  }
 0x36e PF: > { %p1193_p1 = scmp.ge.s32.totalorder %s1321_s27, 2  ;;  %s955_s21 = sand.u32 1, %s1309_s24  }
 0x36f   : > { %s956_s28 = scalar_lea.sflag [#allocation3], %s955_s21 }
 0x370   : > { %p1190_p2 = pnand %p1193_p1, %p1413_p6 }
 0x372   : > { %1304 = dma.done.wait (!%p1190_p2), %s956_s28, 256  }
 0x373   : > { %1306 = vsyncadd (!%p1190_p2), %s956_s28, 4294967040  ;;  %p18_p3 = scmp.ge.s32.totalorder %s1396_s30, 4   ;;  %s1600_s24 = smov %s1313_s25 }
 0x374   : > { %s1601_s25 = smov %s1317_s26  ;;  %s1602_s26 = smov %s1407_s10 }
 0x375   : > { %s1603_s27 = smov %s1396_s30  ;;  %20 = sbr.rel (!%p18_p3) target bundleno = 3 (0x3), region = 97 }
 0x37c   :  { %969 = vsyncpa [#allocation3], 1 }
 0x37d   :  { %971 = vsyncpa [#allocation3 + $0x1], 1 }

</bundles_post_ra>
